<compile_context>
chip_gen: v7x
topology: tpu7x:2x2x1
jax: 0.10.0
libtpu: 0.0.40
codegen_flags: <defaults>
</compile_context>

<pallas_src>
import functools
import math

import jax
import jax.numpy as jnp
from jax import lax
from jax.experimental import pallas as pl
from jax.experimental.pallas import tpu as pltpu

TEMPERATURE = 0.07
EPS = 1e-8         # eps in the PyTorch loss
NORM_EPS = 1e-12   # eps of F.normalize


def _style_contrast_kernel(n, tile_r, tile_c, has_padding, inv_t,
                           fr_ref, fc_ref, lr_ref, lc_ref,
                           loss_ref, num_ref,
                           den_acc, num_acc):
    i = pl.program_id(0)          # row-block index   ("parallel")
    j = pl.program_id(1)          # col-block index   ("arbitrary", reduction, last)

    @pl.when(j == 0)
    def _():
        den_acc[...] = jnp.zeros_like(den_acc)
        num_acc[...] = jnp.zeros_like(num_acc)

    # Features arrive already L2-normalized (wrapper); go straight to the MXU.
    cos = lax.dot_general(fr_ref[...], fc_ref[...],
                          dimension_numbers=(((1,), (1,)), ((), ())),
                          preferred_element_type=jnp.float32)    # (tile_r, tile_c)

    # After normalization the diagonal cos = 1 is the row maximum, so the
    # softmax stabilizer is a compile-time constant: exp(sim - max) = exp((cos-1)/T).
    e = jnp.exp((cos - 1.0) * inv_t)
    same = lr_ref[...] == lc_ref[...]            # (tile_r,1)==(1,tile_c) -> (tile_r,tile_c)

    def accumulate(ev):
        # Elementwise accumulation only (VALU); row reduction deferred to the
        # j == last epilogue.
        den_acc[...] += ev
        num_acc[...] += jnp.where(same, ev, 0.0)

    # Gate the mask math: only blocks that straddle the diagonal and
    # (statically, only if the input was padded) blocks covering padded
    # columns need the iota/compare/where path.
    row_lo = i * tile_r
    col_lo = j * tile_c
    needs_mask = jnp.logical_and(row_lo < col_lo + tile_c,
                                 col_lo < row_lo + tile_r)
    if has_padding:
        needs_mask = jnp.logical_or(needs_mask, col_lo + tile_c > n)

    @pl.when(needs_mask)
    def _():
        row_g = row_lo + lax.broadcasted_iota(jnp.int32, (tile_r, tile_c), 0)
        col_g = col_lo + lax.broadcasted_iota(jnp.int32, (tile_r, tile_c), 1)
        kill = row_g == col_g
        if has_padding:
            kill = jnp.logical_or(kill, col_g >= n)
        accumulate(jnp.where(kill, 0.0, e))

    @pl.when(jnp.logical_not(needs_mask))
    def _():
        accumulate(e)

    @pl.when(j == pl.num_programs(1) - 1)
    def _():
        den = jnp.sum(den_acc[...], axis=1, keepdims=True)   # once per row block
        num = jnp.sum(num_acc[...], axis=1, keepdims=True)
        loss_ref[...] = -jnp.log(num / (den + EPS) + EPS)
        num_ref[...] = num                                    # validity = num > 0


def _reference(features, labels, temperature=TEMPERATURE, mxu_dtype=None):
    """Pure-JAX implementation mirroring the PyTorch module.

    Also used as the plain-XLA fallback for tiny N.  If `mxu_dtype` is given,
    the normalized features are cast to it before the matmul (to mirror the
    kernel's bf16 MXU feed for tight comparisons).
    """
    f = features.astype(jnp.float32)
    f = f / jnp.maximum(jnp.sqrt(jnp.sum(f * f, axis=1, keepdims=True)), NORM_EPS)
    if mxu_dtype is not None:
        f = f.astype(mxu_dtype)
        sim = jnp.matmul(f, f.T, preferred_element_type=jnp.float32) / temperature
    else:
        sim = jnp.matmul(f, f.T, precision=lax.Precision.HIGHEST) / temperature
    n = features.shape[0]
    same = labels[None, :] == labels[:, None]
    eye = jnp.eye(n, dtype=bool)
    exp_sim = jnp.exp(sim - jnp.max(sim, axis=1, keepdims=True))
    denom = jnp.sum(jnp.where(eye, 0.0, exp_sim), axis=1)
    numer = jnp.sum(jnp.where(same & ~eye, exp_sim, 0.0), axis=1)
    loss = -jnp.log(numer / (denom + EPS) + EPS)
    valid = jnp.sum((same & ~eye).astype(jnp.float32), axis=1) > 0
    vc = jnp.sum(valid.astype(jnp.float32))
    return jnp.where(vc > 0,
                     jnp.sum(jnp.where(valid, loss, 0.0)) / jnp.maximum(vc, 1.0),
                     jnp.float32(0.0))


def style_contrast_loss(features, labels, *, temperature=TEMPERATURE,
                        tile_r=256, tile_c=256, mxu_dtype=jnp.bfloat16,
                        xla_fallback_n=64):
    """features: [N, D] float, labels: [N] int -> f32 scalar."""
    n, d = features.shape

    if n <= xla_fallback_n:
        # Toy sizes: pallas_call fixed overhead dominates; use fused XLA.
        return _reference(features, labels, temperature)

    assert tile_r % 8 == 0 and tile_c % 128 == 0, "tile_r%8==0, tile_c%128==0 required"

    # F.normalize(x, dim=1) once, in f32, then a single cast for the MXU feed.
    f = features.astype(jnp.float32)
    f = f / jnp.maximum(jnp.sqrt(jnp.sum(f * f, axis=1, keepdims=True)), NORM_EPS)
    f = f.astype(mxu_dtype)

    step = math.lcm(tile_r, tile_c)
    n_pad = (n + step - 1) // step * step
    has_padding = n_pad != n

    lab = labels.astype(jnp.int32)
    if has_padding:
        # Pad value is irrelevant: padded columns are killed in-kernel and
        # padded rows are sliced off below.
        f = jnp.pad(f, ((0, n_pad - n), (0, 0)))
        lab = jnp.pad(lab, (0, n_pad - n))
    lab_row = lab.reshape(n_pad, 1)
    lab_col = lab.reshape(1, n_pad)

    nblk_r = n_pad // tile_r
    nblk_c = n_pad // tile_c

    kernel = functools.partial(_style_contrast_kernel, n, tile_r, tile_c,
                               has_padding, 1.0 / float(temperature))

    # Explicit VMEM budget: double-buffered feature/label/output blocks plus
    # the two (tile_r, tile_c) accumulators, with headroom; capped so the same
    # plan stays legal on v7x's smaller VMEM.
    feat_bytes = jnp.dtype(mxu_dtype).itemsize
    vmem_bytes = (2 * (tile_r + tile_c) * d * feat_bytes   # feature blocks (x2 buf)
                  + 2 * (tile_r + tile_c) * 4              # label blocks (x2 buf)
                  + 2 * tile_r * tile_c * 4                # den/num accumulators
                  + 2 * 2 * tile_r * 4)                    # outputs (x2 buf)
    vmem_limit = int(min(max(2 * vmem_bytes, 32 * 1024 * 1024), 64 * 1024 * 1024))

    loss_rows, num_rows = pl.pallas_call(
        kernel,
        out_shape=(jax.ShapeDtypeStruct((n_pad, 1), jnp.float32),
                   jax.ShapeDtypeStruct((n_pad, 1), jnp.float32)),
        grid_spec=pltpu.PrefetchScalarGridSpec(
            num_scalar_prefetch=0,
            grid=(nblk_r, nblk_c),
            in_specs=[
                pl.BlockSpec((tile_r, d), lambda i, j: (i, 0)),   # row feature block
                pl.BlockSpec((tile_c, d), lambda i, j: (j, 0)),   # col feature block
                pl.BlockSpec((tile_r, 1), lambda i, j: (i, 0)),   # row labels
                pl.BlockSpec((1, tile_c), lambda i, j: (0, j)),   # col labels (lane-dense)
            ],
            out_specs=[
                pl.BlockSpec((tile_r, 1), lambda i, j: (i, 0)),   # per-row loss
                pl.BlockSpec((tile_r, 1), lambda i, j: (i, 0)),   # per-row numerator
            ],
            scratch_shapes=[pltpu.VMEM((tile_r, tile_c), jnp.float32),
                            pltpu.VMEM((tile_r, tile_c), jnp.float32)],
        ),
        compiler_params=pltpu.CompilerParams(
            dimension_semantics=("parallel", "arbitrary"),
            vmem_limit_bytes=vmem_limit),
    )(f, f, lab_row, lab_col)

    # Final masked mean over the N real rows: tiny O(N) epilogue in plain jnp.
    loss = loss_rows[:n, 0]
    num = num_rows[:n, 0]
    valid = num > 0.0                       # row has a positive <=> numerator > 0
    vcount = jnp.sum(valid.astype(jnp.float32))
    total = jnp.sum(jnp.where(valid, loss, 0.0))
    return jnp.where(vcount > 0.0, total / jnp.maximum(vcount, 1.0),
                     jnp.float32(0.0))


if __name__ == "__main__":
    key = jax.random.PRNGKey(0)
    k1, k2, k3, k4, k5, k6 = jax.random.split(key, 6)

    # Case 1: multi-tile path (2x2 grid of 256x256 blocks, 384 padded to 512),
    # default bf16 MXU feed.  Tight vs a bf16-mirroring reference; loose vs the
    # exact-f32 reference (bf16 matmul numerics).
    N1, D1 = 384, 64
    feats1 = jax.random.normal(k1, (N1, D1), dtype=jnp.float32)
    labs1 = jax.random.randint(k2, (N1,), 0, 7, dtype=jnp.int32)
    out1 = jax.block_until_ready(style_contrast_loss(feats1, labs1))
    ref1_bf16 = _reference(feats1, labs1, mxu_dtype=jnp.bfloat16)
    ref1_f32 = _reference(feats1, labs1)
    assert jnp.allclose(out1, ref1_bf16, rtol=2e-4, atol=2e-5), (out1, ref1_bf16)
    assert jnp.allclose(out1, ref1_f32, rtol=5e-2, atol=5e-2), (out1, ref1_f32)

    # Case 2: single 256x256 block with in-kernel padding + diagonal masking,
    # exact f32 MXU feed -> tight vs the f32 reference.
    N2, D2 = 200, 48
    feats2 = jax.random.normal(k3, (N2, D2), dtype=jnp.float32)
    labs2 = jax.random.randint(k4, (N2,), 0, 5, dtype=jnp.int32)
    out2 = jax.block_until_ready(
        style_contrast_loss(feats2, labs2, mxu_dtype=jnp.float32))
    ref2 = _reference(feats2, labs2)
    assert jnp.allclose(out2, ref2, rtol=1e-4, atol=1e-5), (out2, ref2)

    # Case 3: toy size -> plain-XLA fallback path (per perf review).
    N3, D3 = 8, 32
    feats3 = jax.random.normal(k5, (N3, D3), dtype=jnp.float32)
    labs3 = jax.random.randint(k6, (N3,), 0, 3, dtype=jnp.int32)
    out3 = jax.block_until_ready(style_contrast_loss(feats3, labs3))
    assert bool(jnp.isfinite(out3))
    assert jnp.allclose(out3, _reference(feats3, labs3), rtol=1e-4, atol=1e-5)

    print("KERNEL_OK")
</pallas_src>

<mosaic_0001>
module attributes {stable_mosaic.version = 11 : i64} {
  func.func @_style_contrast_kernel(%arg0: i32, %arg1: i32, %arg2: memref<256x64xbf16, #tpu.memory_space<vmem>>, %arg3: memref<256x64xbf16, #tpu.memory_space<vmem>>, %arg4: memref<256x1xi32, #tpu.memory_space<vmem>>, %arg5: memref<1x256xi32, #tpu.memory_space<vmem>>, %arg6: memref<256x1xf32, #tpu.memory_space<vmem>>, %arg7: memref<256x1xf32, #tpu.memory_space<vmem>>, %arg8: memref<256x256xf32, #tpu.memory_space<vmem>>, %arg9: memref<256x256xf32, #tpu.memory_space<vmem>>) attributes {dimension_semantics = [#tpu.dimension_semantics<parallel>, #tpu.dimension_semantics<arbitrary>], iteration_bounds = array<i64: 2, 2>, scalar_prefetch = 0 : i64, scratch_operands = 2 : i64, tpu.core_type = #tpu.core_type<tc>, window_params = [{transform_indices = @transform_0, window_bounds = array<i64: 256, 64>}, {transform_indices = @transform_1, window_bounds = array<i64: 256, 64>}, {transform_indices = @transform_2, window_bounds = array<i64: 256, 1>}, {transform_indices = @transform_3, window_bounds = array<i64: 1, 256>}, {transform_indices = @transform_4, window_bounds = array<i64: 256, 1>}, {transform_indices = @transform_5, window_bounds = array<i64: 256, 1>}]} {
    %c0_i32 = arith.constant 0 : i32
    %0 = arith.cmpi eq, %arg1, %c0_i32 : i32
    %1 = arith.extui %0 : i1 to i32
    %c0_i32_0 = arith.constant 0 : i32
    %2 = arith.cmpi ne, %1, %c0_i32_0 : i32
    scf.if %2 {
      %cst_17 = arith.constant 0.000000e+00 : f32
      %34 = vector.broadcast %cst_17 : f32 to vector<256x256xf32>
      %c0_18 = arith.constant 0 : index
      %c0_19 = arith.constant 0 : index
      %35 = vector.load %arg8[%c0_18, %c0_19] : memref<256x256xf32, #tpu.memory_space<vmem>>, vector<256x256xf32>
      tpu.vector_store %arg8[%c0_18, %c0_19], %34 {strides = array<i32>} : memref<256x256xf32, #tpu.memory_space<vmem>>, vector<256x256xf32>,
      %cst_20 = arith.constant 0.000000e+00 : f32
      %36 = vector.broadcast %cst_20 : f32 to vector<256x256xf32>
      %c0_21 = arith.constant 0 : index
      %c0_22 = arith.constant 0 : index
      %37 = vector.load %arg9[%c0_21, %c0_22] : memref<256x256xf32, #tpu.memory_space<vmem>>, vector<256x256xf32>
      tpu.vector_store %arg9[%c0_21, %c0_22], %36 {strides = array<i32>} : memref<256x256xf32, #tpu.memory_space<vmem>>, vector<256x256xf32>,
    } else {
    }
    %c0 = arith.constant 0 : index
    %c0_1 = arith.constant 0 : index
    %3 = vector.load %arg2[%c0, %c0_1] : memref<256x64xbf16, #tpu.memory_space<vmem>>, vector<256x64xbf16>
    %c0_2 = arith.constant 0 : index
    %c0_3 = arith.constant 0 : index
    %4 = vector.load %arg3[%c0_2, %c0_3] : memref<256x64xbf16, #tpu.memory_space<vmem>>, vector<256x64xbf16>
    %cst = arith.constant dense<0.000000e+00> : vector<256x256xf32>
    %5 = tpu.matmul %3, %4, %cst {dimension_numbers = #tpu.dot_dimension_numbers<[1], [1], [0], [0], [0, 0, 1, 0], [], []>} : vector<256x64xbf16>, vector<256x64xbf16>, vector<256x256xf32> -> vector<256x256xf32>
    %cst_4 = arith.constant 1.000000e+00 : f32
    %6 = vector.broadcast %cst_4 : f32 to vector<256x256xf32>
    %7 = arith.subf %5, %6 : vector<256x256xf32>
    %cst_5 = arith.constant 14.2857141 : f32
    %8 = vector.broadcast %cst_5 : f32 to vector<256x256xf32>
    %9 = arith.mulf %7, %8 : vector<256x256xf32>
    %10 = math.exp %9 : vector<256x256xf32>
    %c0_6 = arith.constant 0 : index
    %c0_7 = arith.constant 0 : index
    %11 = vector.load %arg4[%c0_6, %c0_7] : memref<256x1xi32, #tpu.memory_space<vmem>>, vector<256x1xi32>
    %c0_8 = arith.constant 0 : index
    %c0_9 = arith.constant 0 : index
    %12 = vector.load %arg5[%c0_8, %c0_9] : memref<1x256xi32, #tpu.memory_space<vmem>>, vector<1x256xi32>
    %13 = vector.broadcast %11 : vector<256x1xi32> to vector<256x256xi32>
    %14 = vector.broadcast %12 : vector<1x256xi32> to vector<256x256xi32>
    %15 = arith.cmpi eq, %13, %14 : vector<256x256xi32>
    %c256_i32 = arith.constant 256 : i32
    %16 = arith.muli %arg0, %c256_i32 : i32
    %c256_i32_10 = arith.constant 256 : i32
    %17 = arith.muli %arg1, %c256_i32_10 : i32
    %c256_i32_11 = arith.constant 256 : i32
    %18 = arith.addi %17, %c256_i32_11 : i32
    %19 = arith.cmpi slt, %16, %18 : i32
    %c256_i32_12 = arith.constant 256 : i32
    %20 = arith.addi %16, %c256_i32_12 : i32
    %21 = arith.cmpi slt, %17, %20 : i32
    %22 = arith.andi %19, %21 : i1
    %c256_i32_13 = arith.constant 256 : i32
    %23 = arith.addi %17, %c256_i32_13 : i32
    %c384_i32 = arith.constant 384 : i32
    %24 = arith.cmpi sgt, %23, %c384_i32 : i32
    %25 = arith.ori %22, %24 : i1
    %26 = arith.extui %25 : i1 to i32
    %c0_i32_14 = arith.constant 0 : i32
    %27 = arith.cmpi ne, %26, %c0_i32_14 : i32
    scf.if %27 {
      %34 = tpu.iota {dimensions = array<i32: 0>} : vector<256x256xi32>
      %35 = vector.broadcast %16 : i32 to vector<256x256xi32>
      %36 = arith.addi %35, %34 : vector<256x256xi32>
      %37 = tpu.iota {dimensions = array<i32: 1>} : vector<256x256xi32>
      %38 = vector.broadcast %17 : i32 to vector<256x256xi32>
      %39 = arith.addi %38, %37 : vector<256x256xi32>
      %40 = arith.cmpi eq, %36, %39 : vector<256x256xi32>
      %c384_i32_17 = arith.constant 384 : i32
      %41 = vector.broadcast %c384_i32_17 : i32 to vector<256x256xi32>
      %42 = arith.cmpi sge, %39, %41 : vector<256x256xi32>
      %43 = arith.ori %40, %42 : vector<256x256xi1>
      %cst_18 = arith.constant 0.000000e+00 : f32
      %44 = vector.broadcast %cst_18 : f32 to vector<256x256xf32>
      %45 = arith.select %43, %44, %10 : vector<256x256xi1>, vector<256x256xf32>
      %c0_19 = arith.constant 0 : index
      %c0_20 = arith.constant 0 : index
      %46 = vector.load %arg8[%c0_19, %c0_20] : memref<256x256xf32, #tpu.memory_space<vmem>>, vector<256x256xf32>
      %47 = arith.addf %46, %45 : vector<256x256xf32>
      %c0_21 = arith.constant 0 : index
      %c0_22 = arith.constant 0 : index
      %48 = vector.load %arg8[%c0_21, %c0_22] : memref<256x256xf32, #tpu.memory_space<vmem>>, vector<256x256xf32>
      tpu.vector_store %arg8[%c0_21, %c0_22], %47 {strides = array<i32>} : memref<256x256xf32, #tpu.memory_space<vmem>>, vector<256x256xf32>,
      %c0_23 = arith.constant 0 : index
      %c0_24 = arith.constant 0 : index
      %49 = vector.load %arg9[%c0_23, %c0_24] : memref<256x256xf32, #tpu.memory_space<vmem>>, vector<256x256xf32>
      %cst_25 = arith.constant 0.000000e+00 : f32
      %50 = vector.broadcast %cst_25 : f32 to vector<256x256xf32>
      %51 = arith.select %15, %45, %50 : vector<256x256xi1>, vector<256x256xf32>
      %52 = arith.addf %49, %51 : vector<256x256xf32>
      %c0_26 = arith.constant 0 : index
      %c0_27 = arith.constant 0 : index
      %53 = vector.load %arg9[%c0_26, %c0_27] : memref<256x256xf32, #tpu.memory_space<vmem>>, vector<256x256xf32>
      tpu.vector_store %arg9[%c0_26, %c0_27], %52 {strides = array<i32>} : memref<256x256xf32, #tpu.memory_space<vmem>>, vector<256x256xf32>,
    } else {
    }
    %true = arith.constant true
    %28 = arith.xori %25, %true : i1
    %29 = arith.extui %28 : i1 to i32
    %c0_i32_15 = arith.constant 0 : i32
    %30 = arith.cmpi ne, %29, %c0_i32_15 : i32
    scf.if %30 {
      %c0_17 = arith.constant 0 : index
      %c0_18 = arith.constant 0 : index
      %34 = vector.load %arg8[%c0_17, %c0_18] : memref<256x256xf32, #tpu.memory_space<vmem>>, vector<256x256xf32>
      %35 = arith.addf %34, %10 : vector<256x256xf32>
      %c0_19 = arith.constant 0 : index
      %c0_20 = arith.constant 0 : index
      %36 = vector.load %arg8[%c0_19, %c0_20] : memref<256x256xf32, #tpu.memory_space<vmem>>, vector<256x256xf32>
      tpu.vector_store %arg8[%c0_19, %c0_20], %35 {strides = array<i32>} : memref<256x256xf32, #tpu.memory_space<vmem>>, vector<256x256xf32>,
      %c0_21 = arith.constant 0 : index
      %c0_22 = arith.constant 0 : index
      %37 = vector.load %arg9[%c0_21, %c0_22] : memref<256x256xf32, #tpu.memory_space<vmem>>, vector<256x256xf32>
      %cst_23 = arith.constant 0.000000e+00 : f32
      %38 = vector.broadcast %cst_23 : f32 to vector<256x256xf32>
      %39 = arith.select %15, %10, %38 : vector<256x256xi1>, vector<256x256xf32>
      %40 = arith.addf %37, %39 : vector<256x256xf32>
      %c0_24 = arith.constant 0 : index
      %c0_25 = arith.constant 0 : index
      %41 = vector.load %arg9[%c0_24, %c0_25] : memref<256x256xf32, #tpu.memory_space<vmem>>, vector<256x256xf32>
      tpu.vector_store %arg9[%c0_24, %c0_25], %40 {strides = array<i32>} : memref<256x256xf32, #tpu.memory_space<vmem>>, vector<256x256xf32>,
    } else {
    }
    %c1_i32 = arith.constant 1 : i32
    %31 = arith.cmpi eq, %arg1, %c1_i32 : i32
    %32 = arith.extui %31 : i1 to i32
    %c0_i32_16 = arith.constant 0 : i32
    %33 = arith.cmpi ne, %32, %c0_i32_16 : i32
    scf.if %33 {
      %c0_17 = arith.constant 0 : index
      %c0_18 = arith.constant 0 : index
      %34 = vector.load %arg8[%c0_17, %c0_18] : memref<256x256xf32, #tpu.memory_space<vmem>>, vector<256x256xf32>
      %cst_19 = arith.constant dense<0.000000e+00> : vector<256xf32>
      %35 = vector.multi_reduction <add>, %34, %cst_19 [1] : vector<256x256xf32> to vector<256xf32>
      %36 = vector.shape_cast %35 : vector<256xf32> to vector<256x1xf32>
      %c0_20 = arith.constant 0 : index
      %c0_21 = arith.constant 0 : index
      %37 = vector.load %arg9[%c0_20, %c0_21] : memref<256x256xf32, #tpu.memory_space<vmem>>, vector<256x256xf32>
      %cst_22 = arith.constant dense<0.000000e+00> : vector<256xf32>
      %38 = vector.multi_reduction <add>, %37, %cst_22 [1] : vector<256x256xf32> to vector<256xf32>
      %39 = vector.shape_cast %38 : vector<256xf32> to vector<256x1xf32>
      %cst_23 = arith.constant 9.99999993E-9 : f32
      %40 = vector.broadcast %cst_23 : f32 to vector<256x1xf32>
      %41 = arith.addf %36, %40 : vector<256x1xf32>
      %42 = arith.divf %39, %41 : vector<256x1xf32>
      %cst_24 = arith.constant 9.99999993E-9 : f32
      %43 = vector.broadcast %cst_24 : f32 to vector<256x1xf32>
      %44 = arith.addf %42, %43 : vector<256x1xf32>
      %45 = math.log %44 : vector<256x1xf32>
      %cst_25 = arith.constant 0.000000e+00 : f32
      %46 = vector.broadcast %cst_25 : f32 to vector<256x1xf32>
      %47 = arith.subf %46, %45 : vector<256x1xf32>
      %c0_26 = arith.constant 0 : index
      %c0_27 = arith.constant 0 : index
      %48 = vector.load %arg6[%c0_26, %c0_27] : memref<256x1xf32, #tpu.memory_space<vmem>>, vector<256x1xf32>
      tpu.vector_store %arg6[%c0_26, %c0_27], %47 {strides = array<i32>} : memref<256x1xf32, #tpu.memory_space<vmem>>, vector<256x1xf32>,
      %c0_28 = arith.constant 0 : index
      %c0_29 = arith.constant 0 : index
      %49 = vector.load %arg7[%c0_28, %c0_29] : memref<256x1xf32, #tpu.memory_space<vmem>>, vector<256x1xf32>
      tpu.vector_store %arg7[%c0_28, %c0_29], %39 {strides = array<i32>} : memref<256x1xf32, #tpu.memory_space<vmem>>, vector<256x1xf32>,
    } else {
    }
    return
  }
  func.func @transform_0(%arg0: i32, %arg1: i32) -> (i32, i32) {
    %c0_i32 = arith.constant 0 : i32
    %c0_i32_0 = arith.constant 0 : i32
    return %arg0, %c0_i32 : i32, i32
  }
  func.func @transform_1(%arg0: i32, %arg1: i32) -> (i32, i32) {
    %c0_i32 = arith.constant 0 : i32
    %c0_i32_0 = arith.constant 0 : i32
    return %arg1, %c0_i32 : i32, i32
  }
  func.func @transform_2(%arg0: i32, %arg1: i32) -> (i32, i32) {
    %c0_i32 = arith.constant 0 : i32
    %c0_i32_0 = arith.constant 0 : i32
    return %arg0, %c0_i32 : i32, i32
  }
  func.func @transform_3(%arg0: i32, %arg1: i32) -> (i32, i32) {
    %c0_i32 = arith.constant 0 : i32
    %c0_i32_0 = arith.constant 0 : i32
    return %c0_i32, %arg1 : i32, i32
  }
  func.func @transform_4(%arg0: i32, %arg1: i32) -> (i32, i32) {
    %c0_i32 = arith.constant 0 : i32
    %c0_i32_0 = arith.constant 0 : i32
    return %arg0, %c0_i32 : i32, i32
  }
  func.func @transform_5(%arg0: i32, %arg1: i32) -> (i32, i32) {
    %c0_i32 = arith.constant 0 : i32
    %c0_i32_0 = arith.constant 0 : i32
    return %arg0, %c0_i32 : i32, i32
  }
}

</mosaic_0001>

<bundles_post_ra>
// kernel: tpu_custom_call.1
= control target key start
LH: loop header
LB: loop body
LE: loop exit
PB: predicated region body
PF: predicated region fallthrough
CT: control target
= control target key end

     0   :  { %s3965_s18 = smov 0   ;;  %s3967_s19 = smov 0   ;;  %s6250_s0 = inlined_call_operand.vmem [shape: bf16[512,64], index: 0, kind: input, shape index: {}]   ;;  %s6251_s1 = inlined_call_operand.vmem [shape: bf16[512,64], index: 1, kind: input, shape index: {}]   ;;  %s6252_s2 = inlined_call_operand.vmem [shape: s32[512,1], index: 2, kind: input, shape index: {}]   ;;  %s6253_s3 = inlined_call_operand.vmem [shape: s32[1,512], index: 3, kind: input, shape index: {}]   ;;  %s6254_s4 = inlined_call_operand.vmem [shape: f32[512,1], index: 4, kind: output, shape index: {0}]   ;;  %s6255_s5 = inlined_call_operand.vmem [shape: f32[512,1], index: 5, kind: output, shape index: {1}]  }
   0x1   :  { %s3969_s20 = smov 0   ;;  %s3971_s21 = smov 0  }
   0x2   :  { %s3973_s22 = smov 0  }
   0x3 LB: > { %s25_s23 = sadd.s32 1, %s3923_s20  ;;  %s28_s24 = sadd.s32 1, %s3927_s21  ;;  %s3931_s22 = sphi %s3973_s22, %s16_s22   ;;  %s3927_s21 = sphi %s3971_s21, %s6927_s21   ;;  %s3923_s20 = sphi %s3969_s20, %s6926_s20   ;;  %s3919_s19 = sphi %s3967_s19, %s6925_s19   ;;  %s3915_s18 = sphi %s3965_s18, %s6924_s18  }
   0x4   : > { %p26_p0 = scmp.ge.s32.totalorder %s25_s23, 2  ;;  %p3351_p1 = scmp.ge.s32.totalorder %s3931_s22, 1 }
   0x5   : > { %p235_p2 = scmp.lt.s32.totalorder %s3931_s22, 5 }
   0x6   : > { %s6929_s23 = smov (%p26_p0, %s25_s23), 0  ;;  %s6931_s24 = smov (!%p26_p0, %s28_s24), %s3927_s21 }
   0x7   : > { %p236_p3 = pnand %p3351_p1, %p235_p2  ;;  %p30_p4 = scmp.ge.s32.totalorder %s6931_s24, 2 }
   0x9   : > { %s6933_s24 = smov (%p30_p4, %s6931_s24), 0  ;;  %239 = sbr.rel (%p236_p3) target bundleno = 984 (0x3d8), region = 36 }
  0x10   : > { %s3352_s25 = sshll.u32 %s3919_s19, 5  ;;  %s3354_s26 = sshll.u32 %s3915_s18, 5 }
  0x11   : > { %p283_p5 = scmp.lt.s32.totalorder %s3352_s25, 63  ;;  %p289_p6 = scmp.lt.s32.totalorder %s3354_s26, 63 }
  0x12   : > { %s3358_s27 = sshll.u32 %s3915_s18, 1  ;;  %p3363_p8 = scmp.ne.s32.totalorder %s3915_s18, 0 }
  0x13   : > { %s6935_s25 = smov (!%p283_p5, %s3352_s25), 63  ;;  %s6937_s26 = smov (!%p289_p6, %s3354_s26), 63 }
  0x14   : > { %s3353_s28 = sshll.u32 %s6935_s25, 2  ;;  %s3357_s29 = sshll.u32 %s6935_s25, 3  ;;  %v3933_v0 = vmov (!%p3363_p8), 0.0  }
  0x15   : > { %s4005_s7 = scalar_lea.vmem %s6250_s0, %s3353_s28  ;;  %s3355_s8 = sshll.u32 %s6937_s26, 2  ;;  %322 = vst [vmem:[#allocation2] sm:$0xff] (!%p3363_p8), %v3933_v0  ;;  %323 = vst [vmem:[#allocation2 + $0x8] sm:$0xff] (!%p3363_p8), %v3933_v0 }
  0x16   : > { %s4010_s11 = scalar_lea.vmem %s6251_s1, %s3355_s8  ;;  %s4015_s14 = scalar_lea.vmem %s6252_s2, %s3357_s29  ;;  %324 = vst [vmem:[#allocation2 + $0x10] sm:$0xff] (!%p3363_p8), %v3933_v0  ;;  %325 = vst [vmem:[#allocation2 + $0x18] sm:$0xff] (!%p3363_p8), %v3933_v0 }
  0x17   : > { %p301_p7 = scmp.lt.s32.totalorder %s3358_s27, 3  ;;  %s4020_s17 = scalar_lea.vmem %s6254_s4, %s3357_s29  ;;  %326 = vst [vmem:[#allocation2 + $0x20] sm:$0xff] (!%p3363_p8), %v3933_v0  ;;  %327 = vst [vmem:[#allocation2 + $0x28] sm:$0xff] (!%p3363_p8), %v3933_v0 }
  0x18   : > { %s4025_s26 = scalar_lea.vmem %s6255_s5, %s3357_s29  ;;  %321 = sbr.rel (%p3363_p8) target bundleno = 85 (0x55), region = 40  ;;  %328 = vst [vmem:[#allocation2 + $0x30] sm:$0xff] (!%p3363_p8), %v3933_v0  ;;  %329 = vst [vmem:[#allocation2 + $0x38] sm:$0xff] (!%p3363_p8), %v3933_v0 }
  0x19   : > { %s6939_s27 = smov (!%p301_p7, %s3358_s27), 3  ;;  %330 = vst [vmem:[#allocation2 + $0x40] sm:$0xff] (!%p3363_p8), %v3933_v0  ;;  %331 = vst [vmem:[#allocation2 + $0x48] sm:$0xff] (!%p3363_p8), %v3933_v0 }
  0x1a   : > { %s303_s8 = scalar_lea.vmem %s6253_s3, %s6939_s27  ;;  %332 = vst [vmem:[#allocation2 + $0x50] sm:$0xff] (!%p3363_p8), %v3933_v0  ;;  %333 = vst [vmem:[#allocation2 + $0x58] sm:$0xff] (!%p3363_p8), %v3933_v0 }
  0x1b   : > { %334 = vst [vmem:[#allocation2 + $0x60] sm:$0xff] (!%p3363_p8), %v3933_v0  ;;  %335 = vst [vmem:[#allocation2 + $0x68] sm:$0xff] (!%p3363_p8), %v3933_v0 }
  0x1c   : > { %336 = vst [vmem:[#allocation2 + $0x70] sm:$0xff] (!%p3363_p8), %v3933_v0  ;;  %337 = vst [vmem:[#allocation2 + $0x78] sm:$0xff] (!%p3363_p8), %v3933_v0 }
  0x1d   : > { %338 = vst [vmem:[#allocation2 + $0x80] sm:$0xff] (!%p3363_p8), %v3933_v0  ;;  %339 = vst [vmem:[#allocation2 + $0x88] sm:$0xff] (!%p3363_p8), %v3933_v0 }
  0x1e   : > { %340 = vst [vmem:[#allocation2 + $0x90] sm:$0xff] (!%p3363_p8), %v3933_v0  ;;  %341 = vst [vmem:[#allocation2 + $0x98] sm:$0xff] (!%p3363_p8), %v3933_v0 }
  0x1f   : > { %342 = vst [vmem:[#allocation2 + $0xa0] sm:$0xff] %v3933_v0  ;;  %343 = vst [vmem:[#allocation2 + $0xa8] sm:$0xff] %v3933_v0 }
  0x20   : > { %344 = vst [vmem:[#allocation2 + $0xb0] sm:$0xff] %v3933_v0  ;;  %345 = vst [vmem:[#allocation2 + $0xb8] sm:$0xff] %v3933_v0 }
  0x21   : > { %346 = vst [vmem:[#allocation2 + $0xc0] sm:$0xff] %v3933_v0  ;;  %347 = vst [vmem:[#allocation2 + $0xc8] sm:$0xff] %v3933_v0 }
  0x22   : > { %348 = vst [vmem:[#allocation2 + $0xd0] sm:$0xff] %v3933_v0  ;;  %349 = vst [vmem:[#allocation2 + $0xd8] sm:$0xff] %v3933_v0 }
  0x23   : > { %350 = vst [vmem:[#allocation2 + $0xe0] sm:$0xff] %v3933_v0  ;;  %351 = vst [vmem:[#allocation2 + $0xe8] sm:$0xff] %v3933_v0 }
  0x24   : > { %352 = vst [vmem:[#allocation2 + $0xf0] sm:$0xff] %v3933_v0  ;;  %353 = vst [vmem:[#allocation2 + $0xf8] sm:$0xff] %v3933_v0 }
  0x25   : > { %354 = vst [vmem:[#allocation2 + $0x100] sm:$0xff] %v3933_v0  ;;  %355 = vst [vmem:[#allocation2 + $0x108] sm:$0xff] %v3933_v0 }
  0x26   : > { %356 = vst [vmem:[#allocation2 + $0x110] sm:$0xff] %v3933_v0  ;;  %357 = vst [vmem:[#allocation2 + $0x118] sm:$0xff] %v3933_v0 }
  0x27   : > { %358 = vst [vmem:[#allocation2 + $0x120] sm:$0xff] %v3933_v0  ;;  %359 = vst [vmem:[#allocation2 + $0x128] sm:$0xff] %v3933_v0 }
  0x28   : > { %360 = vst [vmem:[#allocation2 + $0x130] sm:$0xff] %v3933_v0  ;;  %361 = vst [vmem:[#allocation2 + $0x138] sm:$0xff] %v3933_v0 }
  0x29   : > { %362 = vst [vmem:[#allocation2 + $0x140] sm:$0xff] %v3933_v0  ;;  %363 = vst [vmem:[#allocation2 + $0x148] sm:$0xff] %v3933_v0 }
  0x2a   : > { %364 = vst [vmem:[#allocation2 + $0x150] sm:$0xff] %v3933_v0  ;;  %365 = vst [vmem:[#allocation2 + $0x158] sm:$0xff] %v3933_v0 }
  0x2b   : > { %366 = vst [vmem:[#allocation2 + $0x160] sm:$0xff] %v3933_v0  ;;  %367 = vst [vmem:[#allocation2 + $0x168] sm:$0xff] %v3933_v0 }
  0x2c   : > { %368 = vst [vmem:[#allocation2 + $0x170] sm:$0xff] %v3933_v0  ;;  %369 = vst [vmem:[#allocation2 + $0x178] sm:$0xff] %v3933_v0 }
  0x2d   : > { %370 = vst [vmem:[#allocation2 + $0x180] sm:$0xff] %v3933_v0  ;;  %371 = vst [vmem:[#allocation2 + $0x188] sm:$0xff] %v3933_v0 }
  0x2e   : > { %372 = vst [vmem:[#allocation2 + $0x190] sm:$0xff] %v3933_v0  ;;  %373 = vst [vmem:[#allocation2 + $0x198] sm:$0xff] %v3933_v0 }
  0x2f   : > { %374 = vst [vmem:[#allocation2 + $0x1a0] sm:$0xff] %v3933_v0  ;;  %375 = vst [vmem:[#allocation2 + $0x1a8] sm:$0xff] %v3933_v0 }
  0x30   : > { %376 = vst [vmem:[#allocation2 + $0x1b0] sm:$0xff] %v3933_v0  ;;  %377 = vst [vmem:[#allocation2 + $0x1b8] sm:$0xff] %v3933_v0 }
  0x31   : > { %378 = vst [vmem:[#allocation2 + $0x1c0] sm:$0xff] %v3933_v0  ;;  %379 = vst [vmem:[#allocation2 + $0x1c8] sm:$0xff] %v3933_v0 }
  0x32   : > { %380 = vst [vmem:[#allocation2 + $0x1d0] sm:$0xff] %v3933_v0  ;;  %381 = vst [vmem:[#allocation2 + $0x1d8] sm:$0xff] %v3933_v0 }
  0x33   : > { %382 = vst [vmem:[#allocation2 + $0x1e0] sm:$0xff] %v3933_v0  ;;  %383 = vst [vmem:[#allocation2 + $0x1e8] sm:$0xff] %v3933_v0 }
  0x34   : > { %384 = vst [vmem:[#allocation2 + $0x1f0] sm:$0xff] %v3933_v0  ;;  %385 = vst [vmem:[#allocation2 + $0x1f8] sm:$0xff] %v3933_v0 }
  0x35   : > { %386 = vst [vmem:[#allocation3] sm:$0xff] %v3933_v0  ;;  %387 = vst [vmem:[#allocation3 + $0x8] sm:$0xff] %v3933_v0 }
  0x36   : > { %388 = vst [vmem:[#allocation3 + $0x10] sm:$0xff] %v3933_v0  ;;  %389 = vst [vmem:[#allocation3 + $0x18] sm:$0xff] %v3933_v0 }
  0x37   : > { %390 = vst [vmem:[#allocation3 + $0x20] sm:$0xff] %v3933_v0  ;;  %391 = vst [vmem:[#allocation3 + $0x28] sm:$0xff] %v3933_v0 }
  0x38   : > { %392 = vst [vmem:[#allocation3 + $0x30] sm:$0xff] %v3933_v0  ;;  %393 = vst [vmem:[#allocation3 + $0x38] sm:$0xff] %v3933_v0 }
  0x39   : > { %394 = vst [vmem:[#allocation3 + $0x40] sm:$0xff] %v3933_v0  ;;  %395 = vst [vmem:[#allocation3 + $0x48] sm:$0xff] %v3933_v0 }
  0x3a   : > { %396 = vst [vmem:[#allocation3 + $0x50] sm:$0xff] %v3933_v0  ;;  %397 = vst [vmem:[#allocation3 + $0x58] sm:$0xff] %v3933_v0 }
  0x3b   : > { %398 = vst [vmem:[#allocation3 + $0x60] sm:$0xff] %v3933_v0  ;;  %399 = vst [vmem:[#allocation3 + $0x68] sm:$0xff] %v3933_v0 }
  0x3c   : > { %400 = vst [vmem:[#allocation3 + $0x70] sm:$0xff] %v3933_v0  ;;  %401 = vst [vmem:[#allocation3 + $0x78] sm:$0xff] %v3933_v0 }
  0x3d   : > { %402 = vst [vmem:[#allocation3 + $0x80] sm:$0xff] %v3933_v0  ;;  %403 = vst [vmem:[#allocation3 + $0x88] sm:$0xff] %v3933_v0 }
  0x3e   : > { %404 = vst [vmem:[#allocation3 + $0x90] sm:$0xff] %v3933_v0  ;;  %405 = vst [vmem:[#allocation3 + $0x98] sm:$0xff] %v3933_v0 }
  0x3f   : > { %406 = vst [vmem:[#allocation3 + $0xa0] sm:$0xff] %v3933_v0  ;;  %407 = vst [vmem:[#allocation3 + $0xa8] sm:$0xff] %v3933_v0 }
  0x40   : > { %408 = vst [vmem:[#allocation3 + $0xb0] sm:$0xff] %v3933_v0  ;;  %409 = vst [vmem:[#allocation3 + $0xb8] sm:$0xff] %v3933_v0 }
  0x41   : > { %410 = vst [vmem:[#allocation3 + $0xc0] sm:$0xff] %v3933_v0  ;;  %411 = vst [vmem:[#allocation3 + $0xc8] sm:$0xff] %v3933_v0 }
  0x42   : > { %412 = vst [vmem:[#allocation3 + $0xd0] sm:$0xff] %v3933_v0  ;;  %413 = vst [vmem:[#allocation3 + $0xd8] sm:$0xff] %v3933_v0 }
  0x43   : > { %414 = vst [vmem:[#allocation3 + $0xe0] sm:$0xff] %v3933_v0  ;;  %415 = vst [vmem:[#allocation3 + $0xe8] sm:$0xff] %v3933_v0 }
  0x44   : > { %416 = vst [vmem:[#allocation3 + $0xf0] sm:$0xff] %v3933_v0  ;;  %417 = vst [vmem:[#allocation3 + $0xf8] sm:$0xff] %v3933_v0 }
  0x45   : > { %418 = vst [vmem:[#allocation3 + $0x100] sm:$0xff] %v3933_v0  ;;  %419 = vst [vmem:[#allocation3 + $0x108] sm:$0xff] %v3933_v0 }
  0x46   : > { %420 = vst [vmem:[#allocation3 + $0x110] sm:$0xff] %v3933_v0  ;;  %421 = vst [vmem:[#allocation3 + $0x118] sm:$0xff] %v3933_v0 }
  0x47   : > { %422 = vst [vmem:[#allocation3 + $0x120] sm:$0xff] %v3933_v0  ;;  %423 = vst [vmem:[#allocation3 + $0x128] sm:$0xff] %v3933_v0 }
  0x48   : > { %424 = vst [vmem:[#allocation3 + $0x130] sm:$0xff] %v3933_v0  ;;  %425 = vst [vmem:[#allocation3 + $0x138] sm:$0xff] %v3933_v0 }
  0x49   : > { %426 = vst [vmem:[#allocation3 + $0x140] sm:$0xff] %v3933_v0  ;;  %427 = vst [vmem:[#allocation3 + $0x148] sm:$0xff] %v3933_v0 }
  0x4a   : > { %428 = vst [vmem:[#allocation3 + $0x150] sm:$0xff] %v3933_v0  ;;  %429 = vst [vmem:[#allocation3 + $0x158] sm:$0xff] %v3933_v0 }
  0x4b   : > { %430 = vst [vmem:[#allocation3 + $0x160] sm:$0xff] %v3933_v0  ;;  %431 = vst [vmem:[#allocation3 + $0x168] sm:$0xff] %v3933_v0 }
  0x4c   : > { %432 = vst [vmem:[#allocation3 + $0x170] sm:$0xff] %v3933_v0  ;;  %433 = vst [vmem:[#allocation3 + $0x178] sm:$0xff] %v3933_v0 }
  0x4d   : > { %434 = vst [vmem:[#allocation3 + $0x180] sm:$0xff] %v3933_v0  ;;  %435 = vst [vmem:[#allocation3 + $0x188] sm:$0xff] %v3933_v0 }
  0x4e   : > { %436 = vst [vmem:[#allocation3 + $0x190] sm:$0xff] %v3933_v0  ;;  %437 = vst [vmem:[#allocation3 + $0x198] sm:$0xff] %v3933_v0 }
  0x4f   : > { %438 = vst [vmem:[#allocation3 + $0x1a0] sm:$0xff] %v3933_v0  ;;  %439 = vst [vmem:[#allocation3 + $0x1a8] sm:$0xff] %v3933_v0 }
  0x50   : > { %440 = vst [vmem:[#allocation3 + $0x1b0] sm:$0xff] %v3933_v0  ;;  %441 = vst [vmem:[#allocation3 + $0x1b8] sm:$0xff] %v3933_v0 }
  0x51   : > { %442 = vst [vmem:[#allocation3 + $0x1c0] sm:$0xff] %v3933_v0  ;;  %443 = vst [vmem:[#allocation3 + $0x1c8] sm:$0xff] %v3933_v0 }
  0x52   : > { %444 = vst [vmem:[#allocation3 + $0x1d0] sm:$0xff] %v3933_v0  ;;  %445 = vst [vmem:[#allocation3 + $0x1d8] sm:$0xff] %v3933_v0 }
  0x53   : > { %446 = vst [vmem:[#allocation3 + $0x1e0] sm:$0xff] %v3933_v0  ;;  %447 = vst [vmem:[#allocation3 + $0x1e8] sm:$0xff] %v3933_v0 }
  0x54   : > { %448 = vst [vmem:[#allocation3 + $0x1f0] sm:$0xff] %v3933_v0  ;;  %449 = vst [vmem:[#allocation3 + $0x1f8] sm:$0xff] %v3933_v0 }
  0x55 PF: > { %v3605_v1 = vld [vmem:[%s4010_s11 + $0x40] sm:$0xff]   ;;  %vm674_vm0 = vcmask 523264   ;;  %v3607_v3 = vld [vmem:[%s4010_s11 + $0x48] sm:$0xff]   ;;  %v3934_v5 = vmov 0   ;;  %v3609_v8 = vld [vmem:[%s4010_s11 + $0x50] sm:$0xff]   ;;  %s4497_s27 = sshll.u32 %s3919_s19, 8 }
  0x56   : > { %v3606_v2 = vld [vmem:[%s4010_s11] sm:$0xff]   ;;  %3545 = vmatprep.subr.msk.bf16.mxu0 %vm674_vm0, %v3605_v1  ;;  %3546 = vmatprep.subr.msk.bf16.mxu1 %vm674_vm0, %v3605_v1  ;;  %v3608_v6 = vld [vmem:[%s4010_s11 + $0x8] sm:$0xff]   ;;  %v3610_v9 = vld [vmem:[%s4010_s11 + $0x10] sm:$0xff]   ;;  %s4500_s9 = sshll.u32 %s3915_s18, 8 }
  0x57   : > { %v724_v4 = vsel %vm674_vm0, %v3606_v2, 0  ;;  %3604 = vset.pattern.permute.xlu1 %v3934_v5  ;;  %3603 = vset.pattern.permute.xlu0 %v3934_v5  ;;  %v727_v7 = vsel %vm674_vm0, %v3608_v6, 0  ;;  %v3611_v10 = vld [vmem:[%s4010_s11 + $0x58] sm:$0xff]   ;;  %v4178_v11 = vld [vmem:[%s4005_s7] sm:$0xff]   ;;  %v730_v12 = vsel %vm674_vm0, %v3610_v9, 0  ;;  %v1222_v15 = vld [vmem:[%s4015_s14 + $0x10] sm:$0xff] }
  0x58   : > { %3482 = vmatpush3.bf16.xpose.msra.mxu0 %v724_v4  ;;  %3537 = vmatpush3.bf16.xpose.msra.mxu1 %v724_v4  ;;  %v4182_v13 = vld [vmem:[%s4005_s7 + $0x40] sm:$0xff]   ;;  %v3612_v14 = vld [vmem:[%s4010_s11 + $0x18] sm:$0xff]   ;;  %v1221_v20 = vld [vmem:[%s4015_s14 + $0x8] sm:$0xff]  ;;  %s1423_s10 = sadd.s32 256, %s4500_s9 }
  0x59   : > { %3547 = vmatprep.subr.msk.bf16.mxu0 %vm674_vm0, %v3607_v3  ;;  %3548 = vmatprep.subr.msk.bf16.mxu1 %vm674_vm0, %v3607_v3  ;;  %v1220_v16 = vld [vmem:[%s4015_s14] sm:$0xff]  ;;  %v733_v17 = vsel %vm674_vm0, %v3612_v14, 0  ;;  %v1223_v19 = vld [vmem:[%s4015_s14 + $0x18] sm:$0xff]  ;;  %v1225_v22 = vld [vmem:[%s4015_s14 + $0x28] sm:$0xff]  ;;  %p1424_p9 = scmp.lt.s32.totalorder %s4497_s27, %s1423_s10  ;;  %p4510_p13 = scmp.gt.s32.totalorder %s1423_s10, 384 }
  0x5a   : > { %3497 = vmatprep.mubr.msk.bf16.mxu0 %vm674_vm0, %v4178_v11  ;;  %3513 = vmatprep.mubr.msk.bf16.mxu1 %vm674_vm0, %v4182_v13  ;;  %v3613_v18 = vld [vmem:[%s4010_s11 + $0x60] sm:$0xff]   ;;  %v3615_v25 = vld [vmem:[%s4010_s11 + $0x68] sm:$0xff]   ;;  %v1227_v26 = vld [vmem:[%s4015_s14 + $0x38] sm:$0xff] }
  0x5b   : > { %1260 = vperm.xlu1 %3604, %v1222_v15   ;;  %1254 = vperm.xlu0 %3603, %v1220_v16   ;;  %v3614_v21 = vld [vmem:[%s4010_s11 + $0x20] sm:$0xff]   ;;  %v1226_v27 = vld [vmem:[%s4015_s14 + $0x30] sm:$0xff]  ;;  %v3616_v28 = vld [vmem:[%s4010_s11 + $0x28] sm:$0xff]  }
  0x5c   : > { %v1224_v23 = vld [vmem:[%s4015_s14 + $0x20] sm:$0xff]  ;;  %v736_v24 = vsel %vm674_vm0, %v3614_v21, 0  ;;  %v1229_v29 = vld [vmem:[%s4015_s14 + $0x48] sm:$0xff]  ;;  %v739_v31 = vsel %vm674_vm0, %v3616_v28, 0  ;;  %v3617_v32 = vld [vmem:[%s4010_s11 + $0x70] sm:$0xff]  }
  0x5d   : > { %v1228_v30 = vld [vmem:[%s4015_s14 + $0x40] sm:$0xff]  ;;  %v1231_v33 = vld [vmem:[%s4015_s14 + $0x58] sm:$0xff]  ;;  %v1230_v34 = vld [vmem:[%s4015_s14 + $0x50] sm:$0xff] }
  0x5e   : > { %v3618_v35 = vld [vmem:[%s4010_s11 + $0x30] sm:$0xff]   ;;  %v1233_v36 = vld [vmem:[%s4015_s14 + $0x68] sm:$0xff]  ;;  %v1232_v37 = vld [vmem:[%s4015_s14 + $0x60] sm:$0xff] }
  0x5f   : > { %1263 = vperm.xlu1 %3604, %v1223_v19   ;;  %1257 = vperm.xlu0 %3603, %v1221_v20   ;;  %v742_v38 = vsel %vm674_vm0, %v3618_v35, 0  ;;  %v3619_v39 = vld [vmem:[%s4010_s11 + $0x78] sm:$0xff]   ;;  %v1234_v41 = vld [vmem:[%s4015_s14 + $0x70] sm:$0xff]  ;;  %v1237_v43 = vld [vmem:[%s4015_s14 + $0x88] sm:$0xff] }
  0x60   : > { %3484 = vmatpush3.bf16.xpose.msra.mxu0 %v727_v7  ;;  %3538 = vmatpush3.bf16.xpose.msra.mxu1 %v727_v7  ;;  %v1235_v40 = vld [vmem:[%s4015_s14 + $0x78] sm:$0xff]  ;;  %v1236_v44 = vld [vmem:[%s4015_s14 + $0x80] sm:$0xff]  ;;  %v1238_v47 = vld [vmem:[%s4015_s14 + $0x90] sm:$0xff] }
  0x61   : > { %3549 = vmatprep.subr.msk.bf16.mxu0 %vm674_vm0, %v3609_v8  ;;  %3550 = vmatprep.subr.msk.bf16.mxu1 %vm674_vm0, %v3609_v8  ;;  %v3620_v42 = vld [vmem:[%s4010_s11 + $0x38] sm:$0xff]   ;;  %v1241_v48 = vld [vmem:[%s4015_s14 + $0xa8] sm:$0xff]  ;;  %v1240_v49 = vld [vmem:[%s4015_s14 + $0xa0] sm:$0xff]  ;;  %s1425_s11 = sadd.s32 256, %s4497_s27 }
  0x62   : > { %v745_v45 = vsel %vm674_vm0, %v3620_v42, 0  ;;  %v1239_v46 = vld [vmem:[%s4015_s14 + $0x98] sm:$0xff]  ;;  %v3623_v50 = vld [vmem:[%s4005_s7 + $0x8] sm:$0xff]   ;;  %v1242_v53 = vld [vmem:[%s4015_s14 + $0xb0] sm:$0xff]  ;;  %p1426_p10 = scmp.lt.s32.totalorder %s4500_s9, %s1425_s11 }
  0x63   : > { %1269 = vperm.xlu1 %3604, %v1225_v22   ;;  %1266 = vperm.xlu0 %3603, %v1224_v23   ;;  %v3624_v51 = vld [vmem:[%s4005_s7 + $0x48] sm:$0xff]   ;;  %v1243_v52 = vld [vmem:[%s4015_s14 + $0xb8] sm:$0xff]  ;;  %v1244_v55 = vld [vmem:[%s4015_s14 + $0xc0] sm:$0xff] }
  0x64   : > { %v1245_v54 = vld [vmem:[%s4015_s14 + $0xc8] sm:$0xff]  ;;  %v3625_v56 = vld [vmem:[%s4005_s7 + $0x10] sm:$0xff]   ;;  %v1247_v58 = vld [vmem:[%s4015_s14 + $0xd8] sm:$0xff]  ;;  %p1427_p11 = pnand %p1426_p10, %p1424_p9 }
  0x65   : > { %v3626_v57 = vld [vmem:[%s4005_s7 + $0x50] sm:$0xff]   ;;  %v1249_v60 = vld [vmem:[%s4015_s14 + $0xe8] sm:$0xff]  ;;  %v1248_v61 = vld [vmem:[%s4015_s14 + $0xe0] sm:$0xff] }
  0x66   : > { %v1246_v59 = vld [vmem:[%s4015_s14 + $0xd0] sm:$0xff]  ;;  %v3627_v62 = vld [vmem:[%s4005_s7 + $0x18] sm:$0xff]   ;;  %v3629_v2 = vld [vmem:[%s4005_s7 + $0x20] sm:$0xff]   ;;  %p4506_p12 = pneg %p1427_p11 }
  0x67   : > { %1275 = vperm.xlu1 %3604, %v1227_v26   ;;  %1272 = vperm.xlu0 %3603, %v1226_v27   ;;  %v3628_v63 = vld [vmem:[%s4005_s7 + $0x58] sm:$0xff]   ;;  %v1250_v1 = vld [vmem:[%s4015_s14 + $0xf0] sm:$0xff]  ;;  %v3630_v3 = vld [vmem:[%s4005_s7 + $0x60] sm:$0xff]  }
  0x68   : > { %3486 = vmatpush3.bf16.xpose.msra.mxu0 %v730_v12  ;;  %3539 = vmatpush3.bf16.xpose.msra.mxu1 %v730_v12  ;;  %v1251_v0 = vld [vmem:[%s4015_s14 + $0xf8] sm:$0xff]  ;;  %v3631_v4 = vld [vmem:[%s4005_s7 + $0x28] sm:$0xff]   ;;  %v3633_v6 = vld [vmem:[%s4005_s7 + $0x30] sm:$0xff]   ;;  %p1430_p0 = por %p4510_p13, %p4506_p12 }
  0x69   : > { %3551 = vmatprep.subr.msk.bf16.mxu0 %vm674_vm0, %v3611_v10  ;;  %3552 = vmatprep.subr.msk.bf16.mxu1 %vm674_vm0, %v3611_v10  ;;  %v3632_v5 = vld [vmem:[%s4005_s7 + $0x68] sm:$0xff]   ;;  %v3634_v7 = vld [vmem:[%s4005_s7 + $0x70] sm:$0xff]   ;;  %v3635_v8 = vld [vmem:[%s4005_s7 + $0x38] sm:$0xff]   ;;  %v6256_v10 = vlaneseq }
  0x6a   : > { %v3636_v9 = vld [vmem:[%s4005_s7 + $0x78] sm:$0xff]   ;;  %v1252_v14 = vld [vmem:[%s303_s8] sm:$0x3] }
  0x6b   : > { %1281 = vperm.xlu1 %3604, %v1229_v29   ;;  %1278 = vperm.xlu0 %3603, %v1228_v30  }
  0x6f   : > { %1287 = vperm.xlu1 %3604, %v1231_v33   ;;  %1284 = vperm.xlu0 %3603, %v1230_v34  }
  0x70   : > { %3488 = vmatpush3.bf16.xpose.msra.mxu0 %v733_v17  ;;  %3540 = vmatpush3.bf16.xpose.msra.mxu1 %v733_v17 }
  0x71   : > { %3553 = vmatprep.subr.msk.bf16.mxu0 %vm674_vm0, %v3613_v18  ;;  %3554 = vmatprep.subr.msk.bf16.mxu1 %vm674_vm0, %v3613_v18 }
  0x73   : > { %1293 = vperm.xlu1 %3604, %v1233_v36   ;;  %1290 = vperm.xlu0 %3603, %v1232_v37  }
  0x77   : > { %1299 = vperm.xlu1 %3604, %v1235_v40   ;;  %1296 = vperm.xlu0 %3603, %v1234_v41  }
  0x78   : > { %3490 = vmatpush3.bf16.xpose.msra.mxu0 %v736_v24  ;;  %3541 = vmatpush3.bf16.xpose.msra.mxu1 %v736_v24 }
  0x79   : > { %3555 = vmatprep.subr.msk.bf16.mxu0 %vm674_vm0, %v3615_v25  ;;  %3556 = vmatprep.subr.msk.bf16.mxu1 %vm674_vm0, %v3615_v25 }
  0x7b   : > { %1305 = vperm.xlu1 %3604, %v1237_v43   ;;  %1302 = vperm.xlu0 %3603, %v1236_v44  }
  0x7f   : > { %1311 = vperm.xlu1 %3604, %v1239_v46   ;;  %1308 = vperm.xlu0 %3603, %v1238_v47  }
  0x80   : > { %3492 = vmatpush3.bf16.xpose.msra.mxu0 %v739_v31  ;;  %3542 = vmatpush3.bf16.xpose.msra.mxu1 %v739_v31 }
  0x81   : > { %3557 = vmatprep.subr.msk.bf16.mxu0 %vm674_vm0, %v3617_v32  ;;  %3558 = vmatprep.subr.msk.bf16.mxu1 %vm674_vm0, %v3617_v32 }
  0x83   : > { %1317 = vperm.xlu1 %3604, %v1241_v48   ;;  %1314 = vperm.xlu0 %3603, %v1240_v49  }
  0x87   : > { %1323 = vperm.xlu1 %3604, %v1243_v52   ;;  %1320 = vperm.xlu0 %3603, %v1242_v53  }
  0x88   : > { %3494 = vmatpush3.bf16.xpose.msra.mxu0 %v742_v38  ;;  %3543 = vmatpush3.bf16.xpose.msra.mxu1 %v742_v38 }
  0x89   : > { %3559 = vmatprep.subr.msk.bf16.mxu0 %vm674_vm0, %v3619_v39  ;;  %3560 = vmatprep.subr.msk.bf16.mxu1 %vm674_vm0, %v3619_v39 }
  0x8b   : > { %1329 = vperm.xlu1 %3604, %v1245_v54   ;;  %1326 = vperm.xlu0 %3603, %v1244_v55  }
  0x8f   : > { %1335 = vperm.xlu1 %3604, %v1247_v58   ;;  %1332 = vperm.xlu0 %3603, %v1246_v59  }
  0x90   : > { %3496 = vmatpush3.bf16.xpose.msra.mxu0 %v745_v45  ;;  %3544 = vmatpush3.bf16.xpose.msra.mxu1 %v745_v45 }
  0x93   : > { %1341 = vperm.xlu1 %3604, %v1249_v60   ;;  %1338 = vperm.xlu0 %3603, %v1248_v61  }
  0x97   : > { %3498 = vmatmul.mubr.msk.bf16.vlgmr.msra.gmra.mrb[0].mxu0 %vm674_vm0, %v4178_v11  ;;  %3514 = vmatmul.mubr.msk.bf16.vlgmr.msra.gmra.mrb[0].mxu1 %vm674_vm0, %v4182_v13  ;;  %v4291_v11 = vshrl.u32 %v6256_v10, 7 }
  0x98   : > { %3499 = vmatprep.mubr.msk.bf16.mxu0 %vm674_vm0, %v3623_v50  ;;  %3515 = vmatprep.mubr.msk.bf16.mxu1 %vm674_vm0, %v3624_v51 }
  0x99   : > { %1347 = vperm.xlu1 %3604, %v1251_v0   ;;  %1344 = vperm.xlu0 %3603, %v1250_v1   ;;  %v1351_v12 = vsub.s32 0, %v4291_v11  ;;  %v1355_v13 = vsub.s32 1, %v4291_v11 }
  0x9b   : > { %v4300_v15 = vrot.slane %v1252_v14, %v1351_v12  ;;  %v4302_v16 = vrot.slane %v1252_v14, %v1355_v13 }
  0x9d   : > { %6489 = vst [vmem:[#allocation4_spill] sm:$0xff] %v4300_v15  ;;  %6490 = vst [vmem:[#allocation5_spill] sm:$0xff] %v4302_v16 }
  0x9f   : > { %3500 = vmatmul.mubr.msk.bf16.gmra.mrb[4].mxu0 %vm674_vm0, %v3623_v50  ;;  %3516 = vmatmul.mubr.msk.bf16.gmra.mrb[4].mxu1 %vm674_vm0, %v3624_v51 }
  0xa0   : > { %3501 = vmatprep.mubr.msk.bf16.mxu0 %vm674_vm0, %v3625_v56  ;;  %3517 = vmatprep.mubr.msk.bf16.mxu1 %vm674_vm0, %v3626_v57 }
  0xa7   : > { %3502 = vmatmul.mubr.msk.bf16.gmra.mrb[8].mxu0 %vm674_vm0, %v3625_v56  ;;  %3518 = vmatmul.mubr.msk.bf16.gmra.mrb[8].mxu1 %vm674_vm0, %v3626_v57 }
  0xa8   : > { %3503 = vmatprep.mubr.msk.bf16.mxu0 %vm674_vm0, %v3627_v62  ;;  %3519 = vmatprep.mubr.msk.bf16.mxu1 %vm674_vm0, %v3628_v63 }
  0xaf   : > { %3504 = vmatmul.mubr.msk.bf16.gmra.mrb[12].mxu0 %vm674_vm0, %v3627_v62  ;;  %3520 = vmatmul.mubr.msk.bf16.gmra.mrb[12].mxu1 %vm674_vm0, %v3628_v63 }
  0xb0   : > { %3505 = vmatprep.mubr.msk.bf16.mxu0 %vm674_vm0, %v3629_v2  ;;  %3521 = vmatprep.mubr.msk.bf16.mxu1 %vm674_vm0, %v3630_v3 }
  0xb7   : > { %3506 = vmatmul.mubr.msk.bf16.gmra.mrb[16].mxu0 %vm674_vm0, %v3629_v2  ;;  %3522 = vmatmul.mubr.msk.bf16.gmra.mrb[16].mxu1 %vm674_vm0, %v3630_v3 }
  0xb8   : > { %3507 = vmatprep.mubr.msk.bf16.mxu0 %vm674_vm0, %v3631_v4  ;;  %3523 = vmatprep.mubr.msk.bf16.mxu1 %vm674_vm0, %v3632_v5 }
  0xbf   : > { %3508 = vmatmul.mubr.msk.bf16.gmra.mrb[20].mxu0 %vm674_vm0, %v3631_v4  ;;  %3524 = vmatmul.mubr.msk.bf16.gmra.mrb[20].mxu1 %vm674_vm0, %v3632_v5 }
  0xc0   : > { %3509 = vmatprep.mubr.msk.bf16.mxu0 %vm674_vm0, %v3633_v6  ;;  %3525 = vmatprep.mubr.msk.bf16.mxu1 %vm674_vm0, %v3634_v7 }
  0xc7   : > { %3510 = vmatmul.mubr.msk.bf16.gmra.mrb[24].mxu0 %vm674_vm0, %v3633_v6  ;;  %3526 = vmatmul.mubr.msk.bf16.gmra.mrb[24].mxu1 %vm674_vm0, %v3634_v7 }
  0xc8   : > { %3511 = vmatprep.mubr.msk.bf16.mxu0 %vm674_vm0, %v3635_v8  ;;  %3527 = vmatprep.mubr.msk.bf16.mxu1 %vm674_vm0, %v3636_v9 }
  0xcf   : > { %3512 = vmatmul.mubr.msk.bf16.gmra.mrb[28].mxu0 %vm674_vm0, %v3635_v8  ;;  %3528 = vmatmul.mubr.msk.bf16.gmra.mrb[28].mxu1 %vm674_vm0, %v3636_v9 }
  0xda   : > { %v4304_v17 = vpop.permute.xlu1 %1260  ;;  %v4306_v18 = vpop.permute.xlu0 %1254 }
  0xdb   : > { %6491 = vst [vmem:[#allocation6_spill] sm:$0xff] %v4304_v17  ;;  %6492 = vst [vmem:[#allocation7_spill] sm:$0xff] %v4306_v18  ;;  %vm1357_vm3 = vcmp.eq.s32.totalorder %v4306_v18, %v4300_v15  ;;  %vm1358_vm4 = vcmp.eq.s32.totalorder %v4306_v18, %v4302_v16 }
  0xde   : > { %v4316_v19 = vpop.permute.xlu1 %1263  ;;  %v4318_v20 = vpop.permute.xlu0 %1257 }
  0xdf   : > { %6493 = vst [vmem:[#allocation8_spill] sm:$0xff] %v4316_v19  ;;  %6494 = vst [vmem:[#allocation9_spill] sm:$0xff] %v4318_v20  ;;  %vm1359_vm7 = vcmp.eq.s32.totalorder %v4318_v20, %v4300_v15  ;;  %vm1360_vm8 = vcmp.eq.s32.totalorder %v4318_v20, %v4302_v16 }
  0xe2   : > { %v4328_v21 = vpop.permute.xlu1 %1269  ;;  %v4330_v22 = vpop.permute.xlu0 %1266 }
  0xe3   : > { %6495 = vst [vmem:[#allocation10_spill] sm:$0xff] %v4328_v21  ;;  %6496 = vst [vmem:[#allocation11_spill] sm:$0xff] %v4330_v22 }
  0xe6   : > { %v4340_v23 = vpop.permute.xlu1 %1275  ;;  %v4342_v24 = vpop.permute.xlu0 %1272 }
  0xe7   : > { %6497 = vst [vmem:[#allocation12_spill] sm:$0xff] %v4340_v23  ;;  %6498 = vst [vmem:[#allocation13_spill] sm:$0xff] %v4342_v24 }
  0xea   : > { %v4352_v25 = vpop.permute.xlu1 %1281  ;;  %v4354_v26 = vpop.permute.xlu0 %1278 }
  0xeb   : > { %6499 = vst [vmem:[#allocation14_spill] sm:$0xff] %v4352_v25  ;;  %6500 = vst [vmem:[#allocation15_spill] sm:$0xff] %v4354_v26 }
  0xee   : > { %v4364_v27 = vpop.permute.xlu1 %1287  ;;  %v4366_v28 = vpop.permute.xlu0 %1284 }
  0xef   : > { %6501 = vst [vmem:[#allocation16_spill] sm:$0xff] %v4364_v27  ;;  %6502 = vst [vmem:[#allocation17_spill] sm:$0xff] %v4366_v28 }
  0xf2   : > { %v4376_v29 = vpop.permute.xlu1 %1293  ;;  %v4378_v30 = vpop.permute.xlu0 %1290 }
  0xf3   : > { %6503 = vst [vmem:[#allocation18_spill] sm:$0xff] %v4376_v29  ;;  %6504 = vst [vmem:[#allocation19_spill] sm:$0xff] %v4378_v30 }
  0xf6   : > { %v4388_v31 = vpop.permute.xlu1 %1299  ;;  %v4390_v32 = vpop.permute.xlu0 %1296 }
  0xf7   : > { %6505 = vst [vmem:[#allocation20_spill] sm:$0xff] %v4388_v31  ;;  %6506 = vst [vmem:[#allocation21_spill] sm:$0xff] %v4390_v32 }
  0xfa   : > { %v4400_v33 = vpop.permute.xlu1 %1305  ;;  %v4402_v34 = vpop.permute.xlu0 %1302 }
  0xfb   : > { %6507 = vst [vmem:[#allocation22_spill] sm:$0xff] %v4400_v33  ;;  %6508 = vst [vmem:[#allocation23_spill] sm:$0xff] %v4402_v34 }
  0xfe   : > { %v4412_v35 = vpop.permute.xlu1 %1311  ;;  %v4414_v36 = vpop.permute.xlu0 %1308 }
  0xff   : > { %6509 = vst [vmem:[#allocation24_spill] sm:$0xff] %v4412_v35  ;;  %6510 = vst [vmem:[#allocation25_spill] sm:$0xff] %v4414_v36 }
 0x102   : > { %v4424_v37 = vpop.permute.xlu1 %1317  ;;  %v4426_v38 = vpop.permute.xlu0 %1314 }
 0x103   : > { %6511 = vst [vmem:[#allocation26_spill] sm:$0xff] %v4424_v37  ;;  %6512 = vst [vmem:[#allocation27_spill] sm:$0xff] %v4426_v38 }
 0x106   : > { %v4436_v39 = vpop.permute.xlu1 %1323  ;;  %v4438_v40 = vpop.permute.xlu0 %1320 }
 0x107   : > { %6513 = vst [vmem:[#allocation28_spill] sm:$0xff] %v4436_v39  ;;  %6514 = vst [vmem:[#allocation29_spill] sm:$0xff] %v4438_v40 }
 0x10a   : > { %v4448_v41 = vpop.permute.xlu1 %1329  ;;  %v4450_v42 = vpop.permute.xlu0 %1326 }
 0x10b   : > { %6515 = vst [vmem:[#allocation30_spill] sm:$0xff] %v4448_v41  ;;  %6516 = vst [vmem:[#allocation31_spill] sm:$0xff] %v4450_v42 }
 0x10e   : > { %v4460_v43 = vpop.permute.xlu1 %1335  ;;  %v4462_v44 = vpop.permute.xlu0 %1332 }
 0x10f   : > { %6517 = vst [vmem:[#allocation32_spill] sm:$0xff] %v4460_v43  ;;  %6518 = vst [vmem:[#allocation33_spill] sm:$0xff] %v4462_v44 }
 0x112   : > { %v4472_v45 = vpop.permute.xlu1 %1341  ;;  %v4474_v46 = vpop.permute.xlu0 %1338 }
 0x113   : > { %6519 = vst [vmem:[#allocation34_spill] sm:$0xff] %v4472_v45  ;;  %6520 = vst [vmem:[#allocation35_spill] sm:$0xff] %v4474_v46 }
 0x118   : > { %v4484_v47 = vpop.permute.xlu1 %1347  ;;  %v4486_v48 = vpop.permute.xlu0 %1344 }
 0x119   : > { %6521 = vst [vmem:[#allocation36_spill] sm:$0xff] %v4484_v47  ;;  %6522 = vst [vmem:[#allocation37_spill] sm:$0xff] %v4486_v48 }
 0x16a   : > { %v805_v49 = vpop.f32.mrb[0].mxu0  ;;  %v885_v50 = vpop.f32.mrb[0].mxu1 }
 0x16b   : > { %v3412_v51 = vadd.f32 -1.0, %v805_v49  ;;  %v3444_v52 = vadd.f32 -1.0, %v885_v50  ;;  %v807_v53 = vpop.f32.mrb[1].mxu0  ;;  %v887_v54 = vpop.f32.mrb[1].mxu1 }
 0x16c   : > { %v3413_v55 = vadd.f32 -1.0, %v807_v53  ;;  %v3445_v56 = vadd.f32 -1.0, %v887_v54  ;;  %v809_v57 = vpop.f32.mrb[2].mxu0  ;;  %v889_v58 = vpop.f32.mrb[2].mxu1 }
 0x16d   : > { %v1028_v59 = vmul.f32 14.285714, %v3412_v51  ;;  %v1060_v60 = vmul.f32 14.285714, %v3444_v52  ;;  %v3414_v61 = vadd.f32 -1.0, %v809_v57  ;;  %v3446_v62 = vadd.f32 -1.0, %v889_v58 }
 0x16e   : > { %v1029_v63 = vmul.f32 14.285714, %v3413_v55  ;;  %v1061_v0 = vmul.f32 14.285714, %v3445_v56  ;;  %v811_v1 = vpop.f32.mrb[3].mxu0  ;;  %v891_v2 = vpop.f32.mrb[3].mxu1 }
 0x16f   : > { %v1092_v3 = vmul.f32 1.442695, %v1028_v59  ;;  %v1156_v4 = vmul.f32 1.442695, %v1060_v60  ;;  %v1030_v5 = vmul.f32 14.285714, %v3414_v61 }
 0x170   : > { %v1094_v6 = vmul.f32 1.442695, %v1029_v63  ;;  %v1158_v7 = vmul.f32 1.442695, %v1061_v0  ;;  %v1062_v8 = vmul.f32 14.285714, %v3446_v62 }
 0x171   : > { %3637 = vpow2.f32 %v1092_v3  ;;  %v1096_v9 = vmul.f32 1.442695, %v1030_v5  ;;  %v3415_v12 = vadd.f32 -1.0, %v811_v1  ;;  %v3447_v13 = vadd.f32 -1.0, %v891_v2 }
 0x172   : > { %3639 = vpow2.f32 %v1156_v4  ;;  %v1160_v14 = vmul.f32 1.442695, %v1062_v8  ;;  %v815_v49 = vpop.f32.mrb[4].mxu0  ;;  %v895_v50 = vpop.f32.mrb[4].mxu1 }
 0x173   : > { %3641 = vpow2.f32 %v1094_v6  ;;  %v1031_v51 = vmul.f32 14.285714, %v3415_v12  ;;  %v1063_v52 = vmul.f32 14.285714, %v3447_v13  ;;  %v3416_v53 = vadd.f32 -1.0, %v815_v49  ;;  %v817_v54 = vpop.f32.mrb[5].mxu0 }
 0x174   : > { %3643 = vpow2.f32 %v1158_v7  ;;  %v3448_v55 = vadd.f32 -1.0, %v895_v50  ;;  %v3417_v56 = vadd.f32 -1.0, %v817_v54  ;;  %v897_v57 = vpop.f32.mrb[5].mxu1  ;;  %v819_v58 = vpop.f32.mrb[6].mxu0 }
 0x175   : > { %3645 = vpow2.f32 %v1096_v9  ;;  %v1098_v59 = vmul.f32 1.442695, %v1031_v51  ;;  %v1162_v60 = vmul.f32 1.442695, %v1063_v52  ;;  %v1032_v61 = vmul.f32 14.285714, %v3416_v53 }
 0x176   : > { %3647 = vpow2.f32 %v1160_v14  ;;  %v1064_v62 = vmul.f32 14.285714, %v3448_v55  ;;  %v1033_v63 = vmul.f32 14.285714, %v3417_v56  ;;  %v3449_v0 = vadd.f32 -1.0, %v897_v57  ;;  %v899_v1 = vpop.f32.mrb[6].mxu1 }
 0x177   : > { %3649 = vpow2.f32 %v1098_v59  ;;  %v1100_v2 = vmul.f32 1.442695, %v1032_v61  ;;  %v3418_v3 = vadd.f32 -1.0, %v819_v58  ;;  %v3450_v4 = vadd.f32 -1.0, %v899_v1  ;;  %v821_v5 = vpop.f32.mrb[7].mxu0  ;;  %v901_v6 = vpop.f32.mrb[7].mxu1 }
 0x178   : > { %3651 = vpow2.f32 %v1162_v60  ;;  %v1164_v7 = vmul.f32 1.442695, %v1064_v62  ;;  %v1102_v8 = vmul.f32 1.442695, %v1033_v63  ;;  %v1065_v12 = vmul.f32 14.285714, %v3449_v0 }
 0x179   : > { %3653 = vpow2.f32 %v1100_v2  ;;  %v1034_v9 = vmul.f32 14.285714, %v3418_v3  ;;  %v1066_v13 = vmul.f32 14.285714, %v3450_v4  ;;  %v3419_v49 = vadd.f32 -1.0, %v821_v5 }
 0x17a   : > { %3655 = vpow2.f32 %v1164_v7  ;;  %v1166_v14 = vmul.f32 1.442695, %v1065_v12  ;;  %v3451_v50 = vadd.f32 -1.0, %v901_v6  ;;  %v825_v51 = vpop.f32.mrb[8].mxu0  ;;  %v905_v52 = vpop.f32.mrb[8].mxu1 }
 0x17b   : > { %v4518_v53 = vpop.eup %3637  ;;  %3657 = vpow2.f32 %v1102_v8  ;;  %v1104_v54 = vmul.f32 1.442695, %v1034_v9  ;;  %v1168_v55 = vmul.f32 1.442695, %v1066_v13  ;;  %v1035_v56 = vmul.f32 14.285714, %v3419_v49 }
 0x17c   : > { %6525 = vst [vmem:[#allocation38_spill] sm:$0xff] %v4518_v53  ;;  %v4520_v57 = vpop.eup %3639  ;;  %3659 = vpow2.f32 %v1166_v14  ;;  %v1067_v58 = vmul.f32 14.285714, %v3451_v50  ;;  %v3420_v59 = vadd.f32 -1.0, %v825_v51  ;;  %v3452_v60 = vadd.f32 -1.0, %v905_v52  ;;  %v827_v61 = vpop.f32.mrb[9].mxu0 }
 0x17d   : > { %6526 = vst [vmem:[#allocation39_spill] sm:$0xff] %v4520_v57  ;;  %v907_v62 = vpop.f32.mrb[9].mxu1  ;;  %v4522_v63 = vpop.eup %3641  ;;  %3661 = vpow2.f32 %v1104_v54  ;;  %v1106_v0 = vmul.f32 1.442695, %v1035_v56  ;;  %v3421_v1 = vadd.f32 -1.0, %v827_v61 }
 0x17e   : > { %6527 = vst [vmem:[#allocation40_spill] sm:$0xff] %v4522_v63  ;;  %v3453_v2 = vadd.f32 -1.0, %v907_v62  ;;  %v829_v3 = vpop.f32.mrb[10].mxu0  ;;  %v909_v4 = vpop.f32.mrb[10].mxu1  ;;  %3663 = vpow2.f32 %v1168_v55  ;;  %v1170_v6 = vmul.f32 1.442695, %v1067_v58 }
 0x17f   : > { %v4524_v5 = vpop.eup %3643  ;;  %v1036_v7 = vmul.f32 14.285714, %v3420_v59  ;;  %v1068_v8 = vmul.f32 14.285714, %v3452_v60  ;;  %3665 = vpow2.f32 %v1106_v0  ;;  %v1037_v9 = vmul.f32 14.285714, %v3421_v1 }
 0x180   : > { %6528 = vst [vmem:[#allocation41_spill] sm:$0xff] %v4524_v5  ;;  %v4526_v12 = vpop.eup %3645  ;;  %v1069_v13 = vmul.f32 14.285714, %v3453_v2  ;;  %v3422_v49 = vadd.f32 -1.0, %v829_v3  ;;  %v831_v14 = vpop.f32.mrb[11].mxu0  ;;  %3667 = vpow2.f32 %v1170_v6  ;;  %v3454_v54 = vadd.f32 -1.0, %v909_v4 }
 0x181   : > { %6529 = vst [vmem:[#allocation42_spill] sm:$0xff] %v4526_v12  ;;  %v4528_v50 = vpop.eup %3647  ;;  %v1108_v51 = vmul.f32 1.442695, %v1036_v7  ;;  %v1172_v52 = vmul.f32 1.442695, %v1068_v8  ;;  %v911_v56 = vpop.f32.mrb[11].mxu1 }
 0x182   : > { %6530 = vst [vmem:[#allocation43_spill] sm:$0xff] %v4528_v50  ;;  %v4530_v61 = vpop.eup %3649  ;;  %v1110_v55 = vmul.f32 1.442695, %v1037_v9  ;;  %v1174_v58 = vmul.f32 1.442695, %v1069_v13  ;;  %v3423_v0 = vadd.f32 -1.0, %v831_v14 }
 0x183   : > { %6531 = vst [vmem:[#allocation44_spill] sm:$0xff] %v4530_v61  ;;  %v1038_v59 = vmul.f32 14.285714, %v3422_v49  ;;  %v4532_v60 = vpop.eup %3651  ;;  %3669 = vpow2.f32 %v1108_v51  ;;  %v1070_v62 = vmul.f32 14.285714, %v3454_v54  ;;  %v3455_v1 = vadd.f32 -1.0, %v911_v56 }
 0x184   : > { %6532 = vst [vmem:[#allocation45_spill] sm:$0xff] %v4532_v60  ;;  %v835_v2 = vpop.f32.mrb[12].mxu0  ;;  %v915_v3 = vpop.f32.mrb[12].mxu1  ;;  %3671 = vpow2.f32 %v1172_v52  ;;  %v1039_v13 = vmul.f32 14.285714, %v3423_v0 }
 0x185   : > { %v4534_v10 = vpop.eup %3653  ;;  %v1112_v6 = vmul.f32 1.442695, %v1038_v59  ;;  %v3424_v7 = vadd.f32 -1.0, %v835_v2  ;;  %v3456_v4 = vadd.f32 -1.0, %v915_v3  ;;  %v837_v8 = vpop.f32.mrb[13].mxu0  ;;  %3673 = vpow2.f32 %v1110_v55 }
 0x186   : > { %6533 = vst [vmem:[#allocation46_spill] sm:$0xff] %v4534_v10  ;;  %v917_v47 = vpop.f32.mrb[13].mxu1  ;;  %v4536_v48 = vpop.eup %3655  ;;  %v1176_v9 = vmul.f32 1.442695, %v1070_v62  ;;  %v1071_v49 = vmul.f32 14.285714, %v3455_v1  ;;  %3675 = vpow2.f32 %v1174_v58 }
 0x187   : > { %6534 = vst [vmem:[#allocation47_spill] sm:$0xff] %v4536_v48  ;;  %v4538_v51 = vpop.eup %3657  ;;  %v1040_v14 = vmul.f32 14.285714, %v3424_v7  ;;  %v1072_v54 = vmul.f32 14.285714, %v3456_v4  ;;  %v3425_v56 = vadd.f32 -1.0, %v837_v8  ;;  %3677 = vpow2.f32 %v1112_v6 }
 0x188   : > { %6535 = vst [vmem:[#allocation48_spill] sm:$0xff] %v4538_v51  ;;  %v839_v45 = vpop.f32.mrb[14].mxu0  ;;  %v4540_v46 = vpop.eup %3659  ;;  %v1114_v52 = vmul.f32 1.442695, %v1039_v13  ;;  %v1178_v59 = vmul.f32 1.442695, %v1071_v49  ;;  %3679 = vpow2.f32 %v1176_v9 }
 0x189   : > { %6536 = vst [vmem:[#allocation49_spill] sm:$0xff] %v4540_v46  ;;  %v3457_v2 = vadd.f32 -1.0, %v917_v47  ;;  %v919_v3 = vpop.f32.mrb[14].mxu1  ;;  %v4542_v43 = vpop.eup %3661  ;;  %v1116_v55 = vmul.f32 1.442695, %v1040_v14  ;;  %v3426_v7 = vadd.f32 -1.0, %v839_v45 }
 0x18a   : > { %6537 = vst [vmem:[#allocation50_spill] sm:$0xff] %v4542_v43  ;;  %v1180_v62 = vmul.f32 1.442695, %v1072_v54  ;;  %v1041_v0 = vmul.f32 14.285714, %v3425_v56  ;;  %v4544_v1 = vpop.eup %3663  ;;  %3681 = vpow2.f32 %v1114_v52  ;;  %v3458_v4 = vadd.f32 -1.0, %v919_v3 }
 0x18b   : > { %6538 = vst [vmem:[#allocation51_spill] sm:$0xff] %v4544_v1  ;;  %v1073_v58 = vmul.f32 14.285714, %v3457_v2  ;;  %v841_v8 = vpop.f32.mrb[15].mxu0  ;;  %v921_v44 = vpop.f32.mrb[15].mxu1  ;;  %3683 = vpow2.f32 %v1178_v59 }
 0x18c   : > { %v4546_v41 = vpop.eup %3665  ;;  %v1118_v6 = vmul.f32 1.442695, %v1041_v0  ;;  %v3427_v47 = vadd.f32 -1.0, %v841_v8  ;;  %v3459_v13 = vadd.f32 -1.0, %v921_v44  ;;  %3685 = vpow2.f32 %v1116_v55  ;;  %v845_v2 = vpop.f32.mrb[16].mxu0 }
 0x18d   : > { %6539 = vst [vmem:[#allocation52_spill] sm:$0xff] %v4546_v41  ;;  %v4548_v49 = vpop.eup %3667  ;;  %v1182_v9 = vmul.f32 1.442695, %v1073_v58  ;;  %v1042_v14 = vmul.f32 14.285714, %v3426_v7  ;;  %3687 = vpow2.f32 %v1180_v62  ;;  %v925_v45 = vpop.f32.mrb[16].mxu1 }
 0x18e   : > { %6540 = vst [vmem:[#allocation53_spill] sm:$0xff] %v4548_v49  ;;  %v1074_v54 = vmul.f32 14.285714, %v3458_v4  ;;  %v1043_v56 = vmul.f32 14.285714, %v3427_v47  ;;  %v4550_v3 = vpop.eup %3669  ;;  %3689 = vpow2.f32 %v1118_v6  ;;  %v3428_v59 = vadd.f32 -1.0, %v845_v2 }
 0x18f   : > { %v1075_v52 = vmul.f32 14.285714, %v3459_v13  ;;  %6541 = vst [vmem:[#allocation54_spill] sm:$0xff] %v4550_v3  ;;  %v1120_v42 = vmul.f32 1.442695, %v1042_v14  ;;  %v847_v0 = vpop.f32.mrb[17].mxu0  ;;  %v4552_v8 = vpop.eup %3671  ;;  %3691 = vpow2.f32 %v1182_v9 }
 0x190   : > { %v1184_v39 = vmul.f32 1.442695, %v1074_v54  ;;  %6542 = vst [vmem:[#allocation55_spill] sm:$0xff] %v4552_v8  ;;  %v1122_v44 = vmul.f32 1.442695, %v1043_v56  ;;  %v3460_v58 = vadd.f32 -1.0, %v925_v45  ;;  %v4554_v4 = vpop.eup %3673 }
 0x191   : > { %v1186_v55 = vmul.f32 1.442695, %v1075_v52  ;;  %v927_v7 = vpop.f32.mrb[17].mxu1  ;;  %6543 = vst [vmem:[#allocation56_spill] sm:$0xff] %v4554_v4  ;;  %3693 = vpow2.f32 %v1120_v42  ;;  %v1044_v62 = vmul.f32 14.285714, %v3428_v59  ;;  %v4556_v6 = vpop.eup %3675 }
 0x192   : > { %v3429_v47 = vadd.f32 -1.0, %v847_v0  ;;  %v3461_v13 = vadd.f32 -1.0, %v927_v7  ;;  %v849_v40 = vpop.f32.mrb[18].mxu0  ;;  %v929_v37 = vpop.f32.mrb[18].mxu1  ;;  %6544 = vst [vmem:[#allocation57_spill] sm:$0xff] %v4556_v6  ;;  %3695 = vpow2.f32 %v1184_v39 }
 0x193   : > { %v1076_v14 = vmul.f32 14.285714, %v3460_v58  ;;  %v3430_v54 = vadd.f32 -1.0, %v849_v40  ;;  %v3462_v2 = vadd.f32 -1.0, %v929_v37  ;;  %v851_v38 = vpop.f32.mrb[19].mxu0  ;;  %v931_v9 = vpop.f32.mrb[19].mxu1  ;;  %3697 = vpow2.f32 %v1122_v44 }
 0x194   : > { %v4558_v56 = vpop.eup %3677  ;;  %v1124_v52 = vmul.f32 1.442695, %v1044_v62  ;;  %v1045_v45 = vmul.f32 14.285714, %v3429_v47  ;;  %v1077_v35 = vmul.f32 14.285714, %v3461_v13  ;;  %3699 = vpow2.f32 %v1186_v55 }
 0x195   : > { %6545 = vst [vmem:[#allocation58_spill] sm:$0xff] %v4558_v56  ;;  %v4560_v42 = vpop.eup %3679  ;;  %v1188_v59 = vmul.f32 1.442695, %v1076_v14  ;;  %v1046_v0 = vmul.f32 14.285714, %v3430_v54  ;;  %v3431_v37 = vadd.f32 -1.0, %v851_v38 }
 0x196   : > { %6546 = vst [vmem:[#allocation59_spill] sm:$0xff] %v4560_v42  ;;  %v1078_v7 = vmul.f32 14.285714, %v3462_v2  ;;  %v4562_v36 = vpop.eup %3681  ;;  %3701 = vpow2.f32 %v1124_v52  ;;  %v1126_v39 = vmul.f32 1.442695, %v1045_v45  ;;  %v855_v58 = vpop.f32.mrb[20].mxu0 }
 0x197   : > { %6547 = vst [vmem:[#allocation60_spill] sm:$0xff] %v4562_v36  ;;  %v1190_v40 = vmul.f32 1.442695, %v1077_v35  ;;  %v4564_v33 = vpop.eup %3683  ;;  %3703 = vpow2.f32 %v1188_v59  ;;  %v1128_v44 = vmul.f32 1.442695, %v1046_v0  ;;  %v3463_v47 = vadd.f32 -1.0, %v931_v9 }
 0x198   : > { %6548 = vst [vmem:[#allocation61_spill] sm:$0xff] %v4564_v33  ;;  %v1192_v62 = vmul.f32 1.442695, %v1078_v7  ;;  %v935_v13 = vpop.f32.mrb[20].mxu1  ;;  %v4566_v34 = vpop.eup %3685  ;;  %3705 = vpow2.f32 %v1126_v39  ;;  %v1047_v55 = vmul.f32 14.285714, %v3431_v37 }
 0x199   : > { %6549 = vst [vmem:[#allocation62_spill] sm:$0xff] %v4566_v34  ;;  %v3432_v14 = vadd.f32 -1.0, %v855_v58  ;;  %v3464_v54 = vadd.f32 -1.0, %v935_v13  ;;  %v857_v2 = vpop.f32.mrb[21].mxu0  ;;  %v937_v31 = vpop.f32.mrb[21].mxu1  ;;  %3707 = vpow2.f32 %v1190_v40 }
 0x19a   : > { %v4568_v52 = vpop.eup %3687  ;;  %v1079_v35 = vmul.f32 14.285714, %v3463_v47  ;;  %v3433_v38 = vadd.f32 -1.0, %v857_v2  ;;  %v3465_v45 = vadd.f32 -1.0, %v937_v31  ;;  %v859_v32 = vpop.f32.mrb[22].mxu0  ;;  %3709 = vpow2.f32 %v1128_v44 }
 0x19b   : > { %6550 = vst [vmem:[#allocation63_spill] sm:$0xff] %v4568_v52  ;;  %v939_v59 = vpop.f32.mrb[22].mxu1  ;;  %v4570_v0 = vpop.eup %3689  ;;  %v1130_v9 = vmul.f32 1.442695, %v1047_v55  ;;  %v1048_v7 = vmul.f32 14.285714, %v3432_v14  ;;  %3711 = vpow2.f32 %v1192_v62 }
 0x19c   : > { %6551 = vst [vmem:[#allocation64_spill] sm:$0xff] %v4570_v0  ;;  %v1080_v29 = vmul.f32 14.285714, %v3464_v54  ;;  %v4572_v39 = vpop.eup %3691  ;;  %v1194_v37 = vmul.f32 1.442695, %v1079_v35  ;;  %v3434_v31 = vadd.f32 -1.0, %v859_v32 }
 0x19d   : > { %6552 = vst [vmem:[#allocation65_spill] sm:$0xff] %v4572_v39  ;;  %v1049_v58 = vmul.f32 14.285714, %v3433_v38  ;;  %v1081_v13 = vmul.f32 14.285714, %v3465_v45  ;;  %v4574_v30 = vpop.eup %3693  ;;  %3713 = vpow2.f32 %v1130_v9  ;;  %v861_v2 = vpop.f32.mrb[23].mxu0 }
 0x19e   : > { %6553 = vst [vmem:[#allocation66_spill] sm:$0xff] %v4574_v30  ;;  %v1132_v40 = vmul.f32 1.442695, %v1048_v7  ;;  %v1196_v47 = vmul.f32 1.442695, %v1080_v29  ;;  %v4576_v27 = vpop.eup %3695  ;;  %3715 = vpow2.f32 %v1194_v37  ;;  %v3466_v14 = vadd.f32 -1.0, %v939_v59 }
 0x19f   : > { %6554 = vst [vmem:[#allocation67_spill] sm:$0xff] %v4576_v27  ;;  %v1134_v44 = vmul.f32 1.442695, %v1049_v58  ;;  %v1198_v55 = vmul.f32 1.442695, %v1081_v13  ;;  %v941_v54 = vpop.f32.mrb[23].mxu1  ;;  %v4578_v28 = vpop.eup %3697 }
 0x1a0   : > { %6555 = vst [vmem:[#allocation68_spill] sm:$0xff] %v4578_v28  ;;  %3717 = vpow2.f32 %v1132_v40  ;;  %v1050_v62 = vmul.f32 14.285714, %v3434_v31  ;;  %v3435_v35 = vadd.f32 -1.0, %v861_v2  ;;  %v3467_v38 = vadd.f32 -1.0, %v941_v54  ;;  %v865_v45 = vpop.f32.mrb[24].mxu0  ;;  %v4580_v9 = vpop.eup %3699 }
 0x1a1   : > { %v945_v25 = vpop.f32.mrb[24].mxu1  ;;  %6556 = vst [vmem:[#allocation69_spill] sm:$0xff] %v4580_v9  ;;  %3719 = vpow2.f32 %v1196_v47  ;;  %v1082_v29 = vmul.f32 14.285714, %v3466_v14  ;;  %v3436_v32 = vadd.f32 -1.0, %v865_v45  ;;  %v867_v26 = vpop.f32.mrb[25].mxu0 }
 0x1a2   : > { %v3468_v7 = vadd.f32 -1.0, %v945_v25  ;;  %v947_v37 = vpop.f32.mrb[25].mxu1  ;;  %v4582_v58 = vpop.eup %3701  ;;  %3721 = vpow2.f32 %v1134_v44  ;;  %v1136_v59 = vmul.f32 1.442695, %v1050_v62  ;;  %v1051_v13 = vmul.f32 14.285714, %v3435_v35 }
 0x1a3   : > { %6557 = vst [vmem:[#allocation70_spill] sm:$0xff] %v4582_v58  ;;  %v1083_v23 = vmul.f32 14.285714, %v3467_v38  ;;  %v4584_v40 = vpop.eup %3703  ;;  %3723 = vpow2.f32 %v1198_v55  ;;  %v1200_v31 = vmul.f32 1.442695, %v1082_v29  ;;  %v3437_v25 = vadd.f32 -1.0, %v867_v26 }
 0x1a4   : > { %6558 = vst [vmem:[#allocation71_spill] sm:$0xff] %v4584_v40  ;;  %v1052_v2 = vmul.f32 14.285714, %v3436_v32  ;;  %v1084_v54 = vmul.f32 14.285714, %v3468_v7  ;;  %v4586_v24 = vpop.eup %3705  ;;  %3725 = vpow2.f32 %v1136_v59  ;;  %v869_v45 = vpop.f32.mrb[26].mxu0 }
 0x1a5   : > { %6559 = vst [vmem:[#allocation72_spill] sm:$0xff] %v4586_v24  ;;  %v1138_v47 = vmul.f32 1.442695, %v1051_v13  ;;  %v1202_v14 = vmul.f32 1.442695, %v1083_v23  ;;  %v4588_v21 = vpop.eup %3707  ;;  %3727 = vpow2.f32 %v1200_v31  ;;  %v3469_v35 = vadd.f32 -1.0, %v947_v37 }
 0x1a6   : > { %6560 = vst [vmem:[#allocation73_spill] sm:$0xff] %v4588_v21  ;;  %v1140_v44 = vmul.f32 1.442695, %v1052_v2  ;;  %v1204_v62 = vmul.f32 1.442695, %v1084_v54  ;;  %v949_v38 = vpop.f32.mrb[26].mxu1  ;;  %v4590_v22 = vpop.eup %3709 }
 0x1a7   : > { %6561 = vst [vmem:[#allocation74_spill] sm:$0xff] %v4590_v22  ;;  %3729 = vpow2.f32 %v1138_v47  ;;  %v1053_v55 = vmul.f32 14.285714, %v3437_v25  ;;  %v3438_v29 = vadd.f32 -1.0, %v869_v45  ;;  %v3470_v32 = vadd.f32 -1.0, %v949_v38  ;;  %v871_v7 = vpop.f32.mrb[27].mxu0  ;;  %v4592_v59 = vpop.eup %3711 }
 0x1a8   : > { %v951_v19 = vpop.f32.mrb[27].mxu1  ;;  %6562 = vst [vmem:[#allocation75_spill] sm:$0xff] %v4592_v59  ;;  %3731 = vpow2.f32 %v1202_v14  ;;  %v1085_v23 = vmul.f32 14.285714, %v3469_v35  ;;  %v3439_v26 = vadd.f32 -1.0, %v871_v7  ;;  %v4594_v17 = vpop.eup %3713 }
 0x1a9   : > { %v3471_v13 = vadd.f32 -1.0, %v951_v19  ;;  %6563 = vst [vmem:[#allocation76_spill] sm:$0xff] %v4594_v17  ;;  %3733 = vpow2.f32 %v1140_v44  ;;  %v1142_v31 = vmul.f32 1.442695, %v1053_v55  ;;  %v1054_v37 = vmul.f32 14.285714, %v3438_v29  ;;  %v4596_v54 = vpop.eup %3715 }
 0x1aa   : > { %v1086_v2 = vmul.f32 14.285714, %v3470_v32  ;;  %6564 = vst [vmem:[#allocation77_spill] sm:$0xff] %v4596_v54  ;;  %3735 = vpow2.f32 %v1204_v62  ;;  %v1206_v47 = vmul.f32 1.442695, %v1085_v23  ;;  %v4598_v38 = vpop.eup %3717  ;;  %v875_v35 = vpop.f32.mrb[28].mxu0 }
 0x1ab   : > { %v1055_v25 = vmul.f32 14.285714, %v3439_v26  ;;  %v1087_v45 = vmul.f32 14.285714, %v3471_v13  ;;  %6565 = vst [vmem:[#allocation78_spill] sm:$0xff] %v4598_v38  ;;  %3737 = vpow2.f32 %v1142_v31  ;;  %v955_v7 = vpop.f32.mrb[28].mxu1  ;;  %v4600_v19 = vpop.eup %3719 }
 0x1ac   : > { %v1144_v20 = vmul.f32 1.442695, %v1054_v37  ;;  %v1208_v14 = vmul.f32 1.442695, %v1086_v2  ;;  %6566 = vst [vmem:[#allocation79_spill] sm:$0xff] %v4600_v19  ;;  %3739 = vpow2.f32 %v1206_v47  ;;  %v3440_v29 = vadd.f32 -1.0, %v875_v35  ;;  %v4602_v16 = vpop.eup %3721 }
 0x1ad   : > { %v1146_v44 = vmul.f32 1.442695, %v1055_v25  ;;  %v1210_v55 = vmul.f32 1.442695, %v1087_v45  ;;  %v877_v32 = vpop.f32.mrb[29].mxu0  ;;  %6567 = vst [vmem:[#allocation80_spill] sm:$0xff] %v4602_v16  ;;  %v4604_v15 = vpop.eup %3723 }
 0x1ae   : > { %3741 = vpow2.f32 %v1144_v20  ;;  %v3472_v62 = vadd.f32 -1.0, %v955_v7  ;;  %v3441_v23 = vadd.f32 -1.0, %v877_v32  ;;  %v957_v26 = vpop.f32.mrb[29].mxu1  ;;  %v879_v13 = vpop.f32.mrb[30].mxu0  ;;  %6568 = vst [vmem:[#allocation81_spill] sm:$0xff] %v4604_v15 }
 0x1af   : > { %3743 = vpow2.f32 %v1208_v14  ;;  %v1056_v31 = vmul.f32 14.285714, %v3440_v29  ;;  %v3473_v37 = vadd.f32 -1.0, %v957_v26  ;;  %v3442_v2 = vadd.f32 -1.0, %v879_v13  ;;  %v959_v18 = vpop.f32.mrb[30].mxu1  ;;  %v881_v19 = vpop.f32.mrb[31].mxu0 }
 0x1b0   : > { %v4606_v47 = vpop.eup %3725  ;;  %3745 = vpow2.f32 %v1146_v44  ;;  %v1088_v25 = vmul.f32 14.285714, %v3472_v62  ;;  %v1057_v45 = vmul.f32 14.285714, %v3441_v23  ;;  %v3474_v35 = vadd.f32 -1.0, %v959_v18  ;;  %v961_v54 = vpop.f32.mrb[31].mxu1 }
 0x1b1   : > { %6569 = vst [vmem:[#allocation82_spill] sm:$0xff] %v4606_v47  ;;  %v4608_v20 = vpop.eup %3727  ;;  %3747 = vpow2.f32 %v1210_v55  ;;  %v1148_v7 = vmul.f32 1.442695, %v1056_v31  ;;  %v1089_v32 = vmul.f32 14.285714, %v3473_v37  ;;  %v3443_v62 = vadd.f32 -1.0, %v881_v19 }
 0x1b2   : > { %6570 = vst [vmem:[#allocation83_spill] sm:$0xff] %v4608_v20  ;;  %v1058_v59 = vmul.f32 14.285714, %v3442_v2  ;;  %v4610_v15 = vpop.eup %3729  ;;  %v1212_v14 = vmul.f32 1.442695, %v1088_v25  ;;  %v3475_v20 = vadd.f32 -1.0, %v961_v54 }
 0x1b3   : > { %6571 = vst [vmem:[#allocation84_spill] sm:$0xff] %v4610_v15  ;;  %v1150_v29 = vmul.f32 1.442695, %v1057_v45  ;;  %v1090_v26 = vmul.f32 14.285714, %v3474_v35  ;;  %v4612_v13 = vpop.eup %3731  ;;  %3749 = vpow2.f32 %v1148_v7 }
 0x1b4   : > { %6572 = vst [vmem:[#allocation85_spill] sm:$0xff] %v4612_v13  ;;  %v1214_v21 = vmul.f32 1.442695, %v1089_v32  ;;  %v1152_v44 = vmul.f32 1.442695, %v1058_v59  ;;  %v4614_v23 = vpop.eup %3733  ;;  %3751 = vpow2.f32 %v1212_v14 }
 0x1b5   : > { %6573 = vst [vmem:[#allocation86_spill] sm:$0xff] %v4614_v23  ;;  %v1216_v18 = vmul.f32 1.442695, %v1090_v26  ;;  %v4616_v55 = vpop.eup %3735  ;;  %3753 = vpow2.f32 %v1150_v29  ;;  %v1059_v31 = vmul.f32 14.285714, %v3443_v62 }
 0x1b6   : > { %6574 = vst [vmem:[#allocation87_spill] sm:$0xff] %v4616_v55  ;;  %v4618_v37 = vpop.eup %3737  ;;  %3755 = vpow2.f32 %v1214_v21  ;;  %v1091_v2 = vmul.f32 14.285714, %v3475_v20 }
 0x1b7   : > { %6575 = vst [vmem:[#allocation88_spill] sm:$0xff] %v4618_v37  ;;  %v4620_v25 = vpop.eup %3739  ;;  %3757 = vpow2.f32 %v1152_v44  ;;  %v1154_v45 = vmul.f32 1.442695, %v1059_v31 }
 0x1b8   : > { %6576 = vst [vmem:[#allocation89_spill] sm:$0xff] %v4620_v25  ;;  %v4622_v35 = vpop.eup %3741  ;;  %3759 = vpow2.f32 %v1216_v18  ;;  %v1218_v59 = vmul.f32 1.442695, %v1091_v2 }
 0x1b9   : > { %6577 = vst [vmem:[#allocation90_spill] sm:$0xff] %v4622_v35  ;;  %v4624_v19 = vpop.eup %3743  ;;  %3761 = vpow2.f32 %v1154_v45 }
 0x1ba   : > { %6578 = vst [vmem:[#allocation91_spill] sm:$0xff] %v4624_v19  ;;  %v4626_v54 = vpop.eup %3745  ;;  %3763 = vpow2.f32 %v1218_v59 }
 0x1bb   : > { %6579 = vst [vmem:[#allocation92_spill] sm:$0xff] %v4626_v54  ;;  %v4628_v7 = vpop.eup %3747 }
 0x1bc   : > { %6580 = vst [vmem:[#allocation93_spill] sm:$0xff] %v4628_v7 }
 0x1bd   : > { %v4630_v32 = vpop.eup %3749 }
 0x1be   : > { %6581 = vst [vmem:[#allocation94_spill] sm:$0xff] %v4630_v32  ;;  %v4632_v21 = vpop.eup %3751 }
 0x1bf   : > { %6582 = vst [vmem:[#allocation95_spill] sm:$0xff] %v4632_v21  ;;  %v4634_v20 = vpop.eup %3753  ;;  %1433 = sbr.rel (!%p1430_p0) target bundleno = 586 (0x24a), region = 44 }
 0x1c0   : > { %6583 = vst [vmem:[#allocation96_spill] sm:$0xff] %v4634_v20  ;;  %v4636_v14 = vpop.eup %3755 }
 0x1c1   : > { %6584 = vst [vmem:[#allocation97_spill] sm:$0xff] %v4636_v14  ;;  %v4638_v29 = vpop.eup %3757 }
 0x1c2   : > { %6585 = vst [vmem:[#allocation98_spill] sm:$0xff] %v4638_v29  ;;  %v4640_v26 = vpop.eup %3759 }
 0x1c3   : > { %6586 = vst [vmem:[#allocation99_spill] sm:$0xff] %v4640_v26  ;;  %v4642_v44 = vpop.eup %3761 }
 0x1c4   : > { %6587 = vst [vmem:[#allocation100_spill] sm:$0xff] %v4642_v44  ;;  %v4644_v62 = vpop.eup %3763 }
 0x1c5   : > { %6588 = vst [vmem:[#allocation101_spill] sm:$0xff] %v4644_v62 }
 0x1c6   : > { %v4652_v18 = vstv %s4497_s27  ;;  %v6589_v31 = vlaneseq  ;;  %v1503_v45 = vstv %s4500_s9  ;;  %v1436_v59 = vadd.s32 8, %v4291_v11  ;;  %v1700_v27 = vld [vmem:[#allocation2] sm:$0xff] }
 0x1c7   : > { %v1468_v26 = vadd.s32 %v4652_v18, %v4291_v11  ;;  %v1437_v62 = vadd.s32 16, %v4291_v11  ;;  %v1438_v14 = vadd.s32 24, %v4291_v11  ;;  %v1439_v21 = vadd.s32 32, %v4291_v11 }
 0x1c8   : > { %v1501_v2 = vand.u32 127, %v6589_v31  ;;  %v1469_v25 = vadd.s32 %v4652_v18, %v1436_v59  ;;  %v1440_v55 = vadd.s32 40, %v4291_v11  ;;  %v1441_v9 = vadd.s32 48, %v4291_v11 }
 0x1c9   : > { %v1470_v31 = vadd.s32 %v4652_v18, %v1437_v62  ;;  %v1471_v13 = vadd.s32 %v4652_v18, %v1438_v14  ;;  %v4669_v40 = vadd.s32 %v4652_v18, %v1439_v21  ;;  %v1702_v62 = vld [vmem:[#allocation2 + $0x10] sm:$0xff] }
 0x1ca   : > { %v4662_v7 = vadd.s32 %v1503_v45, %v1501_v2  ;;  %v1502_v19 = vadd.s32 128, %v1501_v2  ;;  %v4684_v21 = vadd.s32 %v4652_v18, %v1440_v55 }
 0x1cc   : > { %vm1506_vm13 = vcmp.eq.s32.totalorder %v1468_v26, %v4662_v7  ;;  %vm1570_vm0 = vcmp.ge.s32.totalorder %v4662_v7, 384  ;;  %v4674_v39 = vadd.s32 %v1503_v45, %v1502_v19  ;;  %vm1508_vm9 = vcmp.eq.s32.totalorder %v1469_v25, %v4662_v7  ;;  %v1701_v19 = vld [vmem:[#allocation2 + $0x8] sm:$0xff]  ;;  %v1703_v45 = vld [vmem:[#allocation2 + $0x18] sm:$0xff] }
 0x1cd   : > { %vm1572_vm15 = vmor %vm1506_vm13, %vm1570_vm0  ;;  %vm1510_vm10 = vcmp.eq.s32.totalorder %v1470_v31, %v4662_v7  ;;  %vm1512_vm14 = vcmp.eq.s32.totalorder %v1471_v13, %v4662_v7  ;;  %vm1514_vm12 = vcmp.eq.s32.totalorder %v4669_v40, %v4662_v7 }
 0x1ce   : > { %v4687_v14 = vsel %vm1572_vm15, 0.0, %v4518_v53  ;;  %vm1507_vm11 = vcmp.eq.s32.totalorder %v1468_v26, %v4674_v39  ;;  %vm1571_vm6 = vcmp.ge.s32.totalorder %v4674_v39, 384  ;;  %vm1574_vm13 = vmor %vm1508_vm9, %vm1570_vm0  ;;  %vm1509_vm5 = vcmp.eq.s32.totalorder %v1469_v25, %v4674_v39 }
 0x1cf   : > { %v1764_v2 = vadd.f32 %v1700_v27, %v4687_v14  ;;  %vm1573_vm2 = vmor %vm1507_vm11, %vm1571_vm6  ;;  %v4698_v55 = vsel %vm1574_vm13, 0.0, %v4526_v12  ;;  %vm1511_vm15 = vcmp.eq.s32.totalorder %v1470_v31, %v4674_v39  ;;  %vm1513_vm1 = vcmp.eq.s32.totalorder %v1471_v13, %v4674_v39  ;;  %v1704_v27 = vld [vmem:[#allocation2 + $0x20] sm:$0xff]  ;;  %v1709_v13 = vld [vmem:[#allocation2 + $0x48] sm:$0xff] }
 0x1d0   : > { %6590 = vst [vmem:[#allocation102_spill] sm:$0xff] %v4698_v55  ;;  %v4703_v26 = vsel %vm1573_vm2, 0.0, %v4522_v63  ;;  %v1766_v59 = vadd.f32 %v1702_v62, %v4698_v55  ;;  %vm1575_vm9 = vmor %vm1509_vm5, %vm1571_vm6  ;;  %vm1515_vm11 = vcmp.eq.s32.totalorder %v4669_v40, %v4674_v39  ;;  %vm1516_vm13 = vcmp.eq.s32.totalorder %v4684_v21, %v4662_v7  ;;  %v1705_v62 = vld [vmem:[#allocation2 + $0x28] sm:$0xff] }
 0x1d1   : > { %6591 = vst [vmem:[#allocation103_spill] sm:$0xff] %v4703_v26  ;;  %1828 = vst [vmem:[#allocation2] sm:$0xff] %v1764_v2  ;;  %v1765_v25 = vadd.f32 %v1701_v19, %v4703_v26  ;;  %v4714_v12 = vsel %vm1575_vm9, 0.0, %v4530_v61  ;;  %vm1517_vm5 = vcmp.eq.s32.totalorder %v4684_v21, %v4674_v39  ;;  %v1474_v63 = vadd.s32 %v4652_v18, %v1441_v9  ;;  %v1706_v19 = vld [vmem:[#allocation2 + $0x30] sm:$0xff] }
 0x1d2   : > { %vm1576_vm2 = vmor %vm1510_vm10, %vm1570_vm0  ;;  %1830 = vst [vmem:[#allocation2 + $0x10] sm:$0xff] %v1766_v59  ;;  %v1767_v53 = vadd.f32 %v1703_v45, %v4714_v12  ;;  %v1442_v61 = vadd.s32 56, %v4291_v11  ;;  %v1443_v55 = vadd.s32 64, %v4291_v11  ;;  %v1707_v45 = vld [vmem:[#allocation2 + $0x38] sm:$0xff]  ;;  %v1446_v21 = vadd.s32 88, %v4291_v11 }
 0x1d3   : > { %v4725_v2 = vsel %vm1576_vm2, 0.0, %v4534_v10  ;;  %vm1577_vm9 = vmor %vm1511_vm15, %vm1571_vm6  ;;  %1829 = vst [vmem:[#allocation2 + $0x8] sm:$0xff] %v1765_v25  ;;  %vm1518_vm2 = vcmp.eq.s32.totalorder %v1474_v63, %v4662_v7  ;;  %vm1519_vm15 = vcmp.eq.s32.totalorder %v1474_v63, %v4674_v39 }
 0x1d4   : > { %v1768_v26 = vadd.f32 %v1704_v27, %v4725_v2  ;;  %v4735_v9 = vsel %vm1577_vm9, 0.0, %v4538_v51  ;;  %vm1578_vm10 = vmor %vm1512_vm14, %vm1570_vm0  ;;  %1831 = vst [vmem:[#allocation2 + $0x18] sm:$0xff] %v1767_v53  ;;  %v1708_v27 = vld [vmem:[#allocation2 + $0x40] sm:$0xff]  ;;  %v1475_v25 = vadd.s32 %v4652_v18, %v1442_v61  ;;  %v4753_v51 = vadd.s32 %v4652_v18, %v1443_v55 }
 0x1d5   : > { %v1769_v31 = vadd.f32 %v1705_v62, %v4735_v9  ;;  %v4745_v59 = vsel %vm1578_vm10, 0.0, %v4542_v43  ;;  %vm1579_vm9 = vmor %vm1513_vm1, %vm1571_vm6  ;;  %v1444_v62 = vadd.s32 72, %v4291_v11  ;;  %v1445_v61 = vadd.s32 80, %v4291_v11 }
 0x1d6   : > { %1832 = vst [vmem:[#allocation2 + $0x20] sm:$0xff] %v1768_v26  ;;  %v1770_v10 = vadd.f32 %v1706_v19, %v4745_v59  ;;  %v4757_v53 = vsel %vm1579_vm9, 0.0, %v4546_v41  ;;  %vm1580_vm14 = vmor %vm1514_vm12, %vm1570_vm0  ;;  %v1710_v19 = vld [vmem:[#allocation2 + $0x50] sm:$0xff]  ;;  %vm1520_vm12 = vcmp.eq.s32.totalorder %v1475_v25, %v4662_v7  ;;  %vm1521_vm10 = vcmp.eq.s32.totalorder %v1475_v25, %v4674_v39 }
 0x1d7   : > { %1833 = vst [vmem:[#allocation2 + $0x28] sm:$0xff] %v1769_v31  ;;  %v1771_v55 = vadd.f32 %v1707_v45, %v4757_v53  ;;  %v4768_v26 = vsel %vm1580_vm14, 0.0, %v4550_v3  ;;  %vm1581_vm1 = vmor %vm1515_vm11, %vm1571_vm6  ;;  %v1711_v45 = vld [vmem:[#allocation2 + $0x58] sm:$0xff]  ;;  %vm1522_vm11 = vcmp.eq.s32.totalorder %v4753_v51, %v4662_v7  ;;  %vm1523_vm14 = vcmp.eq.s32.totalorder %v4753_v51, %v4674_v39 }
 0x1d8   : > { %1834 = vst [vmem:[#allocation2 + $0x30] sm:$0xff] %v1770_v10  ;;  %v1772_v41 = vadd.f32 %v1708_v27, %v4768_v26  ;;  %v4779_v31 = vsel %vm1581_vm1, 0.0, %v4554_v4  ;;  %vm1582_vm9 = vmor %vm1516_vm13, %vm1570_vm0  ;;  %v1712_v27 = vld [vmem:[#allocation2 + $0x60] sm:$0xff]  ;;  %v1477_v4 = vadd.s32 %v4652_v18, %v1444_v62  ;;  %v4801_v3 = vadd.s32 %v4652_v18, %v1445_v61  ;;  %v1714_v61 = vld [vmem:[#allocation2 + $0x70] sm:$0xff] }
 0x1d9   : > { %1835 = vst [vmem:[#allocation2 + $0x38] sm:$0xff] %v1771_v55  ;;  %v1773_v10 = vadd.f32 %v1709_v13, %v4779_v31  ;;  %v4792_v40 = vsel %vm1582_vm9, 0.0, %v4558_v56  ;;  %vm1583_vm1 = vmor %vm1517_vm5, %vm1571_vm6  ;;  %v1713_v56 = vld [vmem:[#allocation2 + $0x68] sm:$0xff]  ;;  %v1447_v43 = vadd.s32 96, %v4291_v11  ;;  %v1448_v25 = vadd.s32 104, %v4291_v11 }
 0x1da   : > { %1836 = vst [vmem:[#allocation2 + $0x40] sm:$0xff] %v1772_v41  ;;  %v1774_v55 = vadd.f32 %v1710_v19, %v4792_v40  ;;  %v4805_v13 = vsel %vm1583_vm1, 0.0, %v4562_v36  ;;  %vm1584_vm13 = vmor %vm1518_vm2, %vm1570_vm0  ;;  %vm1524_vm9 = vcmp.eq.s32.totalorder %v1477_v4, %v4662_v7  ;;  %vm1525_vm2 = vcmp.eq.s32.totalorder %v1477_v4, %v4674_v39  ;;  %v1721_v4 = vld [vmem:[#allocation2 + $0xa8] sm:$0xff] }
 0x1db   : > { %1837 = vst [vmem:[#allocation2 + $0x48] sm:$0xff] %v1773_v10  ;;  %v1775_v62 = vadd.f32 %v1711_v45, %v4805_v13  ;;  %v4815_v41 = vsel %vm1584_vm13, 0.0, %v4566_v34  ;;  %vm1585_vm5 = vmor %vm1519_vm15, %vm1571_vm6  ;;  %v1715_v45 = vld [vmem:[#allocation2 + $0x78] sm:$0xff]  ;;  %vm1526_vm15 = vcmp.eq.s32.totalorder %v4801_v3, %v4662_v7  ;;  %vm1527_vm13 = vcmp.eq.s32.totalorder %v4801_v3, %v4674_v39 }
 0x1dc   : > { %1838 = vst [vmem:[#allocation2 + $0x50] sm:$0xff] %v1774_v55  ;;  %v1776_v19 = vadd.f32 %v1712_v27, %v4815_v41  ;;  %v4825_v10 = vsel %vm1585_vm5, 0.0, %v4570_v0  ;;  %vm1586_vm1 = vmor %vm1520_vm12, %vm1570_vm0  ;;  %v1716_v55 = vld [vmem:[#allocation2 + $0x80] sm:$0xff]  ;;  %v1479_v0 = vadd.s32 %v4652_v18, %v1446_v21  ;;  %v4845_v34 = vadd.s32 %v4652_v18, %v1447_v43 }
 0x1dd   : > { %1839 = vst [vmem:[#allocation2 + $0x58] sm:$0xff] %v1775_v62  ;;  %v1777_v63 = vadd.f32 %v1713_v56, %v4825_v10  ;;  %v4837_v27 = vsel %vm1586_vm1, 0.0, %v4574_v30  ;;  %vm1587_vm5 = vmor %vm1521_vm10, %vm1571_vm6  ;;  %v1717_v56 = vld [vmem:[#allocation2 + $0x88] sm:$0xff]  ;;  %v1449_v21 = vadd.s32 112, %v4291_v11 }
 0x1de   : > { %1840 = vst [vmem:[#allocation2 + $0x60] sm:$0xff] %v1776_v19  ;;  %v1778_v36 = vadd.f32 %v1714_v61, %v4837_v27  ;;  %v4849_v62 = vsel %vm1587_vm5, 0.0, %v4578_v28  ;;  %vm1588_vm12 = vmor %vm1522_vm11, %vm1570_vm0  ;;  %v1718_v61 = vld [vmem:[#allocation2 + $0x90] sm:$0xff]  ;;  %vm1528_vm11 = vcmp.eq.s32.totalorder %v1479_v0, %v4662_v7  ;;  %vm1529_vm1 = vcmp.eq.s32.totalorder %v1479_v0, %v4674_v39  ;;  %v1725_v0 = vld [vmem:[#allocation2 + $0xc8] sm:$0xff] }
 0x1df   : > { %1841 = vst [vmem:[#allocation2 + $0x68] sm:$0xff] %v1777_v63  ;;  %v1779_v43 = vadd.f32 %v1715_v45, %v4849_v62  ;;  %v4860_v19 = vsel %vm1588_vm12, 0.0, %v4582_v58  ;;  %vm1589_vm10 = vmor %vm1523_vm14, %vm1571_vm6  ;;  %v1719_v45 = vld [vmem:[#allocation2 + $0x98] sm:$0xff]  ;;  %vm1530_vm14 = vcmp.eq.s32.totalorder %v4845_v34, %v4662_v7  ;;  %vm1531_vm12 = vcmp.eq.s32.totalorder %v4845_v34, %v4674_v39 }
 0x1e0   : > { %1842 = vst [vmem:[#allocation2 + $0x70] sm:$0xff] %v1778_v36  ;;  %v1780_v28 = vadd.f32 %v1716_v55, %v4860_v19  ;;  %v4871_v63 = vsel %vm1589_vm10, 0.0, %v4586_v24  ;;  %vm1590_vm5 = vmor %vm1524_vm9, %vm1570_vm0  ;;  %v1720_v55 = vld [vmem:[#allocation2 + $0xa0] sm:$0xff]  ;;  %v1481_v24 = vadd.s32 %v4652_v18, %v1448_v25  ;;  %v4891_v58 = vadd.s32 %v4652_v18, %v1449_v21 }
 0x1e1   : > { %1843 = vst [vmem:[#allocation2 + $0x78] sm:$0xff] %v1779_v43  ;;  %v1781_v36 = vadd.f32 %v1717_v56, %v4871_v63  ;;  %v4883_v51 = vsel %vm1590_vm5, 0.0, %v4590_v22  ;;  %vm1591_vm10 = vmor %vm1525_vm2, %vm1571_vm6  ;;  %v1450_v56 = vadd.s32 120, %v4291_v11  ;;  %v1451_v25 = vadd.s32 128, %v4291_v11 }
 0x1e2   : > { %1844 = vst [vmem:[#allocation2 + $0x80] sm:$0xff] %v1780_v28  ;;  %v1782_v30 = vadd.f32 %v1718_v61, %v4883_v51  ;;  %v4895_v43 = vsel %vm1591_vm10, 0.0, %v4594_v17  ;;  %vm1592_vm9 = vmor %vm1526_vm15, %vm1570_vm0  ;;  %v1722_v61 = vld [vmem:[#allocation2 + $0xb0] sm:$0xff]  ;;  %vm1532_vm15 = vcmp.eq.s32.totalorder %v1481_v24, %v4662_v7  ;;  %vm1533_vm5 = vcmp.eq.s32.totalorder %v1481_v24, %v4674_v39  ;;  %v1729_v24 = vld [vmem:[#allocation2 + $0xe8] sm:$0xff] }
 0x1e3   : > { %1845 = vst [vmem:[#allocation2 + $0x88] sm:$0xff] %v1781_v36  ;;  %v1783_v21 = vadd.f32 %v1719_v45, %v4895_v43  ;;  %v4906_v28 = vsel %vm1592_vm9, 0.0, %v4598_v38  ;;  %vm1593_vm2 = vmor %vm1527_vm13, %vm1571_vm6  ;;  %v1723_v45 = vld [vmem:[#allocation2 + $0xb8] sm:$0xff]  ;;  %vm1534_vm13 = vcmp.eq.s32.totalorder %v4891_v58, %v4662_v7  ;;  %vm1535_vm9 = vcmp.eq.s32.totalorder %v4891_v58, %v4674_v39 }
 0x1e4   : > { %1846 = vst [vmem:[#allocation2 + $0x90] sm:$0xff] %v1782_v30  ;;  %v1784_v17 = vadd.f32 %v1720_v55, %v4906_v28  ;;  %v4917_v36 = vsel %vm1593_vm2, 0.0, %v4602_v16  ;;  %vm1594_vm10 = vmor %vm1528_vm11, %vm1570_vm0  ;;  %v1724_v55 = vld [vmem:[#allocation2 + $0xc0] sm:$0xff]  ;;  %v1483_v16 = vadd.s32 %v4652_v18, %v1450_v56  ;;  %v4937_v38 = vadd.s32 %v4652_v18, %v1451_v25 }
 0x1e5   : > { %1847 = vst [vmem:[#allocation2 + $0x98] sm:$0xff] %v1783_v21  ;;  %v1785_v30 = vadd.f32 %v1721_v4, %v4917_v36  ;;  %v4929_v3 = vsel %vm1594_vm10, 0.0, %v4606_v47  ;;  %vm1595_vm2 = vmor %vm1529_vm1, %vm1571_vm6  ;;  %v1452_v4 = vadd.s32 136, %v4291_v11  ;;  %v1453_v56 = vadd.s32 144, %v4291_v11 }
 0x1e6   : > { %1848 = vst [vmem:[#allocation2 + $0xa0] sm:$0xff] %v1784_v17  ;;  %v1786_v22 = vadd.f32 %v1722_v61, %v4929_v3  ;;  %v4941_v21 = vsel %vm1595_vm2, 0.0, %v4610_v15  ;;  %vm1596_vm11 = vmor %vm1530_vm14, %vm1570_vm0  ;;  %v1726_v61 = vld [vmem:[#allocation2 + $0xd0] sm:$0xff]  ;;  %vm1536_vm14 = vcmp.eq.s32.totalorder %v1483_v16, %v4662_v7  ;;  %vm1537_vm10 = vcmp.eq.s32.totalorder %v1483_v16, %v4674_v39  ;;  %v1733_v16 = vld [vmem:[#allocation2 + $0x108] sm:$0xff] }
 0x1e7   : > { %1849 = vst [vmem:[#allocation2 + $0xa8] sm:$0xff] %v1785_v30  ;;  %v1787_v25 = vadd.f32 %v1723_v45, %v4941_v21  ;;  %v4952_v17 = vsel %vm1596_vm11, 0.0, %v4614_v23  ;;  %vm1597_vm1 = vmor %vm1531_vm12, %vm1571_vm6  ;;  %v1727_v45 = vld [vmem:[#allocation2 + $0xd8] sm:$0xff]  ;;  %vm1538_vm12 = vcmp.eq.s32.totalorder %v4937_v38, %v4662_v7  ;;  %vm1539_vm11 = vcmp.eq.s32.totalorder %v4937_v38, %v4674_v39 }
 0x1e8   : > { %1850 = vst [vmem:[#allocation2 + $0xb0] sm:$0xff] %v1786_v22  ;;  %v1788_v15 = vadd.f32 %v1724_v55, %v4952_v17  ;;  %v4963_v30 = vsel %vm1597_vm1, 0.0, %v4618_v37  ;;  %vm1598_vm2 = vmor %vm1532_vm15, %vm1570_vm0  ;;  %v1728_v55 = vld [vmem:[#allocation2 + $0xe0] sm:$0xff]  ;;  %v1485_v37 = vadd.s32 %v4652_v18, %v1452_v4  ;;  %v4983_v23 = vadd.s32 %v4652_v18, %v1453_v56 }
 0x1e9   : > { %1851 = vst [vmem:[#allocation2 + $0xb8] sm:$0xff] %v1787_v25  ;;  %v1789_v22 = vadd.f32 %v1725_v0, %v4963_v30  ;;  %v4975_v34 = vsel %vm1598_vm2, 0.0, %v4622_v35  ;;  %vm1599_vm1 = vmor %vm1533_vm5, %vm1571_vm6  ;;  %v1454_v0 = vadd.s32 152, %v4291_v11  ;;  %v1455_v4 = vadd.s32 160, %v4291_v11 }
 0x1ea   : > { %1852 = vst [vmem:[#allocation2 + $0xc0] sm:$0xff] %v1788_v15  ;;  %v1790_v47 = vadd.f32 %v1726_v61, %v4975_v34  ;;  %v4987_v25 = vsel %vm1599_vm1, 0.0, %v4626_v54  ;;  %vm1600_vm15 = vmor %vm1534_vm13, %vm1570_vm0  ;;  %v1730_v61 = vld [vmem:[#allocation2 + $0xf0] sm:$0xff]  ;;  %vm1540_vm13 = vcmp.eq.s32.totalorder %v1485_v37, %v4662_v7  ;;  %vm1541_vm2 = vcmp.eq.s32.totalorder %v1485_v37, %v4674_v39  ;;  %v1737_v37 = vld [vmem:[#allocation2 + $0x128] sm:$0xff] }
 0x1eb   : > { %1853 = vst [vmem:[#allocation2 + $0xc8] sm:$0xff] %v1789_v22  ;;  %v1791_v56 = vadd.f32 %v1727_v45, %v4987_v25  ;;  %v4998_v15 = vsel %vm1600_vm15, 0.0, %v4630_v32  ;;  %vm1601_vm5 = vmor %vm1535_vm9, %vm1571_vm6  ;;  %v1731_v45 = vld [vmem:[#allocation2 + $0xf8] sm:$0xff]  ;;  %vm1542_vm9 = vcmp.eq.s32.totalorder %v4983_v23, %v4662_v7  ;;  %vm1543_vm15 = vcmp.eq.s32.totalorder %v4983_v23, %v4674_v39 }
 0x1ec   : > { %1854 = vst [vmem:[#allocation2 + $0xd0] sm:$0xff] %v1790_v47  ;;  %v1792_v54 = vadd.f32 %v1728_v55, %v4998_v15  ;;  %v5009_v22 = vsel %vm1601_vm5, 0.0, %v4634_v20  ;;  %vm1602_vm1 = vmor %vm1536_vm14, %vm1570_vm0  ;;  %v1732_v55 = vld [vmem:[#allocation2 + $0x100] sm:$0xff]  ;;  %v1487_v20 = vadd.s32 %v4652_v18, %v1454_v0  ;;  %v5029_v32 = vadd.s32 %v4652_v18, %v1455_v4 }
 0x1ed   : > { %1855 = vst [vmem:[#allocation2 + $0xd8] sm:$0xff] %v1791_v56  ;;  %v1793_v58 = vadd.f32 %v1729_v24, %v5009_v22  ;;  %v5021_v47 = vsel %vm1602_vm1, 0.0, %v4638_v29  ;;  %vm1603_vm5 = vmor %vm1537_vm10, %vm1571_vm6  ;;  %v1456_v24 = vadd.s32 168, %v4291_v11  ;;  %v1457_v0 = vadd.s32 176, %v4291_v11 }
 0x1ee   : > { %1856 = vst [vmem:[#allocation2 + $0xe0] sm:$0xff] %v1792_v54  ;;  %v1794_v35 = vadd.f32 %v1730_v61, %v5021_v47  ;;  %v5033_v56 = vsel %vm1603_vm5, 0.0, %v4642_v44  ;;  %vm1604_vm14 = vmor %vm1538_vm12, %vm1570_vm0  ;;  %v1734_v61 = vld [vmem:[#allocation2 + $0x110] sm:$0xff]  ;;  %vm1544_vm12 = vcmp.eq.s32.totalorder %v1487_v20, %v4662_v7  ;;  %vm1545_vm1 = vcmp.eq.s32.totalorder %v1487_v20, %v4674_v39  ;;  %v1741_v20 = vld [vmem:[#allocation2 + $0x148] sm:$0xff] }
 0x1ef   : > { %1857 = vst [vmem:[#allocation2 + $0xe8] sm:$0xff] %v1793_v58  ;;  %v1795_v4 = vadd.f32 %v1731_v45, %v5033_v56  ;;  %v5044_v54 = vsel %vm1604_vm14, 0.0, %v4520_v57  ;;  %vm1605_vm10 = vmor %vm1539_vm11, %vm1571_vm6  ;;  %v1735_v45 = vld [vmem:[#allocation2 + $0x118] sm:$0xff]  ;;  %vm1546_vm11 = vcmp.eq.s32.totalorder %v5029_v32, %v4662_v7  ;;  %vm1547_vm14 = vcmp.eq.s32.totalorder %v5029_v32, %v4674_v39 }
 0x1f0   : > { %1858 = vst [vmem:[#allocation2 + $0xf0] sm:$0xff] %v1794_v35  ;;  %v1796_v44 = vadd.f32 %v1732_v55, %v5044_v54  ;;  %v5055_v58 = vsel %vm1605_vm10, 0.0, %v4524_v5  ;;  %vm1606_vm5 = vmor %vm1540_vm13, %vm1570_vm0  ;;  %v1736_v55 = vld [vmem:[#allocation2 + $0x120] sm:$0xff]  ;;  %v1489_v5 = vadd.s32 %v4652_v18, %v1456_v24  ;;  %v5075_v57 = vadd.s32 %v4652_v18, %v1457_v0 }
 0x1f1   : > { %1859 = vst [vmem:[#allocation2 + $0xf8] sm:$0xff] %v1795_v4  ;;  %v1797_v38 = vadd.f32 %v1733_v16, %v5055_v58  ;;  %v5067_v35 = vsel %vm1606_vm5, 0.0, %v4528_v50  ;;  %vm1607_vm10 = vmor %vm1541_vm2, %vm1571_vm6  ;;  %v1458_v16 = vadd.s32 184, %v4291_v11  ;;  %v1459_v24 = vadd.s32 192, %v4291_v11 }
 0x1f2   : > { %1860 = vst [vmem:[#allocation2 + $0x100] sm:$0xff] %v1796_v44  ;;  %v1798_v29 = vadd.f32 %v1734_v61, %v5067_v35  ;;  %v5079_v4 = vsel %vm1607_vm10, 0.0, %v4532_v60  ;;  %vm1608_vm13 = vmor %vm1542_vm9, %vm1570_vm0  ;;  %v1738_v61 = vld [vmem:[#allocation2 + $0x130] sm:$0xff]  ;;  %vm1548_vm9 = vcmp.eq.s32.totalorder %v1489_v5, %v4662_v7  ;;  %vm1549_vm5 = vcmp.eq.s32.totalorder %v1489_v5, %v4674_v39  ;;  %v1745_v5 = vld [vmem:[#allocation2 + $0x168] sm:$0xff] }
 0x1f3   : > { %1861 = vst [vmem:[#allocation2 + $0x108] sm:$0xff] %v1797_v38  ;;  %v1799_v0 = vadd.f32 %v1735_v45, %v5079_v4  ;;  %v5090_v44 = vsel %vm1608_vm13, 0.0, %v4536_v48  ;;  %vm1609_vm2 = vmor %vm1543_vm15, %vm1571_vm6  ;;  %v1739_v45 = vld [vmem:[#allocation2 + $0x138] sm:$0xff]  ;;  %vm1550_vm15 = vcmp.eq.s32.totalorder %v5075_v57, %v4662_v7  ;;  %vm1551_vm13 = vcmp.eq.s32.totalorder %v5075_v57, %v4674_v39 }
 0x1f4   : > { %1862 = vst [vmem:[#allocation2 + $0x110] sm:$0xff] %v1798_v29  ;;  %v1800_v60 = vadd.f32 %v1736_v55, %v5090_v44  ;;  %v5101_v38 = vsel %vm1609_vm2, 0.0, %v4540_v46  ;;  %vm1610_vm10 = vmor %vm1544_vm12, %vm1570_vm0  ;;  %v1740_v55 = vld [vmem:[#allocation2 + $0x140] sm:$0xff]  ;;  %v1491_v46 = vadd.s32 %v4652_v18, %v1458_v16  ;;  %v5121_v48 = vadd.s32 %v4652_v18, %v1459_v24 }
 0x1f5   : > { %6592 = vst [vmem:[#allocation104_spill] sm:$0xff] %v5101_v38  ;;  %1863 = vst [vmem:[#allocation2 + $0x118] sm:$0xff] %v1799_v0  ;;  %v1801_v23 = vadd.f32 %v1737_v37, %v5101_v38  ;;  %v5113_v29 = vsel %vm1610_vm10, 0.0, %v4544_v1  ;;  %v1460_v37 = vadd.s32 200, %v4291_v11  ;;  %v1461_v16 = vadd.s32 208, %v4291_v11 }
 0x1f6   : > { %6593 = vst [vmem:[#allocation105_spill] sm:$0xff] %v5113_v29  ;;  %vm1611_vm2 = vmor %vm1545_vm1, %vm1571_vm6  ;;  %v1802_v50 = vadd.f32 %v1738_v61, %v5113_v29  ;;  %v1742_v61 = vld [vmem:[#allocation2 + $0x150] sm:$0xff]  ;;  %vm1553_vm10 = vcmp.eq.s32.totalorder %v1491_v46, %v4674_v39  ;;  %v6630_v29 = vld [vmem:[#allocation91_spill] sm:$0xff] }
 0x1f7   : > { %1864 = vst [vmem:[#allocation2 + $0x120] sm:$0xff] %v1800_v60  ;;  %v5125_v0 = vsel %vm1611_vm2, 0.0, %v4548_v49  ;;  %vm1612_vm12 = vmor %vm1546_vm11, %vm1570_vm0  ;;  %vm1552_vm11 = vcmp.eq.s32.totalorder %v1491_v46, %v4662_v7  ;;  %v1749_v46 = vld [vmem:[#allocation2 + $0x188] sm:$0xff] }
 0x1f8   : > { %6594 = vst [vmem:[#allocation106_spill] sm:$0xff] %v5125_v0  ;;  %1865 = vst [vmem:[#allocation2 + $0x128] sm:$0xff] %v1801_v23  ;;  %v1803_v24 = vadd.f32 %v1739_v45, %v5125_v0  ;;  %v5136_v60 = vsel %vm1612_vm12, 0.0, %v4552_v8  ;;  %v1743_v45 = vld [vmem:[#allocation2 + $0x158] sm:$0xff]  ;;  %vm1555_vm12 = vcmp.eq.s32.totalorder %v5121_v48, %v4674_v39  ;;  %v5167_v8 = vadd.s32 %v4652_v18, %v1461_v16 }
 0x1f9   : > { %6595 = vst [vmem:[#allocation107_spill] sm:$0xff] %v5136_v60  ;;  %vm1613_vm1 = vmor %vm1547_vm14, %vm1571_vm6  ;;  %v1804_v49 = vadd.f32 %v1740_v55, %v5136_v60  ;;  %vm1554_vm14 = vcmp.eq.s32.totalorder %v5121_v48, %v4662_v7  ;;  %v1744_v55 = vld [vmem:[#allocation2 + $0x160] sm:$0xff] }
 0x1fa   : > { %1866 = vst [vmem:[#allocation2 + $0x130] sm:$0xff] %v1802_v50  ;;  %v5147_v23 = vsel %vm1613_vm1, 0.0, %v4556_v6  ;;  %vm1614_vm2 = vmor %vm1548_vm9, %vm1570_vm0  ;;  %v1493_v6 = vadd.s32 %v4652_v18, %v1460_v37  ;;  %v1463_v37 = vadd.s32 224, %v4291_v11 }
 0x1fb   : > { %6596 = vst [vmem:[#allocation108_spill] sm:$0xff] %v5147_v23  ;;  %1867 = vst [vmem:[#allocation2 + $0x138] sm:$0xff] %v1803_v24  ;;  %v1805_v50 = vadd.f32 %v1741_v20, %v5147_v23  ;;  %v5159_v32 = vsel %vm1614_vm2, 0.0, %v4560_v42  ;;  %v1462_v20 = vadd.s32 216, %v4291_v11  ;;  %v1894_v23 = vld [vmem:[#allocation3 + $0x10] sm:$0xff] }
 0x1fc   : > { %6597 = vst [vmem:[#allocation109_spill] sm:$0xff] %v5159_v32  ;;  %vm1615_vm1 = vmor %vm1549_vm5, %vm1571_vm6  ;;  %v1806_v1 = vadd.f32 %v1742_v61, %v5159_v32  ;;  %v1746_v61 = vld [vmem:[#allocation2 + $0x170] sm:$0xff]  ;;  %vm1557_vm2 = vcmp.eq.s32.totalorder %v1493_v6, %v4674_v39 }
 0x1fd   : > { %1868 = vst [vmem:[#allocation2 + $0x140] sm:$0xff] %v1804_v49  ;;  %v5171_v24 = vsel %vm1615_vm1, 0.0, %v4564_v33  ;;  %vm1616_vm9 = vmor %vm1550_vm15, %vm1570_vm0  ;;  %vm1556_vm15 = vcmp.eq.s32.totalorder %v1493_v6, %v4662_v7  ;;  %v1753_v6 = vld [vmem:[#allocation2 + $0x1a8] sm:$0xff] }
 0x1fe   : > { %6598 = vst [vmem:[#allocation110_spill] sm:$0xff] %v5171_v24  ;;  %1869 = vst [vmem:[#allocation2 + $0x148] sm:$0xff] %v1805_v50  ;;  %v1807_v16 = vadd.f32 %v1743_v45, %v5171_v24  ;;  %v5182_v49 = vsel %vm1616_vm9, 0.0, %v4568_v52  ;;  %v6600_v50 = vld [vmem:[#allocation65_spill] sm:$0xff]  ;;  %v1747_v45 = vld [vmem:[#allocation2 + $0x178] sm:$0xff]  ;;  %vm1559_vm9 = vcmp.eq.s32.totalorder %v5167_v8, %v4674_v39  ;;  %v1495_v52 = vadd.s32 %v4652_v18, %v1462_v20 }
 0x1ff   : > { %6599 = vst [vmem:[#allocation111_spill] sm:$0xff] %v5182_v49  ;;  %vm1617_vm5 = vmor %vm1551_vm13, %vm1571_vm6  ;;  %v1808_v33 = vadd.f32 %v1744_v55, %v5182_v49  ;;  %vm1558_vm13 = vcmp.eq.s32.totalorder %v5167_v8, %v4662_v7  ;;  %v5213_v49 = vadd.s32 %v4652_v18, %v1463_v37  ;;  %v1465_v20 = vadd.s32 240, %v4291_v11 }
 0x200   : > { %1870 = vst [vmem:[#allocation2 + $0x150] sm:$0xff] %v1806_v1  ;;  %v5193_v42 = vsel %vm1617_vm5, 0.0, %v6600_v50  ;;  %vm1618_vm1 = vmor %vm1552_vm11, %vm1570_vm0  ;;  %v6602_v1 = vld [vmem:[#allocation67_spill] sm:$0xff]  ;;  %v1748_v50 = vld [vmem:[#allocation2 + $0x180] sm:$0xff] }
 0x201   : > { %6601 = vst [vmem:[#allocation112_spill] sm:$0xff] %v5193_v42  ;;  %1871 = vst [vmem:[#allocation2 + $0x158] sm:$0xff] %v1807_v16  ;;  %v1809_v57 = vadd.f32 %v1745_v5, %v5193_v42  ;;  %v5205_v55 = vsel %vm1618_vm1, 0.0, %v6602_v1  ;;  %v6604_v16 = vld [vmem:[#allocation69_spill] sm:$0xff]  ;;  %v1464_v5 = vadd.s32 232, %v4291_v11  ;;  %vm1561_vm1 = vcmp.eq.s32.totalorder %v1495_v52, %v4674_v39 }
 0x202   : > { %6603 = vst [vmem:[#allocation113_spill] sm:$0xff] %v5205_v55  ;;  %vm1619_vm5 = vmor %vm1553_vm10, %vm1571_vm6  ;;  %v1810_v24 = vadd.f32 %v1746_v61, %v5205_v55  ;;  %v1750_v61 = vld [vmem:[#allocation2 + $0x190] sm:$0xff] }
 0x203   : > { %1872 = vst [vmem:[#allocation2 + $0x160] sm:$0xff] %v1808_v33  ;;  %v5217_v32 = vsel %vm1619_vm5, 0.0, %v6604_v16  ;;  %vm1620_vm11 = vmor %vm1554_vm14, %vm1570_vm0  ;;  %v6606_v33 = vld [vmem:[#allocation71_spill] sm:$0xff]  ;;  %vm1560_vm14 = vcmp.eq.s32.totalorder %v1495_v52, %v4662_v7  ;;  %v1757_v52 = vld [vmem:[#allocation2 + $0x1c8] sm:$0xff] }
 0x204   : > { %6605 = vst [vmem:[#allocation114_spill] sm:$0xff] %v5217_v32  ;;  %1873 = vst [vmem:[#allocation2 + $0x168] sm:$0xff] %v1809_v57  ;;  %v1811_v37 = vadd.f32 %v1747_v45, %v5217_v32  ;;  %v5228_v1 = vsel %vm1620_vm11, 0.0, %v6606_v33  ;;  %v6608_v57 = vld [vmem:[#allocation73_spill] sm:$0xff]  ;;  %v1751_v45 = vld [vmem:[#allocation2 + $0x198] sm:$0xff]  ;;  %vm1563_vm11 = vcmp.eq.s32.totalorder %v5213_v49, %v4674_v39 }
 0x205   : > { %6607 = vst [vmem:[#allocation115_spill] sm:$0xff] %v5228_v1  ;;  %vm1621_vm10 = vmor %vm1555_vm12, %vm1571_vm6  ;;  %v1812_v16 = vadd.f32 %v1748_v50, %v5228_v1  ;;  %vm1562_vm12 = vcmp.eq.s32.totalorder %v5213_v49, %v4662_v7  ;;  %v1752_v33 = vld [vmem:[#allocation2 + $0x1a0] sm:$0xff]  ;;  %v5259_v1 = vadd.s32 %v4652_v18, %v1465_v20  ;;  %v1759_v49 = vld [vmem:[#allocation2 + $0x1d8] sm:$0xff] }
 0x206   : > { %1874 = vst [vmem:[#allocation2 + $0x170] sm:$0xff] %v1810_v24  ;;  %v5239_v55 = vsel %vm1621_vm10, 0.0, %v6608_v57  ;;  %vm1622_vm5 = vmor %vm1556_vm15, %vm1570_vm0  ;;  %v6610_v24 = vld [vmem:[#allocation75_spill] sm:$0xff]  ;;  %v1497_v57 = vadd.s32 %v4652_v18, %v1464_v5  ;;  %v6615_v20 = vld [vmem:[#allocation4_spill] sm:$0xff] }
 0x207   : > { %6609 = vst [vmem:[#allocation116_spill] sm:$0xff] %v5239_v55  ;;  %1875 = vst [vmem:[#allocation2 + $0x178] sm:$0xff] %v1811_v37  ;;  %v1813_v48 = vadd.f32 %v1749_v46, %v5239_v55  ;;  %v5251_v50 = vsel %vm1622_vm5, 0.0, %v6610_v24  ;;  %v6612_v37 = vld [vmem:[#allocation77_spill] sm:$0xff]  ;;  %v1466_v46 = vadd.s32 248, %v4291_v11  ;;  %v1892_v24 = vld [vmem:[#allocation3] sm:$0xff] }
 0x208   : > { %6611 = vst [vmem:[#allocation117_spill] sm:$0xff] %v5251_v50  ;;  %vm1623_vm10 = vmor %vm1557_vm2, %vm1571_vm6  ;;  %v1814_v32 = vadd.f32 %v1750_v61, %v5251_v50  ;;  %v1754_v55 = vld [vmem:[#allocation2 + $0x1b0] sm:$0xff]  ;;  %vm1565_vm5 = vcmp.eq.s32.totalorder %v1497_v57, %v4674_v39  ;;  %v1895_v5 = vld [vmem:[#allocation3 + $0x18] sm:$0xff] }
 0x209   : > { %1876 = vst [vmem:[#allocation2 + $0x180] sm:$0xff] %v1812_v16  ;;  %v5263_v42 = vsel %vm1623_vm10, 0.0, %v6612_v37  ;;  %vm1624_vm15 = vmor %vm1558_vm13, %vm1570_vm0  ;;  %v1956_v16 = vsel %vm1357_vm3, %v4687_v14, 0.0  ;;  %v6616_v37 = vld [vmem:[#allocation79_spill] sm:$0xff]  ;;  %vm1564_vm13 = vcmp.eq.s32.totalorder %v1497_v57, %v4662_v7  ;;  %v6618_v14 = vld [vmem:[#allocation81_spill] sm:$0xff] }
 0x20a   : > { %6613 = vst [vmem:[#allocation118_spill] sm:$0xff] %v5263_v42  ;;  %1877 = vst [vmem:[#allocation2 + $0x188] sm:$0xff] %v1813_v48  ;;  %v1815_v61 = vadd.f32 %v1751_v45, %v5263_v42  ;;  %v5277_v50 = vsel %vm1624_vm15, 0.0, %v6616_v37  ;;  %v1755_v45 = vld [vmem:[#allocation2 + $0x1b8] sm:$0xff]  ;;  %v1756_v37 = vld [vmem:[#allocation2 + $0x1c0] sm:$0xff]  ;;  %vm1567_vm15 = vcmp.eq.s32.totalorder %v5259_v1, %v4674_v39 }
 0x20b   : > { %6617 = vst [vmem:[#allocation119_spill] sm:$0xff] %v5277_v50  ;;  %vm1625_vm2 = vmor %vm1559_vm9, %vm1571_vm6  ;;  %v1816_v11 = vadd.f32 %v1752_v33, %v5277_v50  ;;  %vm1566_vm9 = vcmp.eq.s32.totalorder %v5259_v1, %v4662_v7  ;;  %v2020_v50 = vadd.f32 %v1956_v16, %v1892_v24  ;;  %v1893_v42 = vld [vmem:[#allocation3 + $0x8] sm:$0xff]  ;;  %v6626_v24 = vld [vmem:[#allocation102_spill] sm:$0xff] }
 0x20c   : > { %1878 = vst [vmem:[#allocation2 + $0x190] sm:$0xff] %v1814_v32  ;;  %v5288_v48 = vsel %vm1625_vm2, 0.0, %v6618_v14  ;;  %vm1626_vm10 = vmor %vm1560_vm14, %vm1570_vm0  ;;  %v6620_v32 = vld [vmem:[#allocation83_spill] sm:$0xff]  ;;  %v5307_v14 = vadd.s32 %v4652_v18, %v1466_v46  ;;  %v6625_v18 = vld [vmem:[#allocation5_spill] sm:$0xff] }
 0x20d   : > { %6619 = vst [vmem:[#allocation120_spill] sm:$0xff] %v5288_v48  ;;  %1879 = vst [vmem:[#allocation2 + $0x198] sm:$0xff] %v1815_v61  ;;  %v1817_v8 = vadd.f32 %v1753_v6, %v5288_v48  ;;  %v5300_v33 = vsel %vm1626_vm10, 0.0, %v6620_v32  ;;  %v6622_v61 = vld [vmem:[#allocation85_spill] sm:$0xff]  ;;  %v1758_v6 = vld [vmem:[#allocation2 + $0x1d0] sm:$0xff] }
 0x20e   : > { %6621 = vst [vmem:[#allocation121_spill] sm:$0xff] %v5300_v33  ;;  %vm1627_vm2 = vmor %vm1561_vm1, %vm1571_vm6  ;;  %v1818_v60 = vadd.f32 %v1754_v55, %v5300_v33  ;;  %v6624_v32 = vld [vmem:[#allocation103_spill] sm:$0xff]  ;;  %v1958_v55 = vsel %vm1359_vm7, %v6626_v24, 0.0  ;;  %vm1569_vm10 = vcmp.eq.s32.totalorder %v5307_v14, %v4674_v39  ;;  %v1762_v57 = vld [vmem:[#allocation2 + $0x1f0] sm:$0xff] }
 0x20f   : > { %1880 = vst [vmem:[#allocation2 + $0x1a0] sm:$0xff] %v1816_v11  ;;  %v5311_v0 = vsel %vm1627_vm2, 0.0, %v6622_v61  ;;  %vm1628_vm14 = vmor %vm1562_vm12, %vm1570_vm0  ;;  %v1957_v46 = vsel %vm1358_vm4, %v6624_v32, 0.0  ;;  %v6628_v61 = vld [vmem:[#allocation87_spill] sm:$0xff]  ;;  %vm1568_vm12 = vcmp.eq.s32.totalorder %v5307_v14, %v4662_v7  ;;  %v6629_v32 = vld [vmem:[#allocation89_spill] sm:$0xff]  ;;  %v2022_v48 = vadd.f32 %v1958_v55, %v1894_v23 }
 0x210   : > { %6623 = vst [vmem:[#allocation122_spill] sm:$0xff] %v5311_v0  ;;  %1881 = vst [vmem:[#allocation2 + $0x1a8] sm:$0xff] %v1817_v8  ;;  %v1819_v11 = vadd.f32 %v1755_v45, %v5311_v0  ;;  %v5328_v33 = vsel %vm1628_vm14, 0.0, %v6628_v61  ;;  %v1896_v8 = vld [vmem:[#allocation3 + $0x20] sm:$0xff]  ;;  %v2021_v0 = vadd.f32 %v1957_v46, %v1893_v42  ;;  %v1897_v23 = vld [vmem:[#allocation3 + $0x28] sm:$0xff] }
 0x211   : > { %vm1629_vm1 = vmor %vm1563_vm11, %vm1571_vm6  ;;  %2084 = vst [vmem:[#allocation3] sm:$0xff] %v2020_v50  ;;  %v1820_v45 = vadd.f32 %v1756_v37, %v5328_v33  ;;  %v1760_v61 = vld [vmem:[#allocation2 + $0x1e0] sm:$0xff]  ;;  %v6631_v37 = vld [vmem:[#allocation6_spill] sm:$0xff] }
 0x212   : > { %1882 = vst [vmem:[#allocation2 + $0x1b0] sm:$0xff] %v1818_v60  ;;  %v5341_v24 = vsel %vm1629_vm1, 0.0, %v6629_v32  ;;  %vm1630_vm11 = vmor %vm1564_vm13, %vm1570_vm0  ;;  %v1959_v60 = vsel %vm1360_vm8, %v4714_v12, 0.0  ;;  %vm6632_vm13 = vcmp.eq.s32.totalorder %v6631_v37, %v6615_v20  ;;  %v6633_v46 = vld [vmem:[#allocation93_spill] sm:$0xff]  ;;  %v1900_v32 = vld [vmem:[#allocation3 + $0x40] sm:$0xff] }
 0x213   : > { %1883 = vst [vmem:[#allocation2 + $0x1b8] sm:$0xff] %v1819_v11  ;;  %v1821_v50 = vadd.f32 %v1757_v52, %v5341_v24  ;;  %v5349_v38 = vsel %vm1630_vm11, 0.0, %v6630_v29  ;;  %vm1631_vm2 = vmor %vm1565_vm5, %vm1571_vm6  ;;  %v1960_v42 = vsel %vm6632_vm13, %v4725_v2, 0.0  ;;  %v1898_v52 = vld [vmem:[#allocation3 + $0x30] sm:$0xff]  ;;  %v1761_v12 = vld [vmem:[#allocation2 + $0x1e8] sm:$0xff]  ;;  %v2023_v16 = vadd.f32 %v1959_v60, %v1895_v5 }
 0x214   : > { %1884 = vst [vmem:[#allocation2 + $0x1c0] sm:$0xff] %v1820_v45  ;;  %v1822_v29 = vadd.f32 %v1758_v6, %v5349_v38  ;;  %v5365_v55 = vsel %vm1631_vm2, 0.0, %v6633_v46  ;;  %vm1632_vm5 = vmor %vm1566_vm9, %vm1570_vm0  ;;  %v2024_v2 = vadd.f32 %v1960_v42, %v1896_v8  ;;  %v6634_v45 = vld [vmem:[#allocation95_spill] sm:$0xff]  ;;  %vm6635_vm9 = vcmp.eq.s32.totalorder %v6631_v37, %v6625_v18  ;;  %v1902_v46 = vld [vmem:[#allocation3 + $0x50] sm:$0xff] }
 0x215   : > { %2085 = vst [vmem:[#allocation3 + $0x8] sm:$0xff] %v2021_v0  ;;  %2086 = vst [vmem:[#allocation3 + $0x10] sm:$0xff] %v2022_v48  ;;  %v1823_v11 = vadd.f32 %v1759_v49, %v5365_v55  ;;  %v5374_v6 = vsel %vm1632_vm5, 0.0, %v6634_v45  ;;  %v1961_v0 = vsel %vm6635_vm9, %v4735_v9, 0.0  ;;  %v6636_v48 = vld [vmem:[#allocation8_spill] sm:$0xff]  ;;  %v1899_v8 = vld [vmem:[#allocation3 + $0x38] sm:$0xff] }
 0x216   : > { %1885 = vst [vmem:[#allocation2 + $0x1c8] sm:$0xff] %v1821_v50  ;;  %vm1633_vm14 = vmor %vm1567_vm15, %vm1571_vm6  ;;  %vm6637_vm1 = vcmp.eq.s32.totalorder %v6636_v48, %v6615_v20  ;;  %v1824_v49 = vadd.f32 %v1760_v61, %v5374_v6  ;;  %v6638_v50 = vld [vmem:[#allocation97_spill] sm:$0xff]  ;;  %v1763_v9 = vld [vmem:[#allocation2 + $0x1f8] sm:$0xff]  ;;  %v2025_v1 = vadd.f32 %v1961_v0, %v1897_v23 }
 0x217   : > { %v1962_v5 = vsel %vm6637_vm1, %v4745_v59, 0.0  ;;  %1886 = vst [vmem:[#allocation2 + $0x1d0] sm:$0xff] %v1822_v29  ;;  %v5391_v60 = vsel %vm1633_vm14, 0.0, %v6638_v50  ;;  %vm1634_vm15 = vmor %vm1568_vm12, %vm1570_vm0  ;;  %v1901_v59 = vld [vmem:[#allocation3 + $0x48] sm:$0xff]  ;;  %v6639_v29 = vld [vmem:[#allocation99_spill] sm:$0xff]  ;;  %vm6640_vm0 = vcmp.eq.s32.totalorder %v6636_v48, %v6625_v18 }
 0x218   : > { %2087 = vst [vmem:[#allocation3 + $0x18] sm:$0xff] %v2023_v16  ;;  %2088 = vst [vmem:[#allocation3 + $0x20] sm:$0xff] %v2024_v2  ;;  %v2026_v37 = vadd.f32 %v1962_v5, %v1898_v52  ;;  %v1825_v42 = vadd.f32 %v1761_v12, %v5391_v60  ;;  %v5400_v61 = vsel %vm1634_vm15, 0.0, %v6639_v29  ;;  %v1963_v7 = vsel %vm6640_vm0, %v4757_v53, 0.0  ;;  %v6641_v23 = vld [vmem:[#allocation11_spill] sm:$0xff]  ;;  %v6643_v2 = vld [vmem:[#allocation101_spill] sm:$0xff] }
 0x219   : > { %1887 = vst [vmem:[#allocation2 + $0x1d8] sm:$0xff] %v1823_v11  ;;  %vm1635_vm11 = vmor %vm1569_vm10, %vm1571_vm6  ;;  %vm6642_vm12 = vcmp.eq.s32.totalorder %v6641_v23, %v6615_v20  ;;  %v1903_v12 = vld [vmem:[#allocation3 + $0x58] sm:$0xff]  ;;  %v1826_v16 = vadd.f32 %v1762_v57, %v5400_v61  ;;  %v2027_v39 = vadd.f32 %v1963_v7, %v1899_v8  ;;  %v1904_v45 = vld [vmem:[#allocation3 + $0x60] sm:$0xff]  ;;  %vm6644_vm6 = vcmp.eq.s32.totalorder %v6641_v23, %v6625_v18 }
 0x21a   : > { %v1964_v52 = vsel %vm6642_vm12, %v4768_v26, 0.0  ;;  %1888 = vst [vmem:[#allocation2 + $0x1e0] sm:$0xff] %v1824_v49  ;;  %v5417_v11 = vsel %vm1635_vm11, 0.0, %v6643_v2  ;;  %2089 = vst [vmem:[#allocation3 + $0x28] sm:$0xff] %v2025_v1  ;;  %v1965_v26 = vsel %vm6644_vm6, %v4779_v31, 0.0  ;;  %v6645_v0 = vld [vmem:[#allocation10_spill] sm:$0xff] }
 0x21b   : > { %2090 = vst [vmem:[#allocation3 + $0x30] sm:$0xff] %v2026_v37  ;;  %v2028_v14 = vadd.f32 %v1964_v52, %v1900_v32  ;;  %1889 = vst [vmem:[#allocation2 + $0x1e8] sm:$0xff] %v1825_v42  ;;  %v1827_v53 = vadd.f32 %v1763_v9, %v5417_v11  ;;  %vm6646_vm10 = vcmp.eq.s32.totalorder %v6645_v0, %v6615_v20  ;;  %v1905_v5 = vld [vmem:[#allocation3 + $0x68] sm:$0xff]  ;;  %v1906_v8 = vld [vmem:[#allocation3 + $0x70] sm:$0xff] }
 0x21c   : > { %v1966_v57 = vsel %vm6646_vm10, %v4792_v40, 0.0  ;;  %vm6647_vm2 = vcmp.eq.s32.totalorder %v6645_v0, %v6625_v18  ;;  %v1907_v32 = vld [vmem:[#allocation3 + $0x78] sm:$0xff]  ;;  %1890 = vst [vmem:[#allocation2 + $0x1f0] sm:$0xff] %v1826_v16  ;;  %2091 = vst [vmem:[#allocation3 + $0x38] sm:$0xff] %v2027_v39  ;;  %v2029_v49 = vadd.f32 %v1965_v26, %v1901_v59  ;;  %v6648_v31 = vld [vmem:[#allocation13_spill] sm:$0xff] }
 0x21d   : > { %v1967_v48 = vsel %vm6647_vm2, %v4805_v13, 0.0  ;;  %2092 = vst [vmem:[#allocation3 + $0x40] sm:$0xff] %v2028_v14  ;;  %v2030_v50 = vadd.f32 %v1966_v57, %v1902_v46  ;;  %vm6649_vm13 = vcmp.eq.s32.totalorder %v6648_v31, %v6615_v20  ;;  %v1908_v40 = vld [vmem:[#allocation3 + $0x80] sm:$0xff]  ;;  %1891 = vst [vmem:[#allocation2 + $0x1f8] sm:$0xff] %v1827_v53  ;;  %vm6650_vm5 = vcmp.eq.s32.totalorder %v6648_v31, %v6625_v18  ;;  %v1909_v7 = vld [vmem:[#allocation3 + $0x88] sm:$0xff] }
 0x21e   : > { %v2031_v9 = vadd.f32 %v1967_v48, %v1903_v12  ;;  %v1968_v1 = vsel %vm6649_vm13, %v4815_v41, 0.0  ;;  %v1969_v13 = vsel %vm6650_vm5, %v4825_v10, 0.0  ;;  %v6651_v42 = vld [vmem:[#allocation12_spill] sm:$0xff]  ;;  %v1910_v41 = vld [vmem:[#allocation3 + $0x90] sm:$0xff]  ;;  %v1911_v23 = vld [vmem:[#allocation3 + $0x98] sm:$0xff]  ;;  %2093 = vst [vmem:[#allocation3 + $0x48] sm:$0xff] %v2029_v49 }
 0x21f   : > { %v2032_v37 = vadd.f32 %v1968_v1, %v1904_v45  ;;  %vm6652_vm14 = vcmp.eq.s32.totalorder %v6651_v42, %v6615_v20  ;;  %vm6653_vm9 = vcmp.eq.s32.totalorder %v6651_v42, %v6625_v18  ;;  %2094 = vst [vmem:[#allocation3 + $0x50] sm:$0xff] %v2030_v50  ;;  %v2033_v52 = vadd.f32 %v1969_v13, %v1905_v5  ;;  %v6654_v10 = vld [vmem:[#allocation15_spill] sm:$0xff]  ;;  %v6657_v39 = vld [vmem:[#allocation14_spill] sm:$0xff]  ;;  %v1913_v53 = vld [vmem:[#allocation3 + $0xa8] sm:$0xff] }
 0x220   : > { %v1970_v59 = vsel %vm6652_vm14, %v4837_v27, 0.0  ;;  %v1971_v29 = vsel %vm6653_vm9, %v4849_v62, 0.0  ;;  %2095 = vst [vmem:[#allocation3 + $0x58] sm:$0xff] %v2031_v9  ;;  %vm6655_vm1 = vcmp.eq.s32.totalorder %v6654_v10, %v6615_v20  ;;  %v1912_v27 = vld [vmem:[#allocation3 + $0xa0] sm:$0xff]  ;;  %vm6656_vm15 = vcmp.eq.s32.totalorder %v6654_v10, %v6625_v18  ;;  %v1915_v26 = vld [vmem:[#allocation3 + $0xb8] sm:$0xff]  ;;  %v1917_v9 = vld [vmem:[#allocation3 + $0xc8] sm:$0xff] }
 0x221   : > { %v2034_v46 = vadd.f32 %v1970_v59, %v1906_v8  ;;  %v2035_v12 = vadd.f32 %v1971_v29, %v1907_v32  ;;  %v1972_v16 = vsel %vm6655_vm1, %v4860_v19, 0.0  ;;  %2096 = vst [vmem:[#allocation3 + $0x60] sm:$0xff] %v2032_v37  ;;  %v1973_v62 = vsel %vm6656_vm15, %v4871_v63, 0.0  ;;  %v1914_v19 = vld [vmem:[#allocation3 + $0xb0] sm:$0xff]  ;;  %2097 = vst [vmem:[#allocation3 + $0x68] sm:$0xff] %v2033_v52  ;;  %v6660_v63 = vld [vmem:[#allocation17_spill] sm:$0xff] }
 0x222   : > { %v2036_v2 = vadd.f32 %v1972_v16, %v1908_v40  ;;  %vm6658_vm11 = vcmp.eq.s32.totalorder %v6657_v39, %v6615_v20  ;;  %vm6659_vm0 = vcmp.eq.s32.totalorder %v6657_v39, %v6625_v18  ;;  %v2037_v0 = vadd.f32 %v1973_v62, %v1909_v7  ;;  %v6663_v32 = vld [vmem:[#allocation16_spill] sm:$0xff]  ;;  %v1919_v31 = vld [vmem:[#allocation3 + $0xd8] sm:$0xff]  ;;  %v6669_v59 = vld [vmem:[#allocation18_spill] sm:$0xff] }
 0x223   : > { %v1974_v14 = vsel %vm6658_vm11, %v4883_v51, 0.0  ;;  %v1975_v45 = vsel %vm6659_vm0, %v4895_v43, 0.0  ;;  %2098 = vst [vmem:[#allocation3 + $0x70] sm:$0xff] %v2034_v46  ;;  %2099 = vst [vmem:[#allocation3 + $0x78] sm:$0xff] %v2035_v12  ;;  %vm6661_vm12 = vcmp.eq.s32.totalorder %v6660_v63, %v6615_v20  ;;  %v1916_v51 = vld [vmem:[#allocation3 + $0xc0] sm:$0xff]  ;;  %vm6662_vm6 = vcmp.eq.s32.totalorder %v6660_v63, %v6625_v18  ;;  %v1925_v39 = vld [vmem:[#allocation3 + $0x108] sm:$0xff] }
 0x224   : > { %v2038_v57 = vadd.f32 %v1974_v14, %v1910_v41  ;;  %v2039_v48 = vadd.f32 %v1975_v45, %v1911_v23  ;;  %v1976_v5 = vsel %vm6661_vm12, %v4906_v28, 0.0  ;;  %2100 = vst [vmem:[#allocation3 + $0x80] sm:$0xff] %v2036_v2  ;;  %v1977_v43 = vsel %vm6662_vm6, %v4917_v36, 0.0  ;;  %v1918_v28 = vld [vmem:[#allocation3 + $0xd0] sm:$0xff]  ;;  %2101 = vst [vmem:[#allocation3 + $0x88] sm:$0xff] %v2037_v0  ;;  %v6666_v36 = vld [vmem:[#allocation19_spill] sm:$0xff] }
 0x225   : > { %v2040_v8 = vadd.f32 %v1976_v5, %v1912_v27  ;;  %vm6664_vm10 = vcmp.eq.s32.totalorder %v6663_v32, %v6615_v20  ;;  %vm6665_vm2 = vcmp.eq.s32.totalorder %v6663_v32, %v6625_v18  ;;  %v2041_v1 = vadd.f32 %v1977_v43, %v1913_v53  ;;  %v1921_v41 = vld [vmem:[#allocation3 + $0xe8] sm:$0xff]  ;;  %v1923_v23 = vld [vmem:[#allocation3 + $0xf8] sm:$0xff]  ;;  %v6675_v27 = vld [vmem:[#allocation20_spill] sm:$0xff] }
 0x226   : > { %v1978_v49 = vsel %vm6664_vm10, %v4929_v3, 0.0  ;;  %v1979_v50 = vsel %vm6665_vm2, %v4941_v21, 0.0  ;;  %2102 = vst [vmem:[#allocation3 + $0x90] sm:$0xff] %v2038_v57  ;;  %2103 = vst [vmem:[#allocation3 + $0x98] sm:$0xff] %v2039_v48  ;;  %vm6667_vm13 = vcmp.eq.s32.totalorder %v6666_v36, %v6615_v20  ;;  %v1920_v3 = vld [vmem:[#allocation3 + $0xe0] sm:$0xff]  ;;  %vm6668_vm5 = vcmp.eq.s32.totalorder %v6666_v36, %v6625_v18  ;;  %v1927_v14 = vld [vmem:[#allocation3 + $0x118] sm:$0xff] }
 0x227   : > { %v2042_v40 = vadd.f32 %v1978_v49, %v1914_v19  ;;  %v2043_v37 = vadd.f32 %v1979_v50, %v1915_v26  ;;  %v1980_v13 = vsel %vm6667_vm13, %v4952_v17, 0.0  ;;  %2104 = vst [vmem:[#allocation3 + $0xa0] sm:$0xff] %v2040_v8  ;;  %v1981_v21 = vsel %vm6668_vm5, %v4963_v30, 0.0  ;;  %v1922_v17 = vld [vmem:[#allocation3 + $0xf0] sm:$0xff]  ;;  %2105 = vst [vmem:[#allocation3 + $0xa8] sm:$0xff] %v2041_v1  ;;  %v6672_v30 = vld [vmem:[#allocation21_spill] sm:$0xff] }
 0x228   : > { %v2044_v42 = vadd.f32 %v1980_v13, %v1916_v51  ;;  %vm6670_vm14 = vcmp.eq.s32.totalorder %v6669_v59, %v6615_v20  ;;  %vm6671_vm9 = vcmp.eq.s32.totalorder %v6669_v59, %v6625_v18  ;;  %v2045_v52 = vadd.f32 %v1981_v21, %v1917_v9  ;;  %v6681_v57 = vld [vmem:[#allocation22_spill] sm:$0xff]  ;;  %v1929_v5 = vld [vmem:[#allocation3 + $0x128] sm:$0xff]  ;;  %v1931_v51 = vld [vmem:[#allocation3 + $0x138] sm:$0xff] }
 0x229   : > { %v1982_v29 = vsel %vm6670_vm14, %v4975_v34, 0.0  ;;  %v1983_v7 = vsel %vm6671_vm9, %v4987_v25, 0.0  ;;  %2106 = vst [vmem:[#allocation3 + $0xb0] sm:$0xff] %v2042_v40  ;;  %2107 = vst [vmem:[#allocation3 + $0xb8] sm:$0xff] %v2043_v37  ;;  %vm6673_vm1 = vcmp.eq.s32.totalorder %v6672_v30, %v6615_v20  ;;  %v1924_v34 = vld [vmem:[#allocation3 + $0x100] sm:$0xff]  ;;  %vm6674_vm15 = vcmp.eq.s32.totalorder %v6672_v30, %v6625_v18  ;;  %v6691_v40 = vld [vmem:[#allocation106_spill] sm:$0xff] }
 0x22a   : > { %v2046_v46 = vadd.f32 %v1982_v29, %v1918_v28  ;;  %v2047_v12 = vadd.f32 %v1983_v7, %v1919_v31  ;;  %v1984_v10 = vsel %vm6673_vm1, %v4998_v15, 0.0  ;;  %2108 = vst [vmem:[#allocation3 + $0xc0] sm:$0xff] %v2044_v42  ;;  %v1985_v25 = vsel %vm6674_vm15, %v5009_v22, 0.0  ;;  %v1926_v15 = vld [vmem:[#allocation3 + $0x110] sm:$0xff]  ;;  %2109 = vst [vmem:[#allocation3 + $0xc8] sm:$0xff] %v2045_v52  ;;  %v6678_v22 = vld [vmem:[#allocation23_spill] sm:$0xff] }
 0x22b   : > { %v2048_v16 = vadd.f32 %v1984_v10, %v1920_v3  ;;  %vm6676_vm11 = vcmp.eq.s32.totalorder %v6675_v27, %v6615_v20  ;;  %vm6677_vm0 = vcmp.eq.s32.totalorder %v6675_v27, %v6625_v18  ;;  %v2049_v45 = vadd.f32 %v1985_v25, %v1921_v41  ;;  %v6686_v9 = vld [vmem:[#allocation104_spill] sm:$0xff]  ;;  %v6688_v28 = vld [vmem:[#allocation105_spill] sm:$0xff]  ;;  %v1935_v13 = vld [vmem:[#allocation3 + $0x158] sm:$0xff] }
 0x22c   : > { %v1986_v2 = vsel %vm6676_vm11, %v5021_v47, 0.0  ;;  %v1987_v62 = vsel %vm6677_vm0, %v5033_v56, 0.0  ;;  %2110 = vst [vmem:[#allocation3 + $0xd0] sm:$0xff] %v2046_v46  ;;  %2111 = vst [vmem:[#allocation3 + $0xd8] sm:$0xff] %v2047_v12  ;;  %vm6679_vm12 = vcmp.eq.s32.totalorder %v6678_v22, %v6615_v20  ;;  %v1928_v47 = vld [vmem:[#allocation3 + $0x120] sm:$0xff]  ;;  %vm6680_vm6 = vcmp.eq.s32.totalorder %v6678_v22, %v6625_v18  ;;  %v1933_v36 = vld [vmem:[#allocation3 + $0x148] sm:$0xff] }
 0x22d   : > { %v2050_v53 = vadd.f32 %v1986_v2, %v1922_v17  ;;  %v2051_v19 = vadd.f32 %v1987_v62, %v1923_v23  ;;  %v1988_v26 = vsel %vm6679_vm12, %v5044_v54, 0.0  ;;  %2112 = vst [vmem:[#allocation3 + $0xe0] sm:$0xff] %v2048_v16  ;;  %v1989_v56 = vsel %vm6680_vm6, %v5055_v58, 0.0  ;;  %v1930_v54 = vld [vmem:[#allocation3 + $0x130] sm:$0xff]  ;;  %2113 = vst [vmem:[#allocation3 + $0xe8] sm:$0xff] %v2049_v45  ;;  %v6684_v58 = vld [vmem:[#allocation25_spill] sm:$0xff] }
 0x22e   : > { %v2052_v0 = vadd.f32 %v1988_v26, %v1924_v34  ;;  %vm6682_vm10 = vcmp.eq.s32.totalorder %v6681_v57, %v6615_v20  ;;  %vm6683_vm2 = vcmp.eq.s32.totalorder %v6681_v57, %v6625_v18  ;;  %v2053_v8 = vadd.f32 %v1989_v56, %v1925_v39  ;;  %v6689_v31 = vld [vmem:[#allocation24_spill] sm:$0xff]  ;;  %v6693_v59 = vld [vmem:[#allocation107_spill] sm:$0xff]  ;;  %v6698_v46 = vld [vmem:[#allocation109_spill] sm:$0xff] }
 0x22f   : > { %v1990_v48 = vsel %vm6682_vm10, %v5067_v35, 0.0  ;;  %v1991_v63 = vsel %vm6683_vm2, %v5079_v4, 0.0  ;;  %2114 = vst [vmem:[#allocation3 + $0xf0] sm:$0xff] %v2050_v53  ;;  %2115 = vst [vmem:[#allocation3 + $0xf8] sm:$0xff] %v2051_v19  ;;  %vm6685_vm13 = vcmp.eq.s32.totalorder %v6684_v58, %v6615_v20  ;;  %v1932_v35 = vld [vmem:[#allocation3 + $0x140] sm:$0xff]  ;;  %vm6687_vm5 = vcmp.eq.s32.totalorder %v6684_v58, %v6625_v18  ;;  %v6694_v29 = vld [vmem:[#allocation27_spill] sm:$0xff] }
 0x230   : > { %v2054_v43 = vadd.f32 %v1990_v48, %v1926_v15  ;;  %v2055_v32 = vadd.f32 %v1991_v63, %v1927_v14  ;;  %v1992_v49 = vsel %vm6685_vm13, %v5090_v44, 0.0  ;;  %2116 = vst [vmem:[#allocation3 + $0x100] sm:$0xff] %v2052_v0  ;;  %v1993_v4 = vsel %vm6687_vm5, %v6686_v9, 0.0  ;;  %v1934_v44 = vld [vmem:[#allocation3 + $0x150] sm:$0xff]  ;;  %2117 = vst [vmem:[#allocation3 + $0x108] sm:$0xff] %v2053_v8  ;;  %v1936_v41 = vld [vmem:[#allocation3 + $0x160] sm:$0xff] }
 0x231   : > { %v2056_v50 = vadd.f32 %v1992_v49, %v1928_v47  ;;  %vm6690_vm14 = vcmp.eq.s32.totalorder %v6689_v31, %v6615_v20  ;;  %vm6692_vm9 = vcmp.eq.s32.totalorder %v6689_v31, %v6625_v18  ;;  %v2057_v3 = vadd.f32 %v1993_v4, %v1929_v5  ;;  %v6696_v23 = vld [vmem:[#allocation108_spill] sm:$0xff]  ;;  %v6699_v12 = vld [vmem:[#allocation26_spill] sm:$0xff]  ;;  %v1937_v16 = vld [vmem:[#allocation3 + $0x168] sm:$0xff] }
 0x232   : > { %v1994_v1 = vsel %vm6690_vm14, %v6688_v28, 0.0  ;;  %v1995_v37 = vsel %vm6692_vm9, %v6691_v40, 0.0  ;;  %2118 = vst [vmem:[#allocation3 + $0x110] sm:$0xff] %v2054_v43  ;;  %2119 = vst [vmem:[#allocation3 + $0x118] sm:$0xff] %v2055_v32  ;;  %vm6695_vm1 = vcmp.eq.s32.totalorder %v6694_v29, %v6615_v20  ;;  %vm6697_vm15 = vcmp.eq.s32.totalorder %v6694_v29, %v6625_v18  ;;  %v6701_v10 = vld [vmem:[#allocation110_spill] sm:$0xff]  ;;  %v1939_v27 = vld [vmem:[#allocation3 + $0x178] sm:$0xff] }
 0x233   : > { %v2058_v42 = vadd.f32 %v1994_v1, %v1930_v54  ;;  %v2059_v21 = vadd.f32 %v1995_v37, %v1931_v51  ;;  %v1996_v7 = vsel %vm6695_vm1, %v6693_v59, 0.0  ;;  %2120 = vst [vmem:[#allocation3 + $0x120] sm:$0xff] %v2056_v50  ;;  %v1997_v52 = vsel %vm6697_vm15, %v6696_v23, 0.0  ;;  %v1938_v25 = vld [vmem:[#allocation3 + $0x170] sm:$0xff]  ;;  %2121 = vst [vmem:[#allocation3 + $0x128] sm:$0xff] %v2057_v3  ;;  %v6703_v15 = vld [vmem:[#allocation111_spill] sm:$0xff] }
 0x234   : > { %v2060_v17 = vadd.f32 %v1996_v7, %v1932_v35  ;;  %vm6700_vm11 = vcmp.eq.s32.totalorder %v6699_v12, %v6615_v20  ;;  %vm6702_vm0 = vcmp.eq.s32.totalorder %v6699_v12, %v6625_v18  ;;  %v2061_v2 = vadd.f32 %v1997_v52, %v1933_v36  ;;  %v6704_v14 = vld [vmem:[#allocation29_spill] sm:$0xff]  ;;  %v1940_v53 = vld [vmem:[#allocation3 + $0x180] sm:$0xff]  ;;  %v6711_v57 = vld [vmem:[#allocation114_spill] sm:$0xff] }
 0x235   : > { %v1998_v30 = vsel %vm6700_vm11, %v6698_v46, 0.0  ;;  %v1999_v34 = vsel %vm6702_vm0, %v6701_v10, 0.0  ;;  %2122 = vst [vmem:[#allocation3 + $0x130] sm:$0xff] %v2058_v42  ;;  %2123 = vst [vmem:[#allocation3 + $0x138] sm:$0xff] %v2059_v21  ;;  %vm6705_vm12 = vcmp.eq.s32.totalorder %v6704_v14, %v6615_v20  ;;  %v6706_v22 = vld [vmem:[#allocation112_spill] sm:$0xff]  ;;  %vm6707_vm6 = vcmp.eq.s32.totalorder %v6704_v14, %v6625_v18  ;;  %v6708_v47 = vld [vmem:[#allocation113_spill] sm:$0xff] }
 0x236   : > { %v2062_v62 = vadd.f32 %v1998_v30, %v1934_v44  ;;  %v2063_v39 = vadd.f32 %v1999_v34, %v1935_v13  ;;  %v2000_v45 = vsel %vm6705_vm12, %v6703_v15, 0.0  ;;  %2124 = vst [vmem:[#allocation3 + $0x140] sm:$0xff] %v2060_v17  ;;  %v2001_v26 = vsel %vm6707_vm6, %v6706_v22, 0.0  ;;  %v6709_v0 = vld [vmem:[#allocation28_spill] sm:$0xff]  ;;  %v1941_v63 = vld [vmem:[#allocation3 + $0x188] sm:$0xff]  ;;  %v1942_v5 = vld [vmem:[#allocation3 + $0x190] sm:$0xff] }
 0x237   : > { %v2064_v19 = vadd.f32 %v2000_v45, %v1936_v41  ;;  %vm6710_vm10 = vcmp.eq.s32.totalorder %v6709_v0, %v6615_v20  ;;  %vm6712_vm2 = vcmp.eq.s32.totalorder %v6709_v0, %v6625_v18  ;;  %v1943_v54 = vld [vmem:[#allocation3 + $0x198] sm:$0xff]  ;;  %2125 = vst [vmem:[#allocation3 + $0x148] sm:$0xff] %v2061_v2  ;;  %v2065_v51 = vadd.f32 %v2001_v26, %v1937_v16  ;;  %v1944_v35 = vld [vmem:[#allocation3 + $0x1a0] sm:$0xff]  ;;  %v6718_v28 = vld [vmem:[#allocation117_spill] sm:$0xff] }
 0x238   : > { %v2002_v56 = vsel %vm6710_vm10, %v6708_v47, 0.0  ;;  %v2003_v48 = vsel %vm6712_vm2, %v6711_v57, 0.0  ;;  %2126 = vst [vmem:[#allocation3 + $0x150] sm:$0xff] %v2062_v62  ;;  %2127 = vst [vmem:[#allocation3 + $0x158] sm:$0xff] %v2063_v39  ;;  %v6713_v32 = vld [vmem:[#allocation115_spill] sm:$0xff]  ;;  %v6716_v9 = vld [vmem:[#allocation116_spill] sm:$0xff] }
 0x239   : > { %v2066_v8 = vadd.f32 %v2002_v56, %v1938_v25  ;;  %v2067_v43 = vadd.f32 %v2003_v48, %v1939_v27  ;;  %v6714_v58 = vld [vmem:[#allocation31_spill] sm:$0xff]  ;;  %2128 = vst [vmem:[#allocation3 + $0x160] sm:$0xff] %v2064_v19  ;;  %v6719_v31 = vld [vmem:[#allocation30_spill] sm:$0xff]  ;;  %v1945_v36 = vld [vmem:[#allocation3 + $0x1a8] sm:$0xff] }
 0x23a   : > { %vm6715_vm13 = vcmp.eq.s32.totalorder %v6714_v58, %v6615_v20  ;;  %vm6717_vm5 = vcmp.eq.s32.totalorder %v6714_v58, %v6625_v18  ;;  %vm6720_vm14 = vcmp.eq.s32.totalorder %v6719_v31, %v6615_v20  ;;  %v6721_v40 = vld [vmem:[#allocation118_spill] sm:$0xff]  ;;  %vm6722_vm9 = vcmp.eq.s32.totalorder %v6719_v31, %v6625_v18  ;;  %v1947_v13 = vld [vmem:[#allocation3 + $0x1b8] sm:$0xff]  ;;  %2129 = vst [vmem:[#allocation3 + $0x168] sm:$0xff] %v2065_v51  ;;  %v6724_v29 = vld [vmem:[#allocation33_spill] sm:$0xff] }
 0x23b   : > { %v2004_v49 = vsel %vm6715_vm13, %v6713_v32, 0.0  ;;  %v2005_v4 = vsel %vm6717_vm5, %v6716_v9, 0.0  ;;  %v2006_v1 = vsel %vm6720_vm14, %v6718_v28, 0.0  ;;  %v2007_v37 = vsel %vm6722_vm9, %v6721_v40, 0.0  ;;  %v1946_v44 = vld [vmem:[#allocation3 + $0x1b0] sm:$0xff]  ;;  %2130 = vst [vmem:[#allocation3 + $0x170] sm:$0xff] %v2066_v8 }
 0x23c   : > { %v2068_v50 = vadd.f32 %v2004_v49, %v1940_v53  ;;  %2131 = vst [vmem:[#allocation3 + $0x178] sm:$0xff] %v2067_v43  ;;  %v2069_v3 = vadd.f32 %v2005_v4, %v1941_v63  ;;  %v2070_v42 = vadd.f32 %v2006_v1, %v1942_v5  ;;  %v2071_v21 = vadd.f32 %v2007_v37, %v1943_v54  ;;  %v6723_v59 = vld [vmem:[#allocation119_spill] sm:$0xff]  ;;  %v1948_v41 = vld [vmem:[#allocation3 + $0x1c0] sm:$0xff]  ;;  %v6728_v46 = vld [vmem:[#allocation121_spill] sm:$0xff] }
 0x23d   : > { %vm6725_vm1 = vcmp.eq.s32.totalorder %v6724_v29, %v6615_v20  ;;  %v6726_v23 = vld [vmem:[#allocation120_spill] sm:$0xff]  ;;  %vm6727_vm15 = vcmp.eq.s32.totalorder %v6724_v29, %v6625_v18  ;;  %v6731_v10 = vld [vmem:[#allocation122_spill] sm:$0xff]  ;;  %v1949_v16 = vld [vmem:[#allocation3 + $0x1c8] sm:$0xff] }
 0x23e   : > { %v2008_v7 = vsel %vm6725_vm1, %v6723_v59, 0.0  ;;  %2132 = vst [vmem:[#allocation3 + $0x180] sm:$0xff] %v2068_v50  ;;  %v2009_v52 = vsel %vm6727_vm15, %v6726_v23, 0.0  ;;  %v6729_v12 = vld [vmem:[#allocation32_spill] sm:$0xff]  ;;  %v1950_v25 = vld [vmem:[#allocation3 + $0x1d0] sm:$0xff]  ;;  %v1951_v27 = vld [vmem:[#allocation3 + $0x1d8] sm:$0xff] }
 0x23f   : > { %v2072_v17 = vadd.f32 %v2008_v7, %v1944_v35  ;;  %vm6730_vm11 = vcmp.eq.s32.totalorder %v6729_v12, %v6615_v20  ;;  %vm6732_vm0 = vcmp.eq.s32.totalorder %v6729_v12, %v6625_v18  ;;  %2133 = vst [vmem:[#allocation3 + $0x188] sm:$0xff] %v2069_v3  ;;  %2134 = vst [vmem:[#allocation3 + $0x190] sm:$0xff] %v2070_v42  ;;  %v6733_v15 = vld [vmem:[#allocation35_spill] sm:$0xff]  ;;  %v1952_v45 = vld [vmem:[#allocation3 + $0x1e0] sm:$0xff] }
 0x240   : > { %v2010_v30 = vsel %vm6730_vm11, %v6728_v46, 0.0  ;;  %v2011_v34 = vsel %vm6732_vm0, %v6731_v10, 0.0  ;;  %2135 = vst [vmem:[#allocation3 + $0x198] sm:$0xff] %v2071_v21  ;;  %v2073_v2 = vadd.f32 %v2009_v52, %v1945_v36  ;;  %vm6734_vm12 = vcmp.eq.s32.totalorder %v6733_v15, %v6615_v20  ;;  %v6736_v22 = vld [vmem:[#allocation34_spill] sm:$0xff]  ;;  %v1953_v0 = vld [vmem:[#allocation3 + $0x1e8] sm:$0xff]  ;;  %v1955_v56 = vld [vmem:[#allocation3 + $0x1f8] sm:$0xff] }
 0x241   : > { %v2074_v62 = vadd.f32 %v2010_v30, %v1946_v44  ;;  %v2075_v39 = vadd.f32 %v2011_v34, %v1947_v13  ;;  %v2012_v14 = vsel %vm6734_vm12, %v5328_v33, 0.0  ;;  %2136 = vst [vmem:[#allocation3 + $0x1a0] sm:$0xff] %v2072_v17  ;;  %vm6735_vm6 = vcmp.eq.s32.totalorder %v6733_v15, %v6625_v18  ;;  %v1954_v33 = vld [vmem:[#allocation3 + $0x1f0] sm:$0xff]  ;;  %v6742_v54 = vld [vmem:[#allocation36_spill] sm:$0xff] }
 0x242   : > { %v2076_v53 = vadd.f32 %v2012_v14, %v1948_v41  ;;  %v2013_v19 = vsel %vm6735_vm6, %v5341_v24, 0.0  ;;  %vm6737_vm10 = vcmp.eq.s32.totalorder %v6736_v22, %v6615_v20  ;;  %vm6738_vm2 = vcmp.eq.s32.totalorder %v6736_v22, %v6625_v18  ;;  %2137 = vst [vmem:[#allocation3 + $0x1a8] sm:$0xff] %v2073_v2  ;;  %v6739_v24 = vld [vmem:[#allocation37_spill] sm:$0xff] }
 0x243   : > { %v2014_v26 = vsel %vm6737_vm10, %v5349_v38, 0.0  ;;  %v2015_v47 = vsel %vm6738_vm2, %v5365_v55, 0.0  ;;  %2138 = vst [vmem:[#allocation3 + $0x1b0] sm:$0xff] %v2074_v62  ;;  %2139 = vst [vmem:[#allocation3 + $0x1b8] sm:$0xff] %v2075_v39  ;;  %v2077_v57 = vadd.f32 %v2013_v19, %v1949_v16  ;;  %vm6740_vm13 = vcmp.eq.s32.totalorder %v6739_v24, %v6615_v20 }
 0x244   : > { %v2078_v48 = vadd.f32 %v2014_v26, %v1950_v25  ;;  %v2079_v63 = vadd.f32 %v2015_v47, %v1951_v27  ;;  %v2016_v5 = vsel %vm6740_vm13, %v5374_v6, 0.0  ;;  %2140 = vst [vmem:[#allocation3 + $0x1c0] sm:$0xff] %v2076_v53  ;;  %vm6741_vm5 = vcmp.eq.s32.totalorder %v6739_v24, %v6625_v18 }
 0x245   : > { %v2080_v38 = vadd.f32 %v2016_v5, %v1952_v45  ;;  %v2017_v55 = vsel %vm6741_vm5, %v5391_v60, 0.0  ;;  %vm6743_vm14 = vcmp.eq.s32.totalorder %v6742_v54, %v6615_v20  ;;  %vm6744_vm9 = vcmp.eq.s32.totalorder %v6742_v54, %v6625_v18  ;;  %2141 = vst [vmem:[#allocation3 + $0x1c8] sm:$0xff] %v2077_v57 }
 0x246   : > { %v2018_v51 = vsel %vm6743_vm14, %v5400_v61, 0.0  ;;  %v2019_v8 = vsel %vm6744_vm9, %v5417_v11, 0.0  ;;  %2142 = vst [vmem:[#allocation3 + $0x1d0] sm:$0xff] %v2078_v48  ;;  %2143 = vst [vmem:[#allocation3 + $0x1d8] sm:$0xff] %v2079_v63  ;;  %v2081_v6 = vadd.f32 %v2017_v55, %v1953_v0 }
 0x247   : > { %v2082_v43 = vadd.f32 %v2018_v51, %v1954_v33  ;;  %v2083_v32 = vadd.f32 %v2019_v8, %v1955_v56  ;;  %2144 = vst [vmem:[#allocation3 + $0x1e0] sm:$0xff] %v2080_v38 }
 0x248   : > { %2145 = vst [vmem:[#allocation3 + $0x1e8] sm:$0xff] %v2081_v6 }
 0x249   : > { %2146 = vst [vmem:[#allocation3 + $0x1f0] sm:$0xff] %v2082_v43  ;;  %2147 = vst [vmem:[#allocation3 + $0x1f8] sm:$0xff] %v2083_v32 }
 0x24a PF: > { %2150 = sbr.rel (%p1430_p0) target bundleno = 688 (0x2b0), region = 48  ;;  %v2151_v20 = vld [vmem:[#allocation2] sm:$0xff] (!%p1430_p0)  ;;  %v2152_v18 = vld [vmem:[#allocation2 + $0x8] sm:$0xff] (!%p1430_p0)  ;;  %v2153_v60 = vld [vmem:[#allocation2 + $0x10] sm:$0xff] (!%p1430_p0) }
 0x24b   : > { %v6745_v61 = vld [vmem:[#allocation38_spill] sm:$0xff] (!%p1430_p0)  ;;  %v6747_v58 = vld [vmem:[#allocation4_spill] sm:$0xff] (!%p1430_p0)  ;;  %v6749_v50 = vld [vmem:[#allocation5_spill] sm:$0xff] (!%p1430_p0) }
 0x24c   : > { %v5649_v49 = vsel (!%p1430_p0), %vm1357_vm3, %v6745_v61, 0.0  ;;  %v6748_v35 = vld [vmem:[#allocation40_spill] sm:$0xff] (!%p1430_p0)  ;;  %v6750_v4 = vld [vmem:[#allocation42_spill] sm:$0xff] (!%p1430_p0)  ;;  %v2215_v1 = vadd.f32 (!%p1430_p0), %v6745_v61, %v2151_v20  ;;  %v2154_v36 = vld [vmem:[#allocation2 + $0x18] sm:$0xff] (!%p1430_p0) }
 0x24d   : > { %v5655_v9 = vsel (!%p1430_p0), %vm1358_vm4, %v6748_v35, 0.0  ;;  %v5661_v31 = vsel (!%p1430_p0), %vm1359_vm7, %v6750_v4, 0.0  ;;  %v2216_v40 = vadd.f32 (!%p1430_p0), %v6748_v35, %v2152_v18  ;;  %v2217_v37 = vadd.f32 (!%p1430_p0), %v6750_v4, %v2153_v60  ;;  %v2155_v44 = vld [vmem:[#allocation2 + $0x20] sm:$0xff] (!%p1430_p0)  ;;  %v2156_v13 = vld [vmem:[#allocation2 + $0x28] sm:$0xff] (!%p1430_p0)  ;;  %v6753_v59 = vld [vmem:[#allocation46_spill] sm:$0xff] (!%p1430_p0) }
 0x24e   : > { %v6752_v3 = vld [vmem:[#allocation44_spill] sm:$0xff] (!%p1430_p0)  ;;  %v2219_v29 = vadd.f32 (!%p1430_p0), %v6753_v59, %v2155_v44  ;;  %v2157_v17 = vld [vmem:[#allocation2 + $0x30] sm:$0xff] (!%p1430_p0)  ;;  %v2158_v23 = vld [vmem:[#allocation2 + $0x38] sm:$0xff] (!%p1430_p0)  ;;  %2279 = vst [vmem:[#allocation2] sm:$0xff] (!%p1430_p0), %v2215_v1 }
 0x24f   : > { %v5670_v42 = vsel (!%p1430_p0), %vm1360_vm8, %v6752_v3, 0.0  ;;  %v2218_v21 = vadd.f32 (!%p1430_p0), %v6752_v3, %v2154_v36  ;;  %v6754_v7 = vld [vmem:[#allocation48_spill] sm:$0xff] (!%p1430_p0)  ;;  %v6755_v46 = vld [vmem:[#allocation6_spill] sm:$0xff] (!%p1430_p0)  ;;  %2280 = vst [vmem:[#allocation2 + $0x8] sm:$0xff] (!%p1430_p0), %v2216_v40  ;;  %2281 = vst [vmem:[#allocation2 + $0x10] sm:$0xff] (!%p1430_p0), %v2217_v37 }
 0x250   : > { %v2220_v41 = vadd.f32 (!%p1430_p0), %v6754_v7, %v2156_v13  ;;  %v2159_v52 = vld [vmem:[#allocation2 + $0x40] sm:$0xff] (!%p1430_p0)  ;;  %vm6756_vm3 = vcmp.eq.s32.totalorder (!%p1430_p0), %v6755_v46, %v6747_v58  ;;  %v6757_v30 = vld [vmem:[#allocation50_spill] sm:$0xff] (!%p1430_p0)  ;;  %v2160_v2 = vld [vmem:[#allocation2 + $0x48] sm:$0xff] (!%p1430_p0)  ;;  %vm6760_vm4 = vcmp.eq.s32.totalorder (!%p1430_p0), %v6755_v46, %v6749_v50  ;;  %2283 = vst [vmem:[#allocation2 + $0x20] sm:$0xff] (!%p1430_p0), %v2219_v29 }
 0x251   : > { %v5679_v12 = vsel %vm6756_vm3, %v6753_v59, 0.0  ;;  %v2221_v10 = vadd.f32 %v6757_v30, %v2157_v17  ;;  %v6758_v34 = vld [vmem:[#allocation52_spill] sm:$0xff]  ;;  %v6759_v25 = vld [vmem:[#allocation54_spill] sm:$0xff]  ;;  %v2162_v39 = vld [vmem:[#allocation2 + $0x58] sm:$0xff]  ;;  %v5688_v15 = vsel %vm6760_vm4, %v6754_v7, 0.0  ;;  %2282 = vst [vmem:[#allocation2 + $0x18] sm:$0xff] %v2218_v21 }
 0x252   : > { %v2222_v16 = vadd.f32 %v6758_v34, %v2158_v23  ;;  %v2223_v27 = vadd.f32 %v6759_v25, %v2159_v52  ;;  %v2161_v62 = vld [vmem:[#allocation2 + $0x50] sm:$0xff]  ;;  %2284 = vst [vmem:[#allocation2 + $0x28] sm:$0xff] %v2220_v41  ;;  %v6761_v14 = vld [vmem:[#allocation56_spill] sm:$0xff]  ;;  %v2164_v0 = vld [vmem:[#allocation2 + $0x68] sm:$0xff] }
 0x253   : > { %v2224_v45 = vadd.f32 %v6761_v14, %v2160_v2  ;;  %v6762_v53 = vld [vmem:[#allocation58_spill] sm:$0xff]  ;;  %v6763_v22 = vld [vmem:[#allocation60_spill] sm:$0xff]  ;;  %2285 = vst [vmem:[#allocation2 + $0x30] sm:$0xff] %v2221_v10  ;;  %v2166_v54 = vld [vmem:[#allocation2 + $0x78] sm:$0xff] }
 0x254   : > { %v2225_v19 = vadd.f32 %v6762_v53, %v2161_v62  ;;  %v2226_v26 = vadd.f32 %v6763_v22, %v2162_v39  ;;  %v2163_v47 = vld [vmem:[#allocation2 + $0x60] sm:$0xff]  ;;  %v2165_v33 = vld [vmem:[#allocation2 + $0x70] sm:$0xff]  ;;  %2286 = vst [vmem:[#allocation2 + $0x38] sm:$0xff] %v2222_v16  ;;  %2287 = vst [vmem:[#allocation2 + $0x40] sm:$0xff] %v2223_v27 }
 0x255   : > { %v6764_v56 = vld [vmem:[#allocation8_spill] sm:$0xff]  ;;  %v6766_v48 = vld [vmem:[#allocation62_spill] sm:$0xff]  ;;  %v2168_v8 = vld [vmem:[#allocation2 + $0x88] sm:$0xff]  ;;  %2288 = vst [vmem:[#allocation2 + $0x48] sm:$0xff] %v2224_v45 }
 0x256   : > { %vm6765_vm7 = vcmp.eq.s32.totalorder %v6764_v56, %v6747_v58  ;;  %v2227_v63 = vadd.f32 %v6766_v48, %v2163_v47  ;;  %v6767_v24 = vld [vmem:[#allocation64_spill] sm:$0xff]  ;;  %v6768_v38 = vld [vmem:[#allocation66_spill] sm:$0xff]  ;;  %vm6769_vm8 = vcmp.eq.s32.totalorder %v6764_v56, %v6749_v50  ;;  %2289 = vst [vmem:[#allocation2 + $0x50] sm:$0xff] %v2225_v19  ;;  %2290 = vst [vmem:[#allocation2 + $0x58] sm:$0xff] %v2226_v26 }
 0x257   : > { %v5697_v57 = vsel %vm6765_vm7, %v6757_v30, 0.0  ;;  %v2228_v5 = vadd.f32 %v6767_v24, %v2164_v0  ;;  %v2229_v55 = vadd.f32 %v6768_v38, %v2165_v33  ;;  %v2167_v51 = vld [vmem:[#allocation2 + $0x80] sm:$0xff]  ;;  %v5706_v6 = vsel %vm6769_vm8, %v6758_v34, 0.0  ;;  %v6771_v20 = vld [vmem:[#allocation70_spill] sm:$0xff]  ;;  %v2170_v35 = vld [vmem:[#allocation2 + $0x98] sm:$0xff] }
 0x258   : > { %v6770_v43 = vld [vmem:[#allocation68_spill] sm:$0xff]  ;;  %v2231_v18 = vadd.f32 %v6771_v20, %v2167_v51  ;;  %v2169_v11 = vld [vmem:[#allocation2 + $0x90] sm:$0xff]  ;;  %v6773_v28 = vld [vmem:[#allocation11_spill] sm:$0xff]  ;;  %2291 = vst [vmem:[#allocation2 + $0x60] sm:$0xff] %v2227_v63 }
 0x259   : > { %v2230_v32 = vadd.f32 %v6770_v43, %v2166_v54  ;;  %v6772_v60 = vld [vmem:[#allocation72_spill] sm:$0xff]  ;;  %vm6774_vm1 = vcmp.eq.s32.totalorder %v6773_v28, %v6747_v58  ;;  %2292 = vst [vmem:[#allocation2 + $0x68] sm:$0xff] %v2228_v5  ;;  %2293 = vst [vmem:[#allocation2 + $0x70] sm:$0xff] %v2229_v55  ;;  %v6775_v40 = vld [vmem:[#allocation74_spill] sm:$0xff]  ;;  %vm6778_vm15 = vcmp.eq.s32.totalorder %v6773_v28, %v6749_v50 }
 0x25a   : > { %v2232_v61 = vadd.f32 %v6772_v60, %v2168_v8  ;;  %v2171_v4 = vld [vmem:[#allocation2 + $0xa0] sm:$0xff]  ;;  %v5715_v1 = vsel %vm6774_vm1, %v6759_v25, 0.0  ;;  %v2233_v37 = vadd.f32 %v6775_v40, %v2169_v11  ;;  %v6777_v13 = vld [vmem:[#allocation78_spill] sm:$0xff]  ;;  %v2172_v21 = vld [vmem:[#allocation2 + $0xa8] sm:$0xff]  ;;  %v5724_v7 = vsel %vm6778_vm15, %v6761_v14, 0.0  ;;  %2295 = vst [vmem:[#allocation2 + $0x80] sm:$0xff] %v2231_v18 }
 0x25b   : > { %v6776_v36 = vld [vmem:[#allocation76_spill] sm:$0xff]  ;;  %v2235_v3 = vadd.f32 %v6777_v13, %v2171_v4  ;;  %v2173_v59 = vld [vmem:[#allocation2 + $0xb0] sm:$0xff]  ;;  %v2174_v29 = vld [vmem:[#allocation2 + $0xb8] sm:$0xff]  ;;  %2294 = vst [vmem:[#allocation2 + $0x78] sm:$0xff] %v2230_v32 }
 0x25c   : > { %v2234_v44 = vadd.f32 %v6776_v36, %v2170_v35  ;;  %2296 = vst [vmem:[#allocation2 + $0x88] sm:$0xff] %v2232_v61  ;;  %v6779_v41 = vld [vmem:[#allocation80_spill] sm:$0xff]  ;;  %v6780_v23 = vld [vmem:[#allocation82_spill] sm:$0xff]  ;;  %v2176_v34 = vld [vmem:[#allocation2 + $0xc8] sm:$0xff] }
 0x25d   : > { %v2236_v17 = vadd.f32 %v6779_v41, %v2172_v21  ;;  %v2237_v52 = vadd.f32 %v6780_v23, %v2173_v59  ;;  %v6781_v46 = vld [vmem:[#allocation84_spill] sm:$0xff]  ;;  %v2177_v16 = vld [vmem:[#allocation2 + $0xd0] sm:$0xff]  ;;  %2297 = vst [vmem:[#allocation2 + $0x90] sm:$0xff] %v2233_v37  ;;  %2299 = vst [vmem:[#allocation2 + $0xa0] sm:$0xff] %v2235_v3 }
 0x25e   : > { %v2238_v30 = vadd.f32 %v6781_v46, %v2174_v29  ;;  %v2175_v10 = vld [vmem:[#allocation2 + $0xc0] sm:$0xff]  ;;  %v6782_v25 = vld [vmem:[#allocation10_spill] sm:$0xff]  ;;  %2298 = vst [vmem:[#allocation2 + $0x98] sm:$0xff] %v2234_v44  ;;  %v2178_v26 = vld [vmem:[#allocation2 + $0xd8] sm:$0xff] }
 0x25f   : > { %vm6783_vm11 = vcmp.eq.s32.totalorder %v6782_v25, %v6747_v58  ;;  %v6784_v2 = vld [vmem:[#allocation86_spill] sm:$0xff]  ;;  %v6785_v39 = vld [vmem:[#allocation88_spill] sm:$0xff]  ;;  %v2180_v0 = vld [vmem:[#allocation2 + $0xe8] sm:$0xff]  ;;  %vm6787_vm0 = vcmp.eq.s32.totalorder %v6782_v25, %v6749_v50  ;;  %2300 = vst [vmem:[#allocation2 + $0xa8] sm:$0xff] %v2236_v17 }
 0x260   : > { %v5733_v27 = vsel %vm6783_vm11, %v6762_v53, 0.0  ;;  %v2239_v62 = vadd.f32 %v6784_v2, %v2175_v10  ;;  %v2240_v14 = vadd.f32 %v6785_v39, %v2176_v34  ;;  %v6786_v45 = vld [vmem:[#allocation90_spill] sm:$0xff]  ;;  %v2179_v47 = vld [vmem:[#allocation2 + $0xe0] sm:$0xff]  ;;  %v5742_v33 = vsel %vm6787_vm0, %v6763_v22, 0.0  ;;  %2301 = vst [vmem:[#allocation2 + $0xb0] sm:$0xff] %v2237_v52  ;;  %2302 = vst [vmem:[#allocation2 + $0xb8] sm:$0xff] %v2238_v30 }
 0x261   : > { %v2241_v19 = vadd.f32 %v6786_v45, %v2177_v16  ;;  %v6788_v53 = vld [vmem:[#allocation92_spill] sm:$0xff]  ;;  %v6789_v63 = vld [vmem:[#allocation94_spill] sm:$0xff]  ;;  %v2182_v8 = vld [vmem:[#allocation2 + $0xf8] sm:$0xff] }
 0x262   : > { %v2242_v56 = vadd.f32 %v6788_v53, %v2178_v26  ;;  %v2243_v5 = vadd.f32 %v6789_v63, %v2179_v47  ;;  %v6790_v55 = vld [vmem:[#allocation96_spill] sm:$0xff]  ;;  %v2181_v51 = vld [vmem:[#allocation2 + $0xf0] sm:$0xff]  ;;  %v6791_v18 = vld [vmem:[#allocation13_spill] sm:$0xff]  ;;  %2303 = vst [vmem:[#allocation2 + $0xc0] sm:$0xff] %v2239_v62 }
 0x263   : > { %v2244_v54 = vadd.f32 %v6790_v55, %v2180_v0  ;;  %v2183_v32 = vld [vmem:[#allocation2 + $0x100] sm:$0xff]  ;;  %vm6792_vm12 = vcmp.eq.s32.totalorder %v6791_v18, %v6747_v58  ;;  %2304 = vst [vmem:[#allocation2 + $0xc8] sm:$0xff] %v2240_v14  ;;  %2305 = vst [vmem:[#allocation2 + $0xd0] sm:$0xff] %v2241_v19  ;;  %v6793_v22 = vld [vmem:[#allocation98_spill] sm:$0xff]  ;;  %vm6796_vm6 = vcmp.eq.s32.totalorder %v6791_v18, %v6749_v50 }
 0x264   : > { %v5751_v61 = vsel %vm6792_vm12, %v6766_v48, 0.0  ;;  %v2245_v11 = vadd.f32 %v6793_v22, %v2181_v51  ;;  %v6794_v35 = vld [vmem:[#allocation100_spill] sm:$0xff]  ;;  %v6795_v28 = vld [vmem:[#allocation39_spill] sm:$0xff]  ;;  %v2184_v44 = vld [vmem:[#allocation2 + $0x108] sm:$0xff]  ;;  %v5760_v59 = vsel %vm6796_vm6, %v6767_v24, 0.0  ;;  %2306 = vst [vmem:[#allocation2 + $0xd8] sm:$0xff] %v2242_v56 }
 0x265   : > { %v2246_v4 = vadd.f32 %v6794_v35, %v2182_v8  ;;  %v2247_v37 = vadd.f32 %v6795_v28, %v2183_v32  ;;  %v2185_v3 = vld [vmem:[#allocation2 + $0x110] sm:$0xff]  ;;  %v2186_v21 = vld [vmem:[#allocation2 + $0x118] sm:$0xff]  ;;  %2307 = vst [vmem:[#allocation2 + $0xe0] sm:$0xff] %v2243_v5  ;;  %2308 = vst [vmem:[#allocation2 + $0xe8] sm:$0xff] %v2244_v54 }
 0x266   : > { %v6797_v48 = vld [vmem:[#allocation41_spill] sm:$0xff]  ;;  %v6798_v17 = vld [vmem:[#allocation43_spill] sm:$0xff]  ;;  %v2187_v34 = vld [vmem:[#allocation2 + $0x120] sm:$0xff]  ;;  %2309 = vst [vmem:[#allocation2 + $0xf0] sm:$0xff] %v2245_v11 }
 0x267   : > { %v2248_v29 = vadd.f32 %v6797_v48, %v2184_v44  ;;  %v2249_v52 = vadd.f32 %v6798_v17, %v2185_v3  ;;  %v6799_v30 = vld [vmem:[#allocation45_spill] sm:$0xff]  ;;  %v2189_v25 = vld [vmem:[#allocation2 + $0x130] sm:$0xff]  ;;  %v6800_v62 = vld [vmem:[#allocation12_spill] sm:$0xff]  ;;  %2310 = vst [vmem:[#allocation2 + $0xf8] sm:$0xff] %v2246_v4 }
 0x268   : > { %v2250_v10 = vadd.f32 %v6799_v30, %v2186_v21  ;;  %v2188_v16 = vld [vmem:[#allocation2 + $0x128] sm:$0xff]  ;;  %vm6801_vm10 = vcmp.eq.s32.totalorder %v6800_v62, %v6747_v58  ;;  %2311 = vst [vmem:[#allocation2 + $0x100] sm:$0xff] %v2247_v37  ;;  %v6802_v24 = vld [vmem:[#allocation47_spill] sm:$0xff]  ;;  %v2191_v54 = vld [vmem:[#allocation2 + $0x140] sm:$0xff]  ;;  %vm6805_vm2 = vcmp.eq.s32.totalorder %v6800_v62, %v6749_v50 }
 0x269   : > { %v5769_v14 = vsel %vm6801_vm10, %v6768_v38, 0.0  ;;  %v2251_v19 = vadd.f32 %v6802_v24, %v2187_v34  ;;  %v6803_v26 = vld [vmem:[#allocation49_spill] sm:$0xff]  ;;  %v6804_v0 = vld [vmem:[#allocation51_spill] sm:$0xff]  ;;  %v5778_v8 = vsel %vm6805_vm2, %v6770_v43, 0.0  ;;  %2312 = vst [vmem:[#allocation2 + $0x108] sm:$0xff] %v2248_v29  ;;  %2313 = vst [vmem:[#allocation2 + $0x110] sm:$0xff] %v2249_v52 }
 0x26a   : > { %v2252_v47 = vadd.f32 %v6803_v26, %v2188_v16  ;;  %v2253_v56 = vadd.f32 %v6804_v0, %v2189_v25  ;;  %v2190_v5 = vld [vmem:[#allocation2 + $0x138] sm:$0xff]  ;;  %v2192_v51 = vld [vmem:[#allocation2 + $0x148] sm:$0xff]  ;;  %2314 = vst [vmem:[#allocation2 + $0x118] sm:$0xff] %v2250_v10  ;;  %v2193_v44 = vld [vmem:[#allocation2 + $0x150] sm:$0xff] }
 0x26b   : > { %v6806_v38 = vld [vmem:[#allocation53_spill] sm:$0xff]  ;;  %v6807_v18 = vld [vmem:[#allocation55_spill] sm:$0xff]  ;;  %v2195_v21 = vld [vmem:[#allocation2 + $0x160] sm:$0xff]  ;;  %2315 = vst [vmem:[#allocation2 + $0x120] sm:$0xff] %v2251_v19 }
 0x26c   : > { %v2254_v32 = vadd.f32 %v6806_v38, %v2190_v5  ;;  %v2255_v11 = vadd.f32 %v6807_v18, %v2191_v54  ;;  %v6808_v4 = vld [vmem:[#allocation57_spill] sm:$0xff]  ;;  %v2194_v3 = vld [vmem:[#allocation2 + $0x158] sm:$0xff]  ;;  %2316 = vst [vmem:[#allocation2 + $0x128] sm:$0xff] %v2252_v47  ;;  %2317 = vst [vmem:[#allocation2 + $0x130] sm:$0xff] %v2253_v56 }
 0x26d   : > { %v2256_v37 = vadd.f32 %v6808_v4, %v2192_v51  ;;  %v6809_v34 = vld [vmem:[#allocation15_spill] sm:$0xff]  ;;  %v6812_v52 = vld [vmem:[#allocation61_spill] sm:$0xff]  ;;  %v2197_v54 = vld [vmem:[#allocation2 + $0x170] sm:$0xff] }
 0x26e   : > { %vm6810_vm13 = vcmp.eq.s32.totalorder %v6809_v34, %v6747_v58  ;;  %v6811_v43 = vld [vmem:[#allocation59_spill] sm:$0xff]  ;;  %v2258_v10 = vadd.f32 %v6812_v52, %v2194_v3  ;;  %v2196_v5 = vld [vmem:[#allocation2 + $0x168] sm:$0xff]  ;;  %vm6814_vm5 = vcmp.eq.s32.totalorder %v6809_v34, %v6749_v50  ;;  %2318 = vst [vmem:[#allocation2 + $0x138] sm:$0xff] %v2254_v32  ;;  %2319 = vst [vmem:[#allocation2 + $0x140] sm:$0xff] %v2255_v11 }
 0x26f   : > { %v5787_v16 = vsel %vm6810_vm13, %v6771_v20, 0.0  ;;  %v2257_v29 = vadd.f32 %v6811_v43, %v2193_v44  ;;  %v6813_v25 = vld [vmem:[#allocation63_spill] sm:$0xff]  ;;  %v5796_v4 = vsel %vm6814_vm5, %v6772_v60, 0.0  ;;  %2320 = vst [vmem:[#allocation2 + $0x148] sm:$0xff] %v2256_v37  ;;  %v6815_v20 = vld [vmem:[#allocation65_spill] sm:$0xff]  ;;  %v2199_v52 = vld [vmem:[#allocation2 + $0x180] sm:$0xff] }
 0x270   : > { %v2259_v62 = vadd.f32 %v6813_v25, %v2195_v21  ;;  %v2198_v51 = vld [vmem:[#allocation2 + $0x178] sm:$0xff]  ;;  %v2260_v19 = vadd.f32 %v6815_v20, %v2196_v5  ;;  %v6817_v44 = vld [vmem:[#allocation69_spill] sm:$0xff]  ;;  %v2201_v25 = vld [vmem:[#allocation2 + $0x190] sm:$0xff]  ;;  %2322 = vst [vmem:[#allocation2 + $0x158] sm:$0xff] %v2258_v10 }
 0x271   : > { %v6816_v47 = vld [vmem:[#allocation67_spill] sm:$0xff]  ;;  %v2262_v3 = vadd.f32 %v6817_v44, %v2198_v51  ;;  %v2200_v21 = vld [vmem:[#allocation2 + $0x188] sm:$0xff]  ;;  %v6818_v43 = vld [vmem:[#allocation14_spill] sm:$0xff]  ;;  %2321 = vst [vmem:[#allocation2 + $0x150] sm:$0xff] %v2257_v29 }
 0x272   : > { %v2261_v56 = vadd.f32 %v6816_v47, %v2197_v54  ;;  %vm6819_vm14 = vcmp.eq.s32.totalorder %v6818_v43, %v6747_v58  ;;  %2323 = vst [vmem:[#allocation2 + $0x160] sm:$0xff] %v2259_v62  ;;  %v6820_v60 = vld [vmem:[#allocation71_spill] sm:$0xff]  ;;  %v6821_v11 = vld [vmem:[#allocation73_spill] sm:$0xff]  ;;  %v2203_v51 = vld [vmem:[#allocation2 + $0x1a0] sm:$0xff]  ;;  %vm6823_vm9 = vcmp.eq.s32.totalorder %v6818_v43, %v6749_v50 }
 0x273   : > { %v5805_v18 = vsel %vm6819_vm14, %v6775_v40, 0.0  ;;  %v2263_v32 = vadd.f32 %v6820_v60, %v2199_v52  ;;  %v2264_v37 = vadd.f32 %v6821_v11, %v2200_v21  ;;  %v6822_v34 = vld [vmem:[#allocation75_spill] sm:$0xff]  ;;  %v2204_v44 = vld [vmem:[#allocation2 + $0x1a8] sm:$0xff]  ;;  %v5814_v47 = vsel %vm6823_vm9, %v6776_v36, 0.0  ;;  %2324 = vst [vmem:[#allocation2 + $0x168] sm:$0xff] %v2260_v19  ;;  %2326 = vst [vmem:[#allocation2 + $0x178] sm:$0xff] %v2262_v3 }
 0x274   : > { %v2265_v5 = vadd.f32 %v6822_v34, %v2201_v25  ;;  %v2202_v54 = vld [vmem:[#allocation2 + $0x198] sm:$0xff]  ;;  %2325 = vst [vmem:[#allocation2 + $0x170] sm:$0xff] %v2261_v56  ;;  %v6824_v40 = vld [vmem:[#allocation77_spill] sm:$0xff]  ;;  %v2205_v11 = vld [vmem:[#allocation2 + $0x1b0] sm:$0xff] }
 0x275   : > { %v2266_v29 = vadd.f32 %v6824_v40, %v2202_v54  ;;  %v6825_v10 = vld [vmem:[#allocation79_spill] sm:$0xff]  ;;  %v6826_v62 = vld [vmem:[#allocation81_spill] sm:$0xff]  ;;  %v2207_v34 = vld [vmem:[#allocation2 + $0x1c0] sm:$0xff]  ;;  %2327 = vst [vmem:[#allocation2 + $0x180] sm:$0xff] %v2263_v32 }
 0x276   : > { %v2267_v52 = vadd.f32 %v6825_v10, %v2203_v51  ;;  %v2268_v21 = vadd.f32 %v6826_v62, %v2204_v44  ;;  %v2206_v25 = vld [vmem:[#allocation2 + $0x1b8] sm:$0xff]  ;;  %v6827_v60 = vld [vmem:[#allocation17_spill] sm:$0xff]  ;;  %2328 = vst [vmem:[#allocation2 + $0x188] sm:$0xff] %v2264_v37  ;;  %2329 = vst [vmem:[#allocation2 + $0x190] sm:$0xff] %v2265_v5 }
 0x277   : > { %vm6828_vm3 = vcmp.eq.s32.totalorder %v6827_v60, %v6747_v58  ;;  %v6829_v36 = vld [vmem:[#allocation83_spill] sm:$0xff]  ;;  %v6830_v19 = vld [vmem:[#allocation85_spill] sm:$0xff]  ;;  %v2209_v44 = vld [vmem:[#allocation2 + $0x1d0] sm:$0xff]  ;;  %vm6832_vm4 = vcmp.eq.s32.totalorder %v6827_v60, %v6749_v50  ;;  %2330 = vst [vmem:[#allocation2 + $0x198] sm:$0xff] %v2266_v29 }
 0x278   : > { %v5823_v20 = vsel %vm6828_vm3, %v6777_v13, 0.0  ;;  %v2269_v43 = vadd.f32 %v6829_v36, %v2205_v11  ;;  %v2270_v56 = vadd.f32 %v6830_v19, %v2206_v25  ;;  %v6831_v3 = vld [vmem:[#allocation87_spill] sm:$0xff]  ;;  %v2208_v51 = vld [vmem:[#allocation2 + $0x1c8] sm:$0xff]  ;;  %v5832_v10 = vsel %vm6832_vm4, %v6779_v41, 0.0  ;;  %2331 = vst [vmem:[#allocation2 + $0x1a0] sm:$0xff] %v2267_v52  ;;  %2332 = vst [vmem:[#allocation2 + $0x1a8] sm:$0xff] %v2268_v21 }
 0x279   : > { %v2271_v54 = vadd.f32 %v6831_v3, %v2207_v34  ;;  %v2210_v62 = vld [vmem:[#allocation2 + $0x1d8] sm:$0xff]  ;;  %v6833_v13 = vld [vmem:[#allocation89_spill] sm:$0xff]  ;;  %v2211_v19 = vld [vmem:[#allocation2 + $0x1e0] sm:$0xff] }
 0x27a   : > { %v2272_v32 = vadd.f32 %v6833_v13, %v2208_v51  ;;  %v6834_v37 = vld [vmem:[#allocation91_spill] sm:$0xff]  ;;  %v6835_v5 = vld [vmem:[#allocation93_spill] sm:$0xff]  ;;  %v2213_v3 = vld [vmem:[#allocation2 + $0x1f0] sm:$0xff]  ;;  %2333 = vst [vmem:[#allocation2 + $0x1b0] sm:$0xff] %v2269_v43 }
 0x27b   : > { %v2273_v11 = vadd.f32 %v6834_v37, %v2209_v44  ;;  %v2274_v25 = vadd.f32 %v6835_v5, %v2210_v62  ;;  %v2212_v34 = vld [vmem:[#allocation2 + $0x1e8] sm:$0xff]  ;;  %v6836_v36 = vld [vmem:[#allocation16_spill] sm:$0xff]  ;;  %2334 = vst [vmem:[#allocation2 + $0x1b8] sm:$0xff] %v2270_v56  ;;  %2335 = vst [vmem:[#allocation2 + $0x1c0] sm:$0xff] %v2271_v54 }
 0x27c   : > { %vm6837_vm7 = vcmp.eq.s32.totalorder %v6836_v36, %v6747_v58  ;;  %v6838_v41 = vld [vmem:[#allocation95_spill] sm:$0xff]  ;;  %v6839_v29 = vld [vmem:[#allocation97_spill] sm:$0xff]  ;;  %v2343_v62 = vld [vmem:[#allocation3] sm:$0xff]  ;;  %vm6841_vm8 = vcmp.eq.s32.totalorder %v6836_v36, %v6749_v50  ;;  %2336 = vst [vmem:[#allocation2 + $0x1c8] sm:$0xff] %v2272_v32 }
 0x27d   : > { %v5841_v40 = vsel %vm6837_vm7, %v6780_v23, 0.0  ;;  %v2275_v60 = vadd.f32 %v6838_v41, %v2211_v19  ;;  %v2276_v52 = vadd.f32 %v6839_v29, %v2212_v34  ;;  %v6840_v21 = vld [vmem:[#allocation99_spill] sm:$0xff]  ;;  %v2344_v5 = vld [vmem:[#allocation3 + $0x8] sm:$0xff]  ;;  %v5850_v37 = vsel %vm6841_vm8, %v6781_v46, 0.0  ;;  %2337 = vst [vmem:[#allocation2 + $0x1d0] sm:$0xff] %v2273_v11  ;;  %2338 = vst [vmem:[#allocation2 + $0x1d8] sm:$0xff] %v2274_v25 }
 0x27e   : > { %v2277_v51 = vadd.f32 %v6840_v21, %v2213_v3  ;;  %v2214_v44 = vld [vmem:[#allocation2 + $0x1f8] sm:$0xff]  ;;  %v6842_v23 = vld [vmem:[#allocation101_spill] sm:$0xff]  ;;  %v2471_v19 = vadd.f32 %v5649_v49, %v2343_v62  ;;  %v2472_v56 = vadd.f32 %v5655_v9, %v2344_v5  ;;  %v2345_v54 = vld [vmem:[#allocation3 + $0x10] sm:$0xff] }
 0x27f   : > { %v2278_v43 = vadd.f32 %v6842_v23, %v2214_v44  ;;  %v2346_v3 = vld [vmem:[#allocation3 + $0x18] sm:$0xff]  ;;  %v2347_v34 = vld [vmem:[#allocation3 + $0x20] sm:$0xff]  ;;  %2339 = vst [vmem:[#allocation2 + $0x1e0] sm:$0xff] %v2275_v60  ;;  %2340 = vst [vmem:[#allocation2 + $0x1e8] sm:$0xff] %v2276_v52  ;;  %v2473_v46 = vadd.f32 %v5661_v31, %v2345_v54 }
 0x280   : > { %v6843_v21 = vld [vmem:[#allocation19_spill] sm:$0xff]  ;;  %2341 = vst [vmem:[#allocation2 + $0x1f0] sm:$0xff] %v2277_v51  ;;  %v2474_v36 = vadd.f32 %v5670_v42, %v2346_v3  ;;  %v2475_v49 = vadd.f32 %v5679_v12, %v2347_v34  ;;  %v2348_v32 = vld [vmem:[#allocation3 + $0x28] sm:$0xff]  ;;  %v2349_v9 = vld [vmem:[#allocation3 + $0x30] sm:$0xff] }
 0x281   : > { %vm6844_vm1 = vcmp.eq.s32.totalorder %v6843_v21, %v6747_v58  ;;  %v2350_v11 = vld [vmem:[#allocation3 + $0x38] sm:$0xff]  ;;  %vm6845_vm15 = vcmp.eq.s32.totalorder %v6843_v21, %v6749_v50  ;;  %2342 = vst [vmem:[#allocation2 + $0x1f8] sm:$0xff] %v2278_v43  ;;  %2535 = vst [vmem:[#allocation3] sm:$0xff] %v2471_v19  ;;  %v2477_v31 = vadd.f32 %v5697_v57, %v2349_v9  ;;  %v2351_v25 = vld [vmem:[#allocation3 + $0x40] sm:$0xff] }
 0x282   : > { %v5859_v29 = vsel %vm6844_vm1, %v6784_v2, 0.0  ;;  %v5868_v5 = vsel %vm6845_vm15, %v6785_v39, 0.0  ;;  %2536 = vst [vmem:[#allocation3 + $0x8] sm:$0xff] %v2472_v56  ;;  %v2476_v2 = vadd.f32 %v5688_v15, %v2348_v32  ;;  %v2478_v42 = vadd.f32 %v5706_v6, %v2350_v11  ;;  %v2352_v12 = vld [vmem:[#allocation3 + $0x48] sm:$0xff]  ;;  %v2353_v60 = vld [vmem:[#allocation3 + $0x50] sm:$0xff]  ;;  %2537 = vst [vmem:[#allocation3 + $0x10] sm:$0xff] %v2473_v46 }
 0x283   : > { %v6846_v52 = vld [vmem:[#allocation18_spill] sm:$0xff]  ;;  %2538 = vst [vmem:[#allocation3 + $0x18] sm:$0xff] %v2474_v36  ;;  %2539 = vst [vmem:[#allocation3 + $0x20] sm:$0xff] %v2475_v49  ;;  %v2479_v39 = vadd.f32 %v5715_v1, %v2351_v25  ;;  %v2480_v15 = vadd.f32 %v5724_v7, %v2352_v12  ;;  %v2481_v57 = vadd.f32 %v5733_v27, %v2353_v60  ;;  %v2354_v21 = vld [vmem:[#allocation3 + $0x58] sm:$0xff] }
 0x284   : > { %vm6847_vm11 = vcmp.eq.s32.totalorder %v6846_v52, %v6747_v58  ;;  %v2355_v6 = vld [vmem:[#allocation3 + $0x60] sm:$0xff]  ;;  %v2356_v44 = vld [vmem:[#allocation3 + $0x68] sm:$0xff]  ;;  %vm6848_vm0 = vcmp.eq.s32.totalorder %v6846_v52, %v6749_v50  ;;  %2540 = vst [vmem:[#allocation3 + $0x28] sm:$0xff] %v2476_v2  ;;  %2541 = vst [vmem:[#allocation3 + $0x30] sm:$0xff] %v2477_v31 }
 0x285   : > { %v5877_v51 = vsel %vm6847_vm11, %v6786_v45, 0.0  ;;  %v2434_v62 = vsel %vm6848_vm0, %v6788_v53, 0.0  ;;  %2542 = vst [vmem:[#allocation3 + $0x38] sm:$0xff] %v2478_v42  ;;  %v2482_v45 = vadd.f32 %v5742_v33, %v2354_v21  ;;  %v2483_v43 = vadd.f32 %v5751_v61, %v2355_v6  ;;  %v2357_v7 = vld [vmem:[#allocation3 + $0x70] sm:$0xff]  ;;  %v2358_v19 = vld [vmem:[#allocation3 + $0x78] sm:$0xff]  ;;  %v2359_v27 = vld [vmem:[#allocation3 + $0x80] sm:$0xff] }
 0x286   : > { %v2484_v1 = vadd.f32 %v5760_v59, %v2356_v44  ;;  %v6849_v56 = vld [vmem:[#allocation21_spill] sm:$0xff]  ;;  %2543 = vst [vmem:[#allocation3 + $0x40] sm:$0xff] %v2479_v39  ;;  %2544 = vst [vmem:[#allocation3 + $0x48] sm:$0xff] %v2480_v15  ;;  %v2485_v53 = vadd.f32 %v5769_v14, %v2357_v7  ;;  %v2486_v3 = vadd.f32 %v5778_v8, %v2358_v19  ;;  %v2361_v34 = vld [vmem:[#allocation3 + $0x90] sm:$0xff] }
 0x287   : > { %vm6850_vm12 = vcmp.eq.s32.totalorder %v6849_v56, %v6747_v58  ;;  %2545 = vst [vmem:[#allocation3 + $0x50] sm:$0xff] %v2481_v57  ;;  %v2487_v33 = vadd.f32 %v5787_v16, %v2359_v27  ;;  %v2360_v61 = vld [vmem:[#allocation3 + $0x88] sm:$0xff]  ;;  %v2362_v59 = vld [vmem:[#allocation3 + $0x98] sm:$0xff]  ;;  %vm6851_vm6 = vcmp.eq.s32.totalorder %v6849_v56, %v6749_v50  ;;  %2546 = vst [vmem:[#allocation3 + $0x58] sm:$0xff] %v2482_v45 }
 0x288   : > { %v2435_v54 = vsel %vm6850_vm12, %v6789_v63, 0.0  ;;  %v2436_v46 = vsel %vm6851_vm6, %v6790_v55, 0.0  ;;  %2547 = vst [vmem:[#allocation3 + $0x60] sm:$0xff] %v2483_v43  ;;  %2548 = vst [vmem:[#allocation3 + $0x68] sm:$0xff] %v2484_v1  ;;  %v2488_v63 = vadd.f32 %v5796_v4, %v2360_v61  ;;  %v2489_v36 = vadd.f32 %v5805_v18, %v2361_v34  ;;  %v2363_v8 = vld [vmem:[#allocation3 + $0xa0] sm:$0xff]  ;;  %v2364_v49 = vld [vmem:[#allocation3 + $0xa8] sm:$0xff] }
 0x289   : > { %v2490_v14 = vadd.f32 %v5814_v47, %v2362_v59  ;;  %v2365_v16 = vld [vmem:[#allocation3 + $0xb0] sm:$0xff]  ;;  %v6852_v32 = vld [vmem:[#allocation20_spill] sm:$0xff]  ;;  %2549 = vst [vmem:[#allocation3 + $0x70] sm:$0xff] %v2485_v53  ;;  %2550 = vst [vmem:[#allocation3 + $0x78] sm:$0xff] %v2486_v3  ;;  %v2491_v55 = vadd.f32 %v5823_v20, %v2363_v8  ;;  %v2492_v11 = vadd.f32 %v5832_v10, %v2364_v49 }
 0x28a   : > { %vm6853_vm10 = vcmp.eq.s32.totalorder %v6852_v32, %v6747_v58  ;;  %2551 = vst [vmem:[#allocation3 + $0x80] sm:$0xff] %v2487_v33  ;;  %v2493_v4 = vadd.f32 %v5841_v40, %v2365_v16  ;;  %v2366_v18 = vld [vmem:[#allocation3 + $0xb8] sm:$0xff]  ;;  %v2367_v2 = vld [vmem:[#allocation3 + $0xc0] sm:$0xff]  ;;  %v2368_v47 = vld [vmem:[#allocation3 + $0xc8] sm:$0xff]  ;;  %vm6854_vm2 = vcmp.eq.s32.totalorder %v6852_v32, %v6749_v50 }
 0x28b   : > { %v2437_v9 = vsel %vm6853_vm10, %v6793_v22, 0.0  ;;  %v2438_v31 = vsel %vm6854_vm2, %v6794_v35, 0.0  ;;  %2552 = vst [vmem:[#allocation3 + $0x88] sm:$0xff] %v2488_v63  ;;  %2553 = vst [vmem:[#allocation3 + $0x90] sm:$0xff] %v2489_v36  ;;  %v2494_v22 = vadd.f32 %v5850_v37, %v2366_v18  ;;  %v2495_v42 = vadd.f32 %v5859_v29, %v2367_v2  ;;  %v2369_v10 = vld [vmem:[#allocation3 + $0xd0] sm:$0xff]  ;;  %v2370_v25 = vld [vmem:[#allocation3 + $0xd8] sm:$0xff] }
 0x28c   : > { %2554 = vst [vmem:[#allocation3 + $0x98] sm:$0xff] %v2490_v14  ;;  %v2496_v20 = vadd.f32 %v5868_v5, %v2368_v47  ;;  %v2371_v40 = vld [vmem:[#allocation3 + $0xe0] sm:$0xff]  ;;  %v6855_v12 = vld [vmem:[#allocation23_spill] sm:$0xff]  ;;  %2555 = vst [vmem:[#allocation3 + $0xa0] sm:$0xff] %v2491_v55  ;;  %v2497_v35 = vadd.f32 %v5877_v51, %v2369_v10  ;;  %v2498_v52 = vadd.f32 %v2434_v62, %v2370_v25 }
 0x28d   : > { %vm6856_vm13 = vcmp.eq.s32.totalorder %v6855_v12, %v6747_v58  ;;  %2556 = vst [vmem:[#allocation3 + $0xa8] sm:$0xff] %v2492_v11  ;;  %2557 = vst [vmem:[#allocation3 + $0xb0] sm:$0xff] %v2493_v4  ;;  %v2499_v39 = vadd.f32 %v2435_v54, %v2371_v40  ;;  %v2372_v37 = vld [vmem:[#allocation3 + $0xe8] sm:$0xff]  ;;  %v2373_v15 = vld [vmem:[#allocation3 + $0xf0] sm:$0xff]  ;;  %vm6857_vm5 = vcmp.eq.s32.totalorder %v6855_v12, %v6749_v50 }
 0x28e   : > { %v2439_v60 = vsel %vm6856_vm13, %v6795_v28, 0.0  ;;  %v2374_v29 = vld [vmem:[#allocation3 + $0xf8] sm:$0xff]  ;;  %v2440_v5 = vsel %vm6857_vm5, %v6797_v48, 0.0  ;;  %2558 = vst [vmem:[#allocation3 + $0xb8] sm:$0xff] %v2494_v22  ;;  %2559 = vst [vmem:[#allocation3 + $0xc0] sm:$0xff] %v2495_v42  ;;  %v2500_v57 = vadd.f32 %v2436_v46, %v2372_v37  ;;  %v2501_v28 = vadd.f32 %v2437_v9, %v2373_v15  ;;  %v2375_v6 = vld [vmem:[#allocation3 + $0x100] sm:$0xff] }
 0x28f   : > { %2560 = vst [vmem:[#allocation3 + $0xc8] sm:$0xff] %v2496_v20  ;;  %v2502_v21 = vadd.f32 %v2438_v31, %v2374_v29  ;;  %v2376_v44 = vld [vmem:[#allocation3 + $0x108] sm:$0xff]  ;;  %v2377_v45 = vld [vmem:[#allocation3 + $0x110] sm:$0xff]  ;;  %2561 = vst [vmem:[#allocation3 + $0xd0] sm:$0xff] %v2497_v35  ;;  %v2503_v43 = vadd.f32 %v2439_v60, %v2375_v6 }
 0x290   : > { %v6858_v51 = vld [vmem:[#allocation22_spill] sm:$0xff]  ;;  %2562 = vst [vmem:[#allocation3 + $0xd8] sm:$0xff] %v2498_v52  ;;  %2563 = vst [vmem:[#allocation3 + $0xe0] sm:$0xff] %v2499_v39  ;;  %v2504_v1 = vadd.f32 %v2440_v5, %v2376_v44  ;;  %v2378_v7 = vld [vmem:[#allocation3 + $0x118] sm:$0xff] }
 0x291   : > { %vm6859_vm14 = vcmp.eq.s32.totalorder %v6858_v51, %v6747_v58  ;;  %vm6860_vm9 = vcmp.eq.s32.totalorder %v6858_v51, %v6749_v50  ;;  %v2379_v27 = vld [vmem:[#allocation3 + $0x120] sm:$0xff]  ;;  %v2380_v56 = vld [vmem:[#allocation3 + $0x128] sm:$0xff]  ;;  %2564 = vst [vmem:[#allocation3 + $0xe8] sm:$0xff] %v2500_v57  ;;  %2565 = vst [vmem:[#allocation3 + $0xf0] sm:$0xff] %v2501_v28 }
 0x292   : > { %v2441_v62 = vsel %vm6859_vm14, %v6798_v17, 0.0  ;;  %v2442_v19 = vsel %vm6860_vm9, %v6799_v30, 0.0  ;;  %2566 = vst [vmem:[#allocation3 + $0xf8] sm:$0xff] %v2502_v21  ;;  %v6861_v17 = vld [vmem:[#allocation25_spill] sm:$0xff]  ;;  %v2381_v33 = vld [vmem:[#allocation3 + $0x130] sm:$0xff]  ;;  %v6864_v61 = vld [vmem:[#allocation24_spill] sm:$0xff] }
 0x293   : > { %v2505_v48 = vadd.f32 %v2441_v62, %v2377_v45  ;;  %v2506_v54 = vadd.f32 %v2442_v19, %v2378_v7  ;;  %vm6862_vm3 = vcmp.eq.s32.totalorder %v6861_v17, %v6747_v58  ;;  %vm6863_vm4 = vcmp.eq.s32.totalorder %v6861_v17, %v6749_v50  ;;  %v2382_v34 = vld [vmem:[#allocation3 + $0x138] sm:$0xff]  ;;  %v2383_v59 = vld [vmem:[#allocation3 + $0x140] sm:$0xff]  ;;  %2567 = vst [vmem:[#allocation3 + $0x100] sm:$0xff] %v2503_v43  ;;  %v2385_v14 = vld [vmem:[#allocation3 + $0x150] sm:$0xff] }
 0x294   : > { %v2443_v53 = vsel %vm6862_vm3, %v6802_v24, 0.0  ;;  %v2444_v3 = vsel %vm6863_vm4, %v6803_v26, 0.0  ;;  %vm6865_vm7 = vcmp.eq.s32.totalorder %v6864_v61, %v6747_v58  ;;  %2568 = vst [vmem:[#allocation3 + $0x108] sm:$0xff] %v2504_v1  ;;  %vm6866_vm8 = vcmp.eq.s32.totalorder %v6864_v61, %v6749_v50  ;;  %v2384_v26 = vld [vmem:[#allocation3 + $0x148] sm:$0xff]  ;;  %v2386_v8 = vld [vmem:[#allocation3 + $0x158] sm:$0xff]  ;;  %v6873_v4 = vld [vmem:[#allocation26_spill] sm:$0xff] }
 0x295   : > { %v2445_v30 = vsel %vm6865_vm7, %v6804_v0, 0.0  ;;  %2569 = vst [vmem:[#allocation3 + $0x110] sm:$0xff] %v2505_v48  ;;  %v2507_v46 = vadd.f32 %v2443_v53, %v2379_v27  ;;  %v2508_v63 = vadd.f32 %v2444_v3, %v2380_v56  ;;  %v2446_v24 = vsel %vm6866_vm8, %v6806_v38, 0.0  ;;  %2570 = vst [vmem:[#allocation3 + $0x118] sm:$0xff] %v2506_v54  ;;  %v6867_v16 = vld [vmem:[#allocation55_spill] sm:$0xff]  ;;  %v6870_v9 = vld [vmem:[#allocation57_spill] sm:$0xff] }
 0x296   : > { %v2509_v36 = vadd.f32 %v2445_v30, %v2381_v33  ;;  %v2510_v49 = vadd.f32 %v2446_v24, %v2382_v34  ;;  %v6868_v0 = vld [vmem:[#allocation27_spill] sm:$0xff]  ;;  %vm6874_vm11 = vcmp.eq.s32.totalorder %v6873_v4, %v6747_v58  ;;  %v2387_v18 = vld [vmem:[#allocation3 + $0x160] sm:$0xff]  ;;  %v2388_v2 = vld [vmem:[#allocation3 + $0x168] sm:$0xff]  ;;  %vm6876_vm0 = vcmp.eq.s32.totalorder %v6873_v4, %v6749_v50 }
 0x297   : > { %vm6869_vm1 = vcmp.eq.s32.totalorder %v6868_v0, %v6747_v58  ;;  %vm6871_vm15 = vcmp.eq.s32.totalorder %v6868_v0, %v6749_v50  ;;  %v6872_v11 = vld [vmem:[#allocation59_spill] sm:$0xff]  ;;  %v2389_v47 = vld [vmem:[#allocation3 + $0x170] sm:$0xff]  ;;  %2571 = vst [vmem:[#allocation3 + $0x120] sm:$0xff] %v2507_v46  ;;  %2572 = vst [vmem:[#allocation3 + $0x128] sm:$0xff] %v2508_v63 }
 0x298   : > { %v2447_v32 = vsel %vm6869_vm1, %v6867_v16, 0.0  ;;  %v2448_v55 = vsel %vm6871_vm15, %v6870_v9, 0.0  ;;  %v2449_v38 = vsel %vm6874_vm11, %v6872_v11, 0.0  ;;  %2573 = vst [vmem:[#allocation3 + $0x130] sm:$0xff] %v2509_v36  ;;  %v6875_v20 = vld [vmem:[#allocation61_spill] sm:$0xff]  ;;  %v2390_v25 = vld [vmem:[#allocation3 + $0x178] sm:$0xff] }
 0x299   : > { %v2511_v31 = vadd.f32 %v2447_v32, %v2383_v59  ;;  %v2512_v22 = vadd.f32 %v2448_v55, %v2384_v26  ;;  %v2513_v42 = vadd.f32 %v2449_v38, %v2385_v14  ;;  %v2450_v10 = vsel %vm6876_vm0, %v6875_v20, 0.0  ;;  %2574 = vst [vmem:[#allocation3 + $0x138] sm:$0xff] %v2510_v49  ;;  %v6877_v12 = vld [vmem:[#allocation63_spill] sm:$0xff]  ;;  %v6878_v60 = vld [vmem:[#allocation29_spill] sm:$0xff]  ;;  %v6883_v15 = vld [vmem:[#allocation28_spill] sm:$0xff] }
 0x29a   : > { %v2514_v40 = vadd.f32 %v2450_v10, %v2386_v8  ;;  %vm6879_vm12 = vcmp.eq.s32.totalorder %v6878_v60, %v6747_v58  ;;  %v6880_v52 = vld [vmem:[#allocation65_spill] sm:$0xff]  ;;  %vm6881_vm6 = vcmp.eq.s32.totalorder %v6878_v60, %v6749_v50  ;;  %v6882_v37 = vld [vmem:[#allocation67_spill] sm:$0xff]  ;;  %vm6884_vm10 = vcmp.eq.s32.totalorder %v6883_v15, %v6747_v58  ;;  %v2391_v5 = vld [vmem:[#allocation3 + $0x180] sm:$0xff] }
 0x29b   : > { %v2451_v35 = vsel %vm6879_vm12, %v6877_v12, 0.0  ;;  %v2452_v39 = vsel %vm6881_vm6, %v6880_v52, 0.0  ;;  %v2453_v29 = vsel %vm6884_vm10, %v6882_v37, 0.0  ;;  %v2392_v57 = vld [vmem:[#allocation3 + $0x188] sm:$0xff]  ;;  %v2393_v28 = vld [vmem:[#allocation3 + $0x190] sm:$0xff]  ;;  %2575 = vst [vmem:[#allocation3 + $0x140] sm:$0xff] %v2511_v31  ;;  %vm6886_vm2 = vcmp.eq.s32.totalorder %v6883_v15, %v6749_v50 }
 0x29c   : > { %2576 = vst [vmem:[#allocation3 + $0x148] sm:$0xff] %v2512_v22  ;;  %2577 = vst [vmem:[#allocation3 + $0x150] sm:$0xff] %v2513_v42  ;;  %v2515_v21 = vadd.f32 %v2451_v35, %v2387_v18  ;;  %v2516_v6 = vadd.f32 %v2452_v39, %v2388_v2  ;;  %v2517_v44 = vadd.f32 %v2453_v29, %v2389_v47  ;;  %v6885_v45 = vld [vmem:[#allocation69_spill] sm:$0xff]  ;;  %v2394_v62 = vld [vmem:[#allocation3 + $0x198] sm:$0xff] }
 0x29d   : > { %v2454_v51 = vsel %vm6886_vm2, %v6885_v45, 0.0  ;;  %2578 = vst [vmem:[#allocation3 + $0x158] sm:$0xff] %v2514_v40  ;;  %v6887_v1 = vld [vmem:[#allocation71_spill] sm:$0xff]  ;;  %v6890_v19 = vld [vmem:[#allocation73_spill] sm:$0xff]  ;;  %v6893_v54 = vld [vmem:[#allocation30_spill] sm:$0xff] }
 0x29e   : > { %v2518_v43 = vadd.f32 %v2454_v51, %v2390_v25  ;;  %v6888_v48 = vld [vmem:[#allocation31_spill] sm:$0xff]  ;;  %vm6894_vm14 = vcmp.eq.s32.totalorder %v6893_v54, %v6747_v58  ;;  %v2395_v53 = vld [vmem:[#allocation3 + $0x1a0] sm:$0xff]  ;;  %v2396_v3 = vld [vmem:[#allocation3 + $0x1a8] sm:$0xff]  ;;  %2579 = vst [vmem:[#allocation3 + $0x160] sm:$0xff] %v2515_v21  ;;  %vm6896_vm9 = vcmp.eq.s32.totalorder %v6893_v54, %v6749_v50 }
 0x29f   : > { %vm6889_vm13 = vcmp.eq.s32.totalorder %v6888_v48, %v6747_v58  ;;  %vm6891_vm5 = vcmp.eq.s32.totalorder %v6888_v48, %v6749_v50  ;;  %v6892_v56 = vld [vmem:[#allocation75_spill] sm:$0xff]  ;;  %v2397_v33 = vld [vmem:[#allocation3 + $0x1b0] sm:$0xff]  ;;  %2580 = vst [vmem:[#allocation3 + $0x168] sm:$0xff] %v2516_v6  ;;  %2581 = vst [vmem:[#allocation3 + $0x170] sm:$0xff] %v2517_v44 }
 0x2a0   : > { %v2455_v7 = vsel %vm6889_vm13, %v6887_v1, 0.0  ;;  %v2456_v27 = vsel %vm6891_vm5, %v6890_v19, 0.0  ;;  %v2457_v17 = vsel %vm6894_vm14, %v6892_v56, 0.0  ;;  %v6895_v59 = vld [vmem:[#allocation77_spill] sm:$0xff]  ;;  %v2398_v63 = vld [vmem:[#allocation3 + $0x1b8] sm:$0xff]  ;;  %2582 = vst [vmem:[#allocation3 + $0x178] sm:$0xff] %v2518_v43 }
 0x2a1   : > { %v2519_v61 = vadd.f32 %v2455_v7, %v2391_v5  ;;  %v2520_v30 = vadd.f32 %v2456_v27, %v2392_v57  ;;  %v2521_v34 = vadd.f32 %v2457_v17, %v2393_v28  ;;  %v2458_v46 = vsel %vm6896_vm9, %v6895_v59, 0.0  ;;  %v6897_v24 = vld [vmem:[#allocation79_spill] sm:$0xff]  ;;  %v6898_v26 = vld [vmem:[#allocation33_spill] sm:$0xff]  ;;  %v6903_v0 = vld [vmem:[#allocation32_spill] sm:$0xff] }
 0x2a2   : > { %v2522_v36 = vadd.f32 %v2458_v46, %v2394_v62  ;;  %vm6899_vm3 = vcmp.eq.s32.totalorder %v6898_v26, %v6747_v58  ;;  %v6900_v8 = vld [vmem:[#allocation81_spill] sm:$0xff]  ;;  %vm6901_vm4 = vcmp.eq.s32.totalorder %v6898_v26, %v6749_v50  ;;  %v6902_v16 = vld [vmem:[#allocation83_spill] sm:$0xff]  ;;  %vm6904_vm7 = vcmp.eq.s32.totalorder %v6903_v0, %v6747_v58  ;;  %v2399_v9 = vld [vmem:[#allocation3 + $0x1c0] sm:$0xff] }
 0x2a3   : > { %v2459_v14 = vsel %vm6899_vm3, %v6897_v24, 0.0  ;;  %v2460_v49 = vsel %vm6901_vm4, %v6900_v8, 0.0  ;;  %v2461_v32 = vsel %vm6904_vm7, %v6902_v16, 0.0  ;;  %v2400_v55 = vld [vmem:[#allocation3 + $0x1c8] sm:$0xff]  ;;  %v2401_v11 = vld [vmem:[#allocation3 + $0x1d0] sm:$0xff]  ;;  %2583 = vst [vmem:[#allocation3 + $0x180] sm:$0xff] %v2519_v61  ;;  %vm6906_vm8 = vcmp.eq.s32.totalorder %v6903_v0, %v6749_v50 }
 0x2a4   : > { %2584 = vst [vmem:[#allocation3 + $0x188] sm:$0xff] %v2520_v30  ;;  %2585 = vst [vmem:[#allocation3 + $0x190] sm:$0xff] %v2521_v34  ;;  %v2523_v4 = vadd.f32 %v2459_v14, %v2395_v53  ;;  %v2524_v38 = vadd.f32 %v2460_v49, %v2396_v3  ;;  %v2525_v18 = vadd.f32 %v2461_v32, %v2397_v33  ;;  %v6905_v2 = vld [vmem:[#allocation85_spill] sm:$0xff]  ;;  %v2402_v31 = vld [vmem:[#allocation3 + $0x1d8] sm:$0xff] }
 0x2a5   : > { %v2462_v47 = vsel %vm6906_vm8, %v6905_v2, 0.0  ;;  %2586 = vst [vmem:[#allocation3 + $0x198] sm:$0xff] %v2522_v36  ;;  %v6907_v42 = vld [vmem:[#allocation87_spill] sm:$0xff]  ;;  %v6912_v12 = vld [vmem:[#allocation34_spill] sm:$0xff]  ;;  %v2403_v35 = vld [vmem:[#allocation3 + $0x1e0] sm:$0xff] }
 0x2a6   : > { %v2526_v22 = vadd.f32 %v2462_v47, %v2398_v63  ;;  %v6908_v20 = vld [vmem:[#allocation35_spill] sm:$0xff]  ;;  %vm6913_vm11 = vcmp.eq.s32.totalorder %v6912_v12, %v6747_v58  ;;  %v2404_v52 = vld [vmem:[#allocation3 + $0x1e8] sm:$0xff]  ;;  %v2405_v39 = vld [vmem:[#allocation3 + $0x1f0] sm:$0xff]  ;;  %2587 = vst [vmem:[#allocation3 + $0x1a0] sm:$0xff] %v2523_v4  ;;  %vm6915_vm0 = vcmp.eq.s32.totalorder %v6912_v12, %v6749_v50 }
 0x2a7   : > { %vm6909_vm1 = vcmp.eq.s32.totalorder %v6908_v20, %v6747_v58  ;;  %vm6910_vm15 = vcmp.eq.s32.totalorder %v6908_v20, %v6749_v50  ;;  %v6911_v40 = vld [vmem:[#allocation91_spill] sm:$0xff]  ;;  %2588 = vst [vmem:[#allocation3 + $0x1a8] sm:$0xff] %v2524_v38  ;;  %2589 = vst [vmem:[#allocation3 + $0x1b0] sm:$0xff] %v2525_v18  ;;  %v6914_v5 = vld [vmem:[#allocation93_spill] sm:$0xff] }
 0x2a8   : > { %v2463_v10 = vsel %vm6909_vm1, %v6907_v42, 0.0  ;;  %v2464_v25 = vsel %vm6910_vm15, %v6833_v13, 0.0  ;;  %v2465_v60 = vsel %vm6913_vm11, %v6911_v40, 0.0  ;;  %v2466_v57 = vsel %vm6915_vm0, %v6914_v5, 0.0  ;;  %v2406_v13 = vld [vmem:[#allocation3 + $0x1f8] sm:$0xff]  ;;  %2590 = vst [vmem:[#allocation3 + $0x1b8] sm:$0xff] %v2526_v22 }
 0x2a9   : > { %v2527_v37 = vadd.f32 %v2463_v10, %v2399_v9  ;;  %v2528_v15 = vadd.f32 %v2464_v25, %v2400_v55  ;;  %v2529_v29 = vadd.f32 %v2465_v60, %v2401_v11  ;;  %v2530_v28 = vadd.f32 %v2466_v57, %v2402_v31  ;;  %v6916_v21 = vld [vmem:[#allocation37_spill] sm:$0xff]  ;;  %v6920_v51 = vld [vmem:[#allocation99_spill] sm:$0xff]  ;;  %v6921_v62 = vld [vmem:[#allocation36_spill] sm:$0xff] }
 0x2aa   : > { %vm6917_vm12 = vcmp.eq.s32.totalorder %v6916_v21, %v6747_v58  ;;  %v6918_v44 = vld [vmem:[#allocation97_spill] sm:$0xff]  ;;  %vm6919_vm6 = vcmp.eq.s32.totalorder %v6916_v21, %v6749_v50  ;;  %vm6922_vm10 = vcmp.eq.s32.totalorder %v6921_v62, %v6747_v58  ;;  %vm6923_vm2 = vcmp.eq.s32.totalorder %v6921_v62, %v6749_v50 }
 0x2ab   : > { %v2467_v6 = vsel %vm6917_vm12, %v6838_v41, 0.0  ;;  %v2468_v45 = vsel %vm6919_vm6, %v6918_v44, 0.0  ;;  %v2469_v43 = vsel %vm6922_vm10, %v6920_v51, 0.0  ;;  %2591 = vst [vmem:[#allocation3 + $0x1c0] sm:$0xff] %v2527_v37  ;;  %2592 = vst [vmem:[#allocation3 + $0x1c8] sm:$0xff] %v2528_v15  ;;  %v2470_v41 = vsel %vm6923_vm2, %v6842_v23, 0.0 }
 0x2ac   : > { %2593 = vst [vmem:[#allocation3 + $0x1d0] sm:$0xff] %v2529_v29  ;;  %v2531_v1 = vadd.f32 %v2467_v6, %v2403_v35  ;;  %v2532_v48 = vadd.f32 %v2468_v45, %v2404_v52  ;;  %v2533_v7 = vadd.f32 %v2469_v43, %v2405_v39  ;;  %2594 = vst [vmem:[#allocation3 + $0x1d8] sm:$0xff] %v2530_v28 }
 0x2ad   : > { %v2534_v19 = vadd.f32 %v2470_v41, %v2406_v13 }
 0x2ae   : > { %2595 = vst [vmem:[#allocation3 + $0x1e0] sm:$0xff] %v2531_v1  ;;  %2596 = vst [vmem:[#allocation3 + $0x1e8] sm:$0xff] %v2532_v48 }
 0x2af   : > { %2597 = vst [vmem:[#allocation3 + $0x1f0] sm:$0xff] %v2533_v7  ;;  %2598 = vst [vmem:[#allocation3 + $0x1f8] sm:$0xff] %v2534_v19 }
 0x2b0 PF: > { %p3478_p1 = scmp.ne.s32.totalorder %s3915_s18, 1 }
 0x2b1   : > { %v2608_v27 = vld [vmem:[#allocation2 + $0x28] sm:$0xff] (!%p3478_p1)  ;;  %v2609_v53 = vld [vmem:[#allocation2 + $0x30] sm:$0xff] (!%p3478_p1)  ;;  %v2610_v3 = vld [vmem:[#allocation2 + $0x38] sm:$0xff] (!%p3478_p1)  ;;  %vm3147_vm13 = vcmask (!%p3478_p1), 7168  }
 0x2b2   : > { %2602 = sbr.rel (%p3478_p1) target bundleno = 984 (0x3d8), region = 52  ;;  %v2676_v61 = vadd.f32 (!%p3478_p1), %v2610_v3, %v2609_v53  ;;  %v2613_v34 = vld [vmem:[#allocation2 + $0x50] sm:$0xff] (!%p3478_p1)  ;;  %v2614_v59 = vld [vmem:[#allocation2 + $0x58] sm:$0xff] (!%p3478_p1)  ;;  %v2611_v46 = vld [vmem:[#allocation2 + $0x40] sm:$0xff] (!%p3478_p1) }
 0x2b3   : > { %v2612_v63 = vld [vmem:[#allocation2 + $0x48] sm:$0xff] (!%p3478_p1)  ;;  %v2682_v36 = vadd.f32 (!%p3478_p1), %v2614_v59, %v2613_v34  ;;  %v2617_v26 = vld [vmem:[#allocation2 + $0x70] sm:$0xff] (!%p3478_p1)  ;;  %v2618_v14 = vld [vmem:[#allocation2 + $0x78] sm:$0xff] (!%p3478_p1) }
 0x2b4   : > { %v2603_v56 = vld [vmem:[#allocation2] sm:$0xff] (!%p3478_p1)  ;;  %v2679_v24 = vadd.f32 (!%p3478_p1), %v2612_v63, %v2611_v46  ;;  %v2616_v49 = vld [vmem:[#allocation2 + $0x68] sm:$0xff] (!%p3478_p1)  ;;  %v2688_v16 = vadd.f32 (!%p3478_p1), %v2618_v14, %v2617_v26  ;;  %v2621_v32 = vld [vmem:[#allocation2 + $0x90] sm:$0xff] (!%p3478_p1) }
 0x2b5   : > { %v2604_v17 = vld [vmem:[#allocation2 + $0x8] sm:$0xff] (!%p3478_p1)  ;;  %v2605_v50 = vld [vmem:[#allocation2 + $0x10] sm:$0xff] (!%p3478_p1)  ;;  %v2615_v8 = vld [vmem:[#allocation2 + $0x60] sm:$0xff] (!%p3478_p1) }
 0x2b6   : > { %v2607_v58 = vld [vmem:[#allocation2 + $0x20] sm:$0xff] (!%p3478_p1)  ;;  %v2667_v33 = vadd.f32 (!%p3478_p1), %v2604_v17, %v2603_v56  ;;  %v2685_v0 = vadd.f32 (!%p3478_p1), %v2616_v49, %v2615_v8  ;;  %v2622_v9 = vld [vmem:[#allocation2 + $0x98] sm:$0xff] (!%p3478_p1)  ;;  %v2620_v11 = vld [vmem:[#allocation2 + $0x88] sm:$0xff] (!%p3478_p1) }
 0x2b7   : > { %v2673_v54 = vadd.f32 (!%p3478_p1), %v2608_v27, %v2607_v58  ;;  %v2606_v23 = vld [vmem:[#allocation2 + $0x18] sm:$0xff] (!%p3478_p1)  ;;  %v2619_v55 = vld [vmem:[#allocation2 + $0x80] sm:$0xff] (!%p3478_p1)  ;;  %v2694_v4 = vadd.f32 (!%p3478_p1), %v2622_v9, %v2621_v32  ;;  %v2625_v18 = vld [vmem:[#allocation2 + $0xb0] sm:$0xff] (!%p3478_p1) }
 0x2b8   : > { %2668 = vadd.xlane.f32.xlu0 (!%p3478_p1), %v2667_v33  ;;  %v2670_v30 = vadd.f32 (!%p3478_p1), %v2606_v23, %v2605_v50  ;;  %v2691_v38 = vadd.f32 (!%p3478_p1), %v2620_v11, %v2619_v55  ;;  %v2626_v2 = vld [vmem:[#allocation2 + $0xb8] sm:$0xff] (!%p3478_p1)  ;;  %v2623_v47 = vld [vmem:[#allocation2 + $0xa0] sm:$0xff] (!%p3478_p1)  ;;  %v2624_v31 = vld [vmem:[#allocation2 + $0xa8] sm:$0xff] (!%p3478_p1) }
 0x2b9   : > { %2674 = vadd.xlane.f32.xlu1 %v2673_v54  ;;  %v2700_v22 = vadd.f32 %v2626_v2, %v2625_v18  ;;  %v2697_v42 = vadd.f32 %v2624_v31, %v2623_v47  ;;  %v2629_v20 = vld [vmem:[#allocation2 + $0xd0] sm:$0xff]  ;;  %v2630_v10 = vld [vmem:[#allocation2 + $0xd8] sm:$0xff]  ;;  %v2627_v25 = vld [vmem:[#allocation2 + $0xc0] sm:$0xff] }
 0x2ba   : > { %v2628_v40 = vld [vmem:[#allocation2 + $0xc8] sm:$0xff]  ;;  %v2706_v12 = vadd.f32 %v2630_v10, %v2629_v20  ;;  %v2633_v35 = vld [vmem:[#allocation2 + $0xf0] sm:$0xff]  ;;  %v2634_v52 = vld [vmem:[#allocation2 + $0xf8] sm:$0xff] }
 0x2bb   : > { %v2703_v60 = vadd.f32 %v2628_v40, %v2627_v25  ;;  %v2631_v39 = vld [vmem:[#allocation2 + $0xe0] sm:$0xff]  ;;  %v2632_v37 = vld [vmem:[#allocation2 + $0xe8] sm:$0xff]  ;;  %v2712_v15 = vadd.f32 %v2634_v52, %v2633_v35  ;;  %v2637_v5 = vld [vmem:[#allocation2 + $0x110] sm:$0xff] }
 0x2bc   : > { %2671 = vadd.xlane.f32.xlu0 %v2670_v30  ;;  %v2709_v29 = vadd.f32 %v2632_v37, %v2631_v39  ;;  %v2638_v57 = vld [vmem:[#allocation2 + $0x118] sm:$0xff]  ;;  %v2635_v13 = vld [vmem:[#allocation2 + $0x100] sm:$0xff]  ;;  %v2636_v28 = vld [vmem:[#allocation2 + $0x108] sm:$0xff] }
 0x2bd   : > { %2677 = vadd.xlane.f32.xlu1 %v2676_v61  ;;  %v2718_v21 = vadd.f32 %v2638_v57, %v2637_v5  ;;  %v2715_v6 = vadd.f32 %v2636_v28, %v2635_v13  ;;  %v2641_v44 = vld [vmem:[#allocation2 + $0x130] sm:$0xff]  ;;  %v2642_v45 = vld [vmem:[#allocation2 + $0x138] sm:$0xff]  ;;  %v2639_v51 = vld [vmem:[#allocation2 + $0x120] sm:$0xff] }
 0x2be   : > { %v2640_v62 = vld [vmem:[#allocation2 + $0x128] sm:$0xff]  ;;  %v2724_v43 = vadd.f32 %v2642_v45, %v2641_v44  ;;  %v2645_v48 = vld [vmem:[#allocation2 + $0x150] sm:$0xff]  ;;  %v2646_v7 = vld [vmem:[#allocation2 + $0x158] sm:$0xff] }
 0x2bf   : > { %v2721_v1 = vadd.f32 %v2640_v62, %v2639_v51  ;;  %v2643_v41 = vld [vmem:[#allocation2 + $0x140] sm:$0xff]  ;;  %v2644_v19 = vld [vmem:[#allocation2 + $0x148] sm:$0xff]  ;;  %v2730_v58 = vadd.f32 %v2646_v7, %v2645_v48  ;;  %v2649_v56 = vld [vmem:[#allocation2 + $0x170] sm:$0xff] }
 0x2c0   : > { %2680 = vadd.xlane.f32.xlu0 %v2679_v24  ;;  %v2727_v27 = vadd.f32 %v2644_v19, %v2643_v41  ;;  %v2650_v54 = vld [vmem:[#allocation2 + $0x178] sm:$0xff]  ;;  %v2647_v17 = vld [vmem:[#allocation2 + $0x160] sm:$0xff]  ;;  %v2648_v53 = vld [vmem:[#allocation2 + $0x168] sm:$0xff] }
 0x2c1   : > { %2683 = vadd.xlane.f32.xlu1 %v2682_v36  ;;  %v2736_v3 = vadd.f32 %v2650_v54, %v2649_v56  ;;  %v2733_v33 = vadd.f32 %v2648_v53, %v2647_v17  ;;  %v2653_v50 = vld [vmem:[#allocation2 + $0x190] sm:$0xff]  ;;  %v2654_v23 = vld [vmem:[#allocation2 + $0x198] sm:$0xff]  ;;  %v2651_v61 = vld [vmem:[#allocation2 + $0x180] sm:$0xff] }
 0x2c2   : > { %v2652_v30 = vld [vmem:[#allocation2 + $0x188] sm:$0xff]  ;;  %v2742_v34 = vadd.f32 %v2654_v23, %v2653_v50  ;;  %v2657_v46 = vld [vmem:[#allocation2 + $0x1b0] sm:$0xff]  ;;  %v2658_v63 = vld [vmem:[#allocation2 + $0x1b8] sm:$0xff] }
 0x2c3   : > { %v2739_v59 = vadd.f32 %v2652_v30, %v2651_v61  ;;  %v2655_v36 = vld [vmem:[#allocation2 + $0x1a0] sm:$0xff]  ;;  %v2656_v24 = vld [vmem:[#allocation2 + $0x1a8] sm:$0xff]  ;;  %v2748_v26 = vadd.f32 %v2658_v63, %v2657_v46  ;;  %v2661_v8 = vld [vmem:[#allocation2 + $0x1d0] sm:$0xff] }
 0x2c4   : > { %2686 = vadd.xlane.f32.xlu0 %v2685_v0  ;;  %v2745_v14 = vadd.f32 %v2656_v24, %v2655_v36  ;;  %v2662_v49 = vld [vmem:[#allocation2 + $0x1d8] sm:$0xff]  ;;  %v2660_v0 = vld [vmem:[#allocation2 + $0x1c8] sm:$0xff]  ;;  %v2665_v55 = vld [vmem:[#allocation2 + $0x1f0] sm:$0xff] }
 0x2c5   : > { %2689 = vadd.xlane.f32.xlu1 %v2688_v16  ;;  %v2659_v16 = vld [vmem:[#allocation2 + $0x1c0] sm:$0xff]  ;;  %v2754_v32 = vadd.f32 %v2662_v49, %v2661_v8  ;;  %v2666_v11 = vld [vmem:[#allocation2 + $0x1f8] sm:$0xff]  ;;  %v2765_v47 = vld [vmem:[#allocation3 + $0x10] sm:$0xff] }
 0x2c6   : > { %v2751_v9 = vadd.f32 %v2660_v0, %v2659_v16  ;;  %v2760_v18 = vadd.f32 %v2666_v11, %v2665_v55  ;;  %v2766_v31 = vld [vmem:[#allocation3 + $0x18] sm:$0xff]  ;;  %v2769_v25 = vld [vmem:[#allocation3 + $0x30] sm:$0xff] }
 0x2c7   : > { %v2830_v20 = vadd.f32 %v2766_v31, %v2765_v47  ;;  %v2770_v40 = vld [vmem:[#allocation3 + $0x38] sm:$0xff]  ;;  %v2773_v39 = vld [vmem:[#allocation3 + $0x50] sm:$0xff] }
 0x2c8   : > { %2692 = vadd.xlane.f32.xlu0 %v2691_v38  ;;  %v2664_v38 = vld [vmem:[#allocation2 + $0x1e8] sm:$0xff]  ;;  %v2836_v35 = vadd.f32 %v2770_v40, %v2769_v25  ;;  %v2774_v37 = vld [vmem:[#allocation3 + $0x58] sm:$0xff]  ;;  %v2777_v13 = vld [vmem:[#allocation3 + $0x70] sm:$0xff] }
 0x2c9   : > { %2695 = vadd.xlane.f32.xlu1 %v2694_v4  ;;  %v2663_v4 = vld [vmem:[#allocation2 + $0x1e0] sm:$0xff]  ;;  %v2842_v5 = vadd.f32 %v2774_v37, %v2773_v39  ;;  %v2778_v28 = vld [vmem:[#allocation3 + $0x78] sm:$0xff]  ;;  %v2781_v51 = vld [vmem:[#allocation3 + $0x90] sm:$0xff] }
 0x2ca   : > { %v2757_v2 = vadd.f32 %v2664_v38, %v2663_v4  ;;  %v2848_v44 = vadd.f32 %v2778_v28, %v2777_v13  ;;  %v2782_v62 = vld [vmem:[#allocation3 + $0x98] sm:$0xff]  ;;  %v2785_v41 = vld [vmem:[#allocation3 + $0xb0] sm:$0xff] }
 0x2cb   : > { %v2854_v48 = vadd.f32 %v2782_v62, %v2781_v51  ;;  %v2786_v19 = vld [vmem:[#allocation3 + $0xb8] sm:$0xff]  ;;  %v2789_v17 = vld [vmem:[#allocation3 + $0xd0] sm:$0xff] }
 0x2cc   : > { %2698 = vadd.xlane.f32.xlu0 %v2697_v42  ;;  %v2764_v42 = vld [vmem:[#allocation3 + $0x8] sm:$0xff]  ;;  %v2860_v56 = vadd.f32 %v2786_v19, %v2785_v41  ;;  %v2790_v53 = vld [vmem:[#allocation3 + $0xd8] sm:$0xff]  ;;  %v2793_v61 = vld [vmem:[#allocation3 + $0xf0] sm:$0xff] }
 0x2cd   : > { %2701 = vadd.xlane.f32.xlu1 %v2700_v22  ;;  %v2763_v22 = vld [vmem:[#allocation3] sm:$0xff]  ;;  %v2866_v50 = vadd.f32 %v2790_v53, %v2789_v17  ;;  %v2794_v30 = vld [vmem:[#allocation3 + $0xf8] sm:$0xff]  ;;  %v2797_v36 = vld [vmem:[#allocation3 + $0x110] sm:$0xff] }
 0x2ce   : > { %v2827_v10 = vadd.f32 %v2764_v42, %v2763_v22  ;;  %v2872_v46 = vadd.f32 %v2794_v30, %v2793_v61  ;;  %v2798_v24 = vld [vmem:[#allocation3 + $0x118] sm:$0xff]  ;;  %v2801_v16 = vld [vmem:[#allocation3 + $0x130] sm:$0xff] }
 0x2cf   : > { %v2878_v8 = vadd.f32 %v2798_v24, %v2797_v36  ;;  %v2802_v0 = vld [vmem:[#allocation3 + $0x138] sm:$0xff]  ;;  %v2805_v4 = vld [vmem:[#allocation3 + $0x150] sm:$0xff] }
 0x2d0   : > { %2704 = vadd.xlane.f32.xlu0 %v2703_v60  ;;  %v2768_v60 = vld [vmem:[#allocation3 + $0x28] sm:$0xff]  ;;  %v2884_v55 = vadd.f32 %v2802_v0, %v2801_v16  ;;  %v2806_v38 = vld [vmem:[#allocation3 + $0x158] sm:$0xff]  ;;  %v2809_v22 = vld [vmem:[#allocation3 + $0x170] sm:$0xff] }
 0x2d1   : > { %2707 = vadd.xlane.f32.xlu1 %v2706_v12  ;;  %v2767_v12 = vld [vmem:[#allocation3 + $0x20] sm:$0xff]  ;;  %v2890_v47 = vadd.f32 %v2806_v38, %v2805_v4  ;;  %v2810_v42 = vld [vmem:[#allocation3 + $0x178] sm:$0xff] }
 0x2d2   : > { %v2833_v52 = vadd.f32 %v2768_v60, %v2767_v12  ;;  %v2896_v25 = vadd.f32 %v2810_v42, %v2809_v22  ;;  %v2813_v12 = vld [vmem:[#allocation3 + $0x190] sm:$0xff]  ;;  %v2814_v60 = vld [vmem:[#allocation3 + $0x198] sm:$0xff] }
 0x2d3   : > { %v2902_v39 = vadd.f32 %v2814_v60, %v2813_v12 }
 0x2d4   : > { %2710 = vadd.xlane.f32.xlu0 %v2709_v29  ;;  %v2772_v29 = vld [vmem:[#allocation3 + $0x48] sm:$0xff] }
 0x2d5   : > { %2713 = vadd.xlane.f32.xlu1 %v2712_v15  ;;  %v2771_v15 = vld [vmem:[#allocation3 + $0x40] sm:$0xff] }
 0x2d6   : > { %v2839_v57 = vadd.f32 %v2772_v29, %v2771_v15  ;;  %v2817_v15 = vld [vmem:[#allocation3 + $0x1b0] sm:$0xff]  ;;  %v2818_v29 = vld [vmem:[#allocation3 + $0x1b8] sm:$0xff] }
 0x2d7   : > { %v2908_v13 = vadd.f32 %v2818_v29, %v2817_v15 }
 0x2d8   : > { %2716 = vadd.xlane.f32.xlu0 %v2715_v6  ;;  %v2776_v6 = vld [vmem:[#allocation3 + $0x68] sm:$0xff] }
 0x2d9   : > { %2719 = vadd.xlane.f32.xlu1 %v2718_v21  ;;  %v2775_v21 = vld [vmem:[#allocation3 + $0x60] sm:$0xff] }
 0x2da   : > { %v2845_v45 = vadd.f32 %v2776_v6, %v2775_v21  ;;  %v2821_v21 = vld [vmem:[#allocation3 + $0x1d0] sm:$0xff]  ;;  %v2822_v6 = vld [vmem:[#allocation3 + $0x1d8] sm:$0xff] }
 0x2db   : > { %v2914_v51 = vadd.f32 %v2822_v6, %v2821_v21 }
 0x2dc   : > { %2722 = vadd.xlane.f32.xlu0 %v2721_v1  ;;  %v2780_v1 = vld [vmem:[#allocation3 + $0x88] sm:$0xff] }
 0x2dd   : > { %2725 = vadd.xlane.f32.xlu1 %v2724_v43  ;;  %v2779_v43 = vld [vmem:[#allocation3 + $0x80] sm:$0xff] }
 0x2de   : > { %v2851_v7 = vadd.f32 %v2780_v1, %v2779_v43  ;;  %v2825_v43 = vld [vmem:[#allocation3 + $0x1f0] sm:$0xff]  ;;  %v2826_v1 = vld [vmem:[#allocation3 + $0x1f8] sm:$0xff] }
 0x2df   : > { %v2920_v41 = vadd.f32 %v2826_v1, %v2825_v43 }
 0x2e0   : > { %2728 = vadd.xlane.f32.xlu0 %v2727_v27  ;;  %v2784_v27 = vld [vmem:[#allocation3 + $0xa8] sm:$0xff] }
 0x2e1   : > { %2731 = vadd.xlane.f32.xlu1 %v2730_v58  ;;  %v2783_v58 = vld [vmem:[#allocation3 + $0xa0] sm:$0xff] }
 0x2e2   : > { %v2857_v54 = vadd.f32 %v2784_v27, %v2783_v58 }
 0x2e4   : > { %2734 = vadd.xlane.f32.xlu0 %v2733_v33  ;;  %v2788_v33 = vld [vmem:[#allocation3 + $0xc8] sm:$0xff] }
 0x2e5   : > { %2737 = vadd.xlane.f32.xlu1 %v2736_v3  ;;  %v2787_v3 = vld [vmem:[#allocation3 + $0xc0] sm:$0xff] }
 0x2e6   : > { %v2863_v23 = vadd.f32 %v2788_v33, %v2787_v3 }
 0x2e8   : > { %2740 = vadd.xlane.f32.xlu0 %v2739_v59  ;;  %v2792_v59 = vld [vmem:[#allocation3 + $0xe8] sm:$0xff] }
 0x2e9   : > { %2743 = vadd.xlane.f32.xlu1 %v2742_v34  ;;  %v2791_v34 = vld [vmem:[#allocation3 + $0xe0] sm:$0xff] }
 0x2ea   : > { %v2869_v63 = vadd.f32 %v2792_v59, %v2791_v34 }
 0x2ec   : > { %2746 = vadd.xlane.f32.xlu0 %v2745_v14  ;;  %v2796_v14 = vld [vmem:[#allocation3 + $0x108] sm:$0xff] }
 0x2ed   : > { %2749 = vadd.xlane.f32.xlu1 %v2748_v26  ;;  %v2795_v26 = vld [vmem:[#allocation3 + $0x100] sm:$0xff] }
 0x2ee   : > { %v2875_v49 = vadd.f32 %v2796_v14, %v2795_v26 }
 0x2f0   : > { %2752 = vadd.xlane.f32.xlu0 %v2751_v9  ;;  %v2800_v9 = vld [vmem:[#allocation3 + $0x128] sm:$0xff] }
 0x2f1   : > { %2755 = vadd.xlane.f32.xlu1 %v2754_v32  ;;  %v2799_v32 = vld [vmem:[#allocation3 + $0x120] sm:$0xff] }
 0x2f2   : > { %v2881_v11 = vadd.f32 %v2800_v9, %v2799_v32 }
 0x2f4   : > { %2758 = vadd.xlane.f32.xlu0 %v2757_v2  ;;  %v2804_v2 = vld [vmem:[#allocation3 + $0x148] sm:$0xff] }
 0x2f5   : > { %2761 = vadd.xlane.f32.xlu1 %v2760_v18  ;;  %v2803_v18 = vld [vmem:[#allocation3 + $0x140] sm:$0xff] }
 0x2f6   : > { %v2887_v31 = vadd.f32 %v2804_v2, %v2803_v18 }
 0x2f8   : > { %2828 = vadd.xlane.f32.xlu0 %v2827_v10  ;;  %v2808_v10 = vld [vmem:[#allocation3 + $0x168] sm:$0xff] }
 0x2f9   : > { %2831 = vadd.xlane.f32.xlu1 %v2830_v20  ;;  %v2807_v20 = vld [vmem:[#allocation3 + $0x160] sm:$0xff] }
 0x2fa   : > { %v2893_v40 = vadd.f32 %v2808_v10, %v2807_v20 }
 0x2fc   : > { %2834 = vadd.xlane.f32.xlu0 %v2833_v52  ;;  %v2812_v52 = vld [vmem:[#allocation3 + $0x188] sm:$0xff] }
 0x2fd   : > { %2837 = vadd.xlane.f32.xlu1 %v2836_v35  ;;  %v2811_v35 = vld [vmem:[#allocation3 + $0x180] sm:$0xff] }
 0x2fe   : > { %v2899_v37 = vadd.f32 %v2812_v52, %v2811_v35 }
 0x300   : > { %2840 = vadd.xlane.f32.xlu0 %v2839_v57  ;;  %v2816_v57 = vld [vmem:[#allocation3 + $0x1a8] sm:$0xff] }
 0x301   : > { %2843 = vadd.xlane.f32.xlu1 %v2842_v5  ;;  %v2815_v5 = vld [vmem:[#allocation3 + $0x1a0] sm:$0xff] }
 0x302   : > { %v2905_v28 = vadd.f32 %v2816_v57, %v2815_v5 }
 0x304   : > { %2846 = vadd.xlane.f32.xlu0 %v2845_v45  ;;  %v2820_v45 = vld [vmem:[#allocation3 + $0x1c8] sm:$0xff] }
 0x305   : > { %2849 = vadd.xlane.f32.xlu1 %v2848_v44  ;;  %v2819_v44 = vld [vmem:[#allocation3 + $0x1c0] sm:$0xff] }
 0x306   : > { %v2911_v62 = vadd.f32 %v2820_v45, %v2819_v44 }
 0x308   : > { %2852 = vadd.xlane.f32.xlu0 %v2851_v7  ;;  %v2824_v7 = vld [vmem:[#allocation3 + $0x1e8] sm:$0xff] }
 0x309   : > { %2855 = vadd.xlane.f32.xlu1 %v2854_v48  ;;  %v2823_v48 = vld [vmem:[#allocation3 + $0x1e0] sm:$0xff] }
 0x30a   : > { %v2917_v19 = vadd.f32 %v2824_v7, %v2823_v48 }
 0x30c   : > { %2858 = vadd.xlane.f32.xlu0 %v2857_v54 }
 0x30d   : > { %2861 = vadd.xlane.f32.xlu1 %v2860_v56 }
 0x310   : > { %2864 = vadd.xlane.f32.xlu0 %v2863_v23 }
 0x311   : > { %2867 = vadd.xlane.f32.xlu1 %v2866_v50 }
 0x314   : > { %2870 = vadd.xlane.f32.xlu0 %v2869_v63 }
 0x315   : > { %2873 = vadd.xlane.f32.xlu1 %v2872_v46 }
 0x318   : > { %2876 = vadd.xlane.f32.xlu0 %v2875_v49 }
 0x319   : > { %2879 = vadd.xlane.f32.xlu1 %v2878_v8 }
 0x31c   : > { %2882 = vadd.xlane.f32.xlu0 %v2881_v11 }
 0x31d   : > { %2885 = vadd.xlane.f32.xlu1 %v2884_v55 }
 0x320   : > { %2888 = vadd.xlane.f32.xlu0 %v2887_v31 }
 0x321   : > { %2891 = vadd.xlane.f32.xlu1 %v2890_v47 }
 0x324   : > { %2894 = vadd.xlane.f32.xlu0 %v2893_v40 }
 0x325   : > { %2897 = vadd.xlane.f32.xlu1 %v2896_v25 }
 0x328   : > { %2900 = vadd.xlane.f32.xlu0 %v2899_v37 }
 0x329   : > { %2903 = vadd.xlane.f32.xlu1 %v2902_v39 }
 0x32c   : > { %2906 = vadd.xlane.f32.xlu0 %v2905_v28 }
 0x32d   : > { %2909 = vadd.xlane.f32.xlu1 %v2908_v13 }
 0x330   : > { %2912 = vadd.xlane.f32.xlu0 %v2911_v62 }
 0x331   : > { %2915 = vadd.xlane.f32.xlu1 %v2914_v51 }
 0x334   : > { %2918 = vadd.xlane.f32.xlu0 %v2917_v19 }
 0x335   : > { %2921 = vadd.xlane.f32.xlu1 %v2920_v41 }
 0x345   : > { %v2669_v27 = vpop.xlane.xlu0 %2668 }
 0x346   : > { %v2675_v58 = vpop.xlane.xlu1 %2674  ;;  %v2923_v11 = vadd.f32 1e-08, %v2669_v27 }
 0x347   : > { %v2925_v2 = vadd.f32 1e-08, %v2675_v58 }
 0x349   : > { %v2672_v54 = vpop.xlane.xlu0 %2671 }
 0x34a   : > { %v2678_v56 = vpop.xlane.xlu1 %2677  ;;  %v2924_v55 = vadd.f32 1e-08, %v2672_v54 }
 0x34b   : > { %v2926_v18 = vadd.f32 1e-08, %v2678_v56 }
 0x34c   : > { %3765 = vrcp.f32 %v2924_v55 }
 0x34d   : > { %v2681_v53 = vpop.xlane.xlu0 %2680  ;;  %3767 = vrcp.f32 %v2923_v11 }
 0x34e   : > { %v2684_v17 = vpop.xlane.xlu1 %2683  ;;  %3769 = vrcp.f32 %v2926_v18  ;;  %v2927_v42 = vadd.f32 1e-08, %v2681_v53 }
 0x34f   : > { %v2928_v22 = vadd.f32 1e-08, %v2684_v17  ;;  %3771 = vrcp.f32 %v2925_v2 }
 0x351   : > { %v2687_v33 = vpop.xlane.xlu0 %2686  ;;  %3773 = vrcp.f32 %v2928_v22 }
 0x352   : > { %v2690_v3 = vpop.xlane.xlu1 %2689  ;;  %3775 = vrcp.f32 %v2927_v42  ;;  %v2929_v40 = vadd.f32 1e-08, %v2687_v33 }
 0x353   : > { %v2930_v25 = vadd.f32 1e-08, %v2690_v3 }
 0x355   : > { %v2693_v23 = vpop.xlane.xlu0 %2692  ;;  %3777 = vrcp.f32 %v2930_v25 }
 0x356   : > { %v2696_v50 = vpop.xlane.xlu1 %2695  ;;  %v3766_v12 = vpop.eup %3765  ;;  %3779 = vrcp.f32 %v2929_v40  ;;  %v2931_v29 = vadd.f32 1e-08, %v2693_v23 }
 0x357   : > { %v2932_v60 = vadd.f32 1e-08, %v2696_v50  ;;  %v3768_v52 = vpop.eup %3767 }
 0x358   : > { %v3770_v57 = vpop.eup %3769 }
 0x359   : > { %v2699_v30 = vpop.xlane.xlu0 %2698  ;;  %3781 = vrcp.f32 %v2932_v60  ;;  %v3772_v6 = vpop.eup %3771 }
 0x35a   : > { %v2702_v61 = vpop.xlane.xlu1 %2701  ;;  %v2933_v62 = vadd.f32 1e-08, %v2699_v30 }
 0x35b   : > { %v2934_v13 = vadd.f32 1e-08, %v2702_v61  ;;  %v3774_v1 = vpop.eup %3773 }
 0x35c   : > { %v3776_v19 = vpop.eup %3775 }
 0x35d   : > { %v6049_v59 = vpop.xlane.xlu0 %2704 }
 0x35e   : > { %v6047_v34 = vpop.xlane.xlu1 %2707  ;;  %v2935_v54 = vadd.f32 1e-08, %v6049_v59 }
 0x35f   : > { %v2936_v48 = vadd.f32 1e-08, %v6047_v34  ;;  %v3778_v53 = vpop.eup %3777 }
 0x360   : > { %v3780_v23 = vpop.eup %3779 }
 0x361   : > { %v6053_v63 = vpop.xlane.xlu0 %2710 }
 0x362   : > { %v6051_v46 = vpop.xlane.xlu1 %2713  ;;  %v2937_v11 = vadd.f32 1e-08, %v6053_v63 }
 0x363   : > { %v2938_v3 = vadd.f32 1e-08, %v6051_v46  ;;  %v3782_v34 = vpop.eup %3781 }
 0x365   : > { %v6057_v24 = vpop.xlane.xlu0 %2716 }
 0x366   : > { %v6055_v36 = vpop.xlane.xlu1 %2719 }
 0x367   : > { %v2940_v2 = vadd.f32 1e-08, %v6055_v36  ;;  %v2939_v36 = vadd.f32 1e-08, %v6057_v24 }
 0x369   : > { %v6061_v14 = vpop.xlane.xlu0 %2722 }
 0x36a   : > { %v6059_v26 = vpop.xlane.xlu1 %2725 }
 0x36d   : > { %v6065_v49 = vpop.xlane.xlu0 %2728 }
 0x36e   : > { %v6063_v8 = vpop.xlane.xlu1 %2731 }
 0x371   : > { %v6069_v0 = vpop.xlane.xlu0 %2734 }
 0x372   : > { %v6067_v16 = vpop.xlane.xlu1 %2737 }
 0x375   : > { %v6073_v9 = vpop.xlane.xlu0 %2740 }
 0x376   : > { %v6071_v32 = vpop.xlane.xlu1 %2743 }
 0x379   : > { %v6077_v38 = vpop.xlane.xlu0 %2746 }
 0x37a   : > { %v6075_v4 = vpop.xlane.xlu1 %2749 }
 0x37d   : > { %v6081_v31 = vpop.xlane.xlu0 %2752 }
 0x37e   : > { %v6079_v47 = vpop.xlane.xlu1 %2755 }
 0x381   : > { %v6085_v10 = vpop.xlane.xlu0 %2758 }
 0x382   : > { %v6083_v20 = vpop.xlane.xlu1 %2761 }
 0x385   : > { %v2829_v37 = vpop.xlane.xlu0 %2828 }
 0x386   : > { %v2832_v35 = vpop.xlane.xlu1 %2831  ;;  %v2956_v15 = vmul.f32 %v3768_v52, %v2829_v37  ;;  %3180 = vst.msk [vmem:[%s4025_s26] sm:$0xff] %vm3147_vm13, %v2829_v37 }
 0x387   : > { %v2958_v39 = vmul.f32 %v3766_v12, %v2832_v35  ;;  %3181 = vst.msk [vmem:[%s4025_s26 + $0x8] sm:$0xff] %vm3147_vm13, %v2832_v35 }
 0x388   : > { %v3019_v28 = vadd.f32 1e-08, %v2956_v15 }
 0x389   : > { %v3020_v5 = vadd.f32 1e-08, %v2958_v39  ;;  %v2835_v45 = vpop.xlane.xlu0 %2834 }
 0x38a   : > { %v2838_v21 = vpop.xlane.xlu1 %2837  ;;  %v2960_v51 = vmul.f32 %v3772_v6, %v2835_v45  ;;  %3182 = vst.msk [vmem:[%s4025_s26 + $0x10] sm:$0xff] %vm3147_vm13, %v2835_v45 }
 0x38b   : > { %3783 = vlog2.f32 %v3020_v5  ;;  %v2962_v44 = vmul.f32 %v3770_v57, %v2838_v21  ;;  %3183 = vst.msk [vmem:[%s4025_s26 + $0x18] sm:$0xff] %vm3147_vm13, %v2838_v21  ;;  %v2942_v57 = vadd.f32 1e-08, %v6059_v26 }
 0x38c   : > { %3785 = vlog2.f32 %v3019_v28  ;;  %v3021_v7 = vadd.f32 1e-08, %v2960_v51 }
 0x38d   : > { %3787 = vrcp.f32 %v2931_v29  ;;  %v3022_v43 = vadd.f32 1e-08, %v2962_v44  ;;  %v2841_v27 = vpop.xlane.xlu0 %2840 }
 0x38e   : > { %3789 = vrcp.f32 %v2934_v13  ;;  %v2844_v41 = vpop.xlane.xlu1 %2843  ;;  %v2964_v56 = vmul.f32 %v3776_v19, %v2841_v27  ;;  %3184 = vst.msk [vmem:[%s4025_s26 + $0x20] sm:$0xff] %vm3147_vm13, %v2841_v27  ;;  %v2944_v19 = vadd.f32 1e-08, %v6063_v8 }
 0x38f   : > { %3791 = vlog2.f32 %v3022_v43  ;;  %v2966_v58 = vmul.f32 %v3774_v1, %v2844_v41  ;;  %3185 = vst.msk [vmem:[%s4025_s26 + $0x28] sm:$0xff] %vm3147_vm13, %v2844_v41  ;;  %v2941_v1 = vadd.f32 1e-08, %v6061_v14 }
 0x390   : > { %3793 = vlog2.f32 %v3021_v7  ;;  %v3023_v33 = vadd.f32 1e-08, %v2964_v56 }
 0x391   : > { %3795 = vrcp.f32 %v2933_v62  ;;  %v3024_v17 = vadd.f32 1e-08, %v2966_v58  ;;  %v2847_v30 = vpop.xlane.xlu0 %2846 }
 0x392   : > { %3797 = vrcp.f32 %v2936_v48  ;;  %v2850_v50 = vpop.xlane.xlu1 %2849  ;;  %v2968_v55 = vmul.f32 %v3780_v23, %v2847_v30  ;;  %3186 = vst.msk [vmem:[%s4025_s26 + $0x30] sm:$0xff] %vm3147_vm13, %v2847_v30  ;;  %v2943_v23 = vadd.f32 1e-08, %v6065_v49 }
 0x393   : > { %3799 = vlog2.f32 %v3024_v17  ;;  %v2970_v61 = vmul.f32 %v3778_v53, %v2850_v50  ;;  %3187 = vst.msk [vmem:[%s4025_s26 + $0x38] sm:$0xff] %vm3147_vm13, %v2850_v50 }
 0x394   : > { %3801 = vlog2.f32 %v3023_v33  ;;  %v3025_v42 = vadd.f32 1e-08, %v2968_v55  ;;  %v2946_v55 = vadd.f32 1e-08, %v6067_v16 }
 0x395   : > { %v3784_v59 = vpop.eup %3783  ;;  %3803 = vrcp.f32 %v2935_v54  ;;  %v3026_v18 = vadd.f32 1e-08, %v2970_v61  ;;  %v2853_v35 = vpop.xlane.xlu0 %2852 }
 0x396   : > { %v3786_v46 = vpop.eup %3785  ;;  %3805 = vrcp.f32 %v2938_v3  ;;  %v3054_v22 = vmul.f32 0.6931472, %v3784_v59  ;;  %v2856_v25 = vpop.xlane.xlu1 %2855  ;;  %3188 = vst.msk [vmem:[%s4025_s26 + $0x40] sm:$0xff] %vm3147_vm13, %v2853_v35 }
 0x397   : > { %v3788_v40 = vpop.eup %3787  ;;  %v3052_v12 = vmul.f32 0.6931472, %v3786_v46  ;;  %3807 = vlog2.f32 %v3026_v18  ;;  %v2974_v60 = vmul.f32 %v3782_v34, %v2856_v25  ;;  %3189 = vst.msk [vmem:[%s4025_s26 + $0x48] sm:$0xff] %vm3147_vm13, %v2856_v25 }
 0x398   : > { %v3790_v52 = vpop.eup %3789  ;;  %v3116_v39 = vsub.f32 0.0, %v3054_v22  ;;  %3809 = vlog2.f32 %v3025_v42  ;;  %v2972_v63 = vmul.f32 %v3788_v40, %v2853_v35 }
 0x399   : > { %v3792_v37 = vpop.eup %3791  ;;  %3811 = vrcp.f32 %v2937_v11  ;;  %v3115_v15 = vsub.f32 0.0, %v3052_v12  ;;  %v3028_v29 = vadd.f32 1e-08, %v2974_v60  ;;  %v2859_v24 = vpop.xlane.xlu0 %2858  ;;  %v2945_v12 = vadd.f32 1e-08, %v6069_v0 }
 0x39a   : > { %v3794_v5 = vpop.eup %3793  ;;  %3813 = vrcp.f32 %v2940_v2  ;;  %3149 = vst.msk [vmem:[%s4020_s17 + $0x8] sm:$0xff] %vm3147_vm13, %v3116_v39  ;;  %v3058_v13 = vmul.f32 0.6931472, %v3792_v37  ;;  %v3027_v28 = vadd.f32 1e-08, %v2972_v63  ;;  %v2862_v21 = vpop.xlane.xlu1 %2861  ;;  %3190 = vst.msk [vmem:[%s4025_s26 + $0x50] sm:$0xff] %vm3147_vm13, %v2859_v24 }
 0x39b   : > { %v3796_v6 = vpop.eup %3795  ;;  %3148 = vst.msk [vmem:[%s4020_s17] sm:$0xff] %vm3147_vm13, %v3115_v15  ;;  %v3056_v44 = vmul.f32 0.6931472, %v3794_v5  ;;  %3815 = vlog2.f32 %v3028_v29  ;;  %v2978_v45 = vmul.f32 %v3790_v52, %v2862_v21  ;;  %3191 = vst.msk [vmem:[%s4025_s26 + $0x58] sm:$0xff] %vm3147_vm13, %v2862_v21  ;;  %v2948_v39 = vadd.f32 1e-08, %v6071_v32 }
 0x39c   : > { %v3798_v51 = vpop.eup %3797  ;;  %v3118_v62 = vsub.f32 0.0, %v3058_v13  ;;  %3817 = vlog2.f32 %v3027_v28  ;;  %v2976_v26 = vmul.f32 %v3796_v6, %v2859_v24  ;;  %v2947_v21 = vadd.f32 1e-08, %v6073_v9 }
 0x39d   : > { %v3800_v43 = vpop.eup %3799  ;;  %3819 = vrcp.f32 %v2939_v36  ;;  %v3117_v48 = vsub.f32 0.0, %v3056_v44  ;;  %v3030_v7 = vadd.f32 1e-08, %v2978_v45  ;;  %v2865_v14 = vpop.xlane.xlu0 %2864  ;;  %v2950_v24 = vadd.f32 1e-08, %v6075_v4 }
 0x39e   : > { %v3802_v41 = vpop.eup %3801  ;;  %3821 = vrcp.f32 %v2942_v57  ;;  %3151 = vst.msk [vmem:[%s4020_s17 + $0x18] sm:$0xff] %vm3147_vm13, %v3118_v62  ;;  %v3062_v58 = vmul.f32 0.6931472, %v3800_v43  ;;  %v3029_v27 = vadd.f32 1e-08, %v2976_v26  ;;  %v2868_v56 = vpop.xlane.xlu1 %2867  ;;  %3192 = vst.msk [vmem:[%s4025_s26 + $0x60] sm:$0xff] %vm3147_vm13, %v2865_v14 }
 0x39f   : > { %v3804_v54 = vpop.eup %3803  ;;  %3150 = vst.msk [vmem:[%s4020_s17 + $0x10] sm:$0xff] %vm3147_vm13, %v3117_v48  ;;  %v3060_v17 = vmul.f32 0.6931472, %v3802_v41  ;;  %3823 = vlog2.f32 %v3030_v7  ;;  %v2982_v53 = vmul.f32 %v3798_v51, %v2868_v56  ;;  %3193 = vst.msk [vmem:[%s4025_s26 + $0x68] sm:$0xff] %vm3147_vm13, %v2868_v56 }
 0x3a0   : > { %v3806_v3 = vpop.eup %3805  ;;  %v3120_v33 = vsub.f32 0.0, %v3062_v58  ;;  %3825 = vlog2.f32 %v3029_v27  ;;  %v2980_v8 = vmul.f32 %v3804_v54, %v2865_v14  ;;  %v2949_v58 = vadd.f32 1e-08, %v6077_v38 }
 0x3a1   : > { %v3808_v50 = vpop.eup %3807  ;;  %3827 = vrcp.f32 %v2941_v1  ;;  %v3119_v61 = vsub.f32 0.0, %v3060_v17  ;;  %v3032_v30 = vadd.f32 1e-08, %v2982_v53  ;;  %v2871_v49 = vpop.xlane.xlu0 %2870  ;;  %v2952_v17 = vadd.f32 1e-08, %v6079_v47 }
 0x3a2   : > { %v3810_v34 = vpop.eup %3809  ;;  %3829 = vrcp.f32 %v2944_v19  ;;  %3153 = vst.msk [vmem:[%s4020_s17 + $0x28] sm:$0xff] %vm3147_vm13, %v3120_v33  ;;  %v3066_v59 = vmul.f32 0.6931472, %v3808_v50  ;;  %v3031_v11 = vadd.f32 1e-08, %v2980_v8  ;;  %v2874_v18 = vpop.xlane.xlu1 %2873  ;;  %3194 = vst.msk [vmem:[%s4025_s26 + $0x70] sm:$0xff] %vm3147_vm13, %v2871_v49 }
 0x3a3   : > { %v3812_v46 = vpop.eup %3811  ;;  %3152 = vst.msk [vmem:[%s4020_s17 + $0x20] sm:$0xff] %vm3147_vm13, %v3119_v61  ;;  %v3064_v2 = vmul.f32 0.6931472, %v3810_v34  ;;  %3831 = vlog2.f32 %v3032_v30  ;;  %v2986_v22 = vmul.f32 %v3806_v3, %v2874_v18  ;;  %3195 = vst.msk [vmem:[%s4025_s26 + $0x78] sm:$0xff] %vm3147_vm13, %v2874_v18  ;;  %v2951_v34 = vadd.f32 1e-08, %v6081_v31 }
 0x3a4   : > { %v3814_v42 = vpop.eup %3813  ;;  %v3122_v25 = vsub.f32 0.0, %v3066_v59  ;;  %3833 = vlog2.f32 %v3031_v11  ;;  %v2984_v16 = vmul.f32 %v3812_v46, %v2871_v49  ;;  %v2954_v18 = vadd.f32 1e-08, %v6083_v20 }
 0x3a5   : > { %v3816_v40 = vpop.eup %3815  ;;  %3835 = vrcp.f32 %v2943_v23  ;;  %v3121_v60 = vsub.f32 0.0, %v3064_v2  ;;  %v3034_v35 = vadd.f32 1e-08, %v2986_v22  ;;  %v2877_v0 = vpop.xlane.xlu0 %2876 }
 0x3a6   : > { %v3818_v52 = vpop.eup %3817  ;;  %3837 = vrcp.f32 %v2946_v55  ;;  %3155 = vst.msk [vmem:[%s4020_s17 + $0x38] sm:$0xff] %vm3147_vm13, %v3122_v25  ;;  %v3070_v63 = vmul.f32 0.6931472, %v3816_v40  ;;  %v3033_v37 = vadd.f32 1e-08, %v2984_v16  ;;  %v2880_v36 = vpop.xlane.xlu1 %2879  ;;  %3196 = vst.msk [vmem:[%s4025_s26 + $0x80] sm:$0xff] %vm3147_vm13, %v2877_v0 }
 0x3a7   : > { %v3820_v15 = vpop.eup %3819  ;;  %3154 = vst.msk [vmem:[%s4020_s17 + $0x30] sm:$0xff] %vm3147_vm13, %v3121_v60  ;;  %v3068_v29 = vmul.f32 0.6931472, %v3818_v52  ;;  %3839 = vlog2.f32 %v3034_v35  ;;  %v2990_v5 = vmul.f32 %v3814_v42, %v2880_v36  ;;  %3197 = vst.msk [vmem:[%s4025_s26 + $0x88] sm:$0xff] %vm3147_vm13, %v2880_v36  ;;  %v2953_v60 = vadd.f32 1e-08, %v6085_v10 }
 0x3a8   : > { %v3822_v57 = vpop.eup %3821  ;;  %v3124_v13 = vsub.f32 0.0, %v3070_v63  ;;  %3841 = vlog2.f32 %v3033_v37  ;;  %v2988_v32 = vmul.f32 %v3820_v15, %v2877_v0 }
 0x3a9   : > { %v3824_v28 = vpop.eup %3823  ;;  %3843 = vrcp.f32 %v2945_v12  ;;  %v3123_v6 = vsub.f32 0.0, %v3068_v29  ;;  %v3036_v44 = vadd.f32 1e-08, %v2990_v5  ;;  %v2883_v9 = vpop.xlane.xlu0 %2882 }
 0x3aa   : > { %v3826_v45 = vpop.eup %3825  ;;  %3845 = vrcp.f32 %v2948_v39  ;;  %3157 = vst.msk [vmem:[%s4020_s17 + $0x48] sm:$0xff] %vm3147_vm13, %v3124_v13  ;;  %v3074_v51 = vmul.f32 0.6931472, %v3824_v28  ;;  %v3035_v62 = vadd.f32 1e-08, %v2988_v32  ;;  %v2886_v26 = vpop.xlane.xlu1 %2885  ;;  %3198 = vst.msk [vmem:[%s4025_s26 + $0x90] sm:$0xff] %vm3147_vm13, %v2883_v9 }
 0x3ab   : > { %v3828_v43 = vpop.eup %3827  ;;  %3156 = vst.msk [vmem:[%s4020_s17 + $0x40] sm:$0xff] %vm3147_vm13, %v3123_v6  ;;  %v3072_v1 = vmul.f32 0.6931472, %v3826_v45  ;;  %3847 = vlog2.f32 %v3036_v44  ;;  %v2994_v48 = vmul.f32 %v3822_v57, %v2886_v26  ;;  %3199 = vst.msk [vmem:[%s4025_s26 + $0x98] sm:$0xff] %vm3147_vm13, %v2886_v26 }
 0x3ac   : > { %v3830_v7 = vpop.eup %3829  ;;  %v3126_v41 = vsub.f32 0.0, %v3074_v51  ;;  %3849 = vlog2.f32 %v3035_v62  ;;  %v2992_v4 = vmul.f32 %v3828_v43, %v2883_v9 }
 0x3ad   : > { %v3832_v19 = vpop.eup %3831  ;;  %3851 = vrcp.f32 %v2947_v21  ;;  %v3125_v27 = vsub.f32 0.0, %v3072_v1  ;;  %v3038_v56 = vadd.f32 1e-08, %v2994_v48  ;;  %v2889_v38 = vpop.xlane.xlu0 %2888 }
 0x3ae   : > { %v3834_v54 = vpop.eup %3833  ;;  %3853 = vrcp.f32 %v2950_v24  ;;  %3159 = vst.msk [vmem:[%s4020_s17 + $0x58] sm:$0xff] %vm3147_vm13, %v3126_v41  ;;  %v3078_v53 = vmul.f32 0.6931472, %v3832_v19  ;;  %v3037_v14 = vadd.f32 1e-08, %v2992_v4  ;;  %v2892_v3 = vpop.xlane.xlu1 %2891  ;;  %3200 = vst.msk [vmem:[%s4025_s26 + $0xa0] sm:$0xff] %vm3147_vm13, %v2889_v38 }
 0x3af   : > { %v3836_v33 = vpop.eup %3835  ;;  %3158 = vst.msk [vmem:[%s4020_s17 + $0x50] sm:$0xff] %vm3147_vm13, %v3125_v27  ;;  %v3076_v8 = vmul.f32 0.6931472, %v3834_v54  ;;  %3855 = vlog2.f32 %v3038_v56  ;;  %v2998_v50 = vmul.f32 %v3830_v7, %v2892_v3  ;;  %3201 = vst.msk [vmem:[%s4025_s26 + $0xa8] sm:$0xff] %vm3147_vm13, %v2892_v3 }
 0x3b0   : > { %v3838_v23 = vpop.eup %3837  ;;  %v3128_v61 = vsub.f32 0.0, %v3078_v53  ;;  %3857 = vlog2.f32 %v3037_v14  ;;  %v2996_v47 = vmul.f32 %v3836_v33, %v2889_v38 }
 0x3b1   : > { %v3840_v30 = vpop.eup %3839  ;;  %3859 = vrcp.f32 %v2949_v58  ;;  %v3127_v55 = vsub.f32 0.0, %v3076_v8  ;;  %v3040_v59 = vadd.f32 1e-08, %v2998_v50  ;;  %v2895_v31 = vpop.xlane.xlu0 %2894 }
 0x3b2   : > { %v3842_v11 = vpop.eup %3841  ;;  %3861 = vrcp.f32 %v2952_v17  ;;  %3161 = vst.msk [vmem:[%s4020_s17 + $0x68] sm:$0xff] %vm3147_vm13, %v3128_v61  ;;  %v3082_v46 = vmul.f32 0.6931472, %v3840_v30  ;;  %v3039_v2 = vadd.f32 1e-08, %v2996_v47  ;;  %v2898_v22 = vpop.xlane.xlu1 %2897  ;;  %3202 = vst.msk [vmem:[%s4025_s26 + $0xb0] sm:$0xff] %vm3147_vm13, %v2895_v31 }
 0x3b3   : > { %v3844_v49 = vpop.eup %3843  ;;  %3160 = vst.msk [vmem:[%s4020_s17 + $0x60] sm:$0xff] %vm3147_vm13, %v3127_v55  ;;  %v3080_v42 = vmul.f32 0.6931472, %v3842_v11  ;;  %3863 = vlog2.f32 %v3040_v59  ;;  %v3002_v25 = vmul.f32 %v3838_v23, %v2898_v22  ;;  %3203 = vst.msk [vmem:[%s4025_s26 + $0xb8] sm:$0xff] %vm3147_vm13, %v2898_v22 }
 0x3b4   : > { %v3846_v16 = vpop.eup %3845  ;;  %v3130_v40 = vsub.f32 0.0, %v3082_v46  ;;  %3865 = vlog2.f32 %v3039_v2  ;;  %v3000_v20 = vmul.f32 %v3844_v49, %v2895_v31 }
 0x3b5   : > { %v3848_v12 = vpop.eup %3847  ;;  %3867 = vrcp.f32 %v2951_v34  ;;  %v3129_v35 = vsub.f32 0.0, %v3080_v42  ;;  %v3042_v52 = vadd.f32 1e-08, %v3002_v25  ;;  %v2901_v10 = vpop.xlane.xlu0 %2900 }
 0x3b6   : > { %v3850_v39 = vpop.eup %3849  ;;  %3869 = vrcp.f32 %v2954_v18  ;;  %3163 = vst.msk [vmem:[%s4020_s17 + $0x78] sm:$0xff] %vm3147_vm13, %v3130_v40  ;;  %v3086_v63 = vmul.f32 0.6931472, %v3848_v12  ;;  %v3041_v37 = vadd.f32 1e-08, %v3000_v20  ;;  %v2904_v36 = vpop.xlane.xlu1 %2903  ;;  %3204 = vst.msk [vmem:[%s4025_s26 + $0xc0] sm:$0xff] %vm3147_vm13, %v2901_v10 }
 0x3b7   : > { %v3852_v15 = vpop.eup %3851  ;;  %3162 = vst.msk [vmem:[%s4020_s17 + $0x70] sm:$0xff] %vm3147_vm13, %v3129_v35  ;;  %v3084_v29 = vmul.f32 0.6931472, %v3850_v39  ;;  %3871 = vlog2.f32 %v3042_v52  ;;  %v3006_v5 = vmul.f32 %v3846_v16, %v2904_v36  ;;  %3205 = vst.msk [vmem:[%s4025_s26 + $0xc8] sm:$0xff] %vm3147_vm13, %v2904_v36 }
 0x3b8   : > { %v3854_v0 = vpop.eup %3853  ;;  %v3132_v57 = vsub.f32 0.0, %v3086_v63  ;;  %3873 = vlog2.f32 %v3041_v37  ;;  %v3004_v13 = vmul.f32 %v3852_v15, %v2901_v10 }
 0x3b9   : > { %v3856_v32 = vpop.eup %3855  ;;  %3875 = vrcp.f32 %v2953_v60  ;;  %v3131_v28 = vsub.f32 0.0, %v3084_v29  ;;  %v3044_v21 = vadd.f32 1e-08, %v3006_v5  ;;  %v2907_v43 = vpop.xlane.xlu0 %2906 }
 0x3ba   : > { %v3858_v6 = vpop.eup %3857  ;;  %3165 = vst.msk [vmem:[%s4020_s17 + $0x88] sm:$0xff] %vm3147_vm13, %v3132_v57  ;;  %v3090_v44 = vmul.f32 0.6931472, %v3856_v32  ;;  %v3043_v45 = vadd.f32 1e-08, %v3004_v13  ;;  %v2910_v24 = vpop.xlane.xlu1 %2909  ;;  %3206 = vst.msk [vmem:[%s4025_s26 + $0xd0] sm:$0xff] %vm3147_vm13, %v2907_v43 }
 0x3bb   : > { %v3860_v51 = vpop.eup %3859  ;;  %3164 = vst.msk [vmem:[%s4020_s17 + $0x80] sm:$0xff] %vm3147_vm13, %v3131_v28  ;;  %v3088_v62 = vmul.f32 0.6931472, %v3858_v6  ;;  %3877 = vlog2.f32 %v3044_v21  ;;  %v3010_v26 = vmul.f32 %v3854_v0, %v2910_v24  ;;  %3207 = vst.msk [vmem:[%s4025_s26 + $0xd8] sm:$0xff] %vm3147_vm13, %v2910_v24 }
 0x3bc   : > { %v3862_v1 = vpop.eup %3861  ;;  %v3134_v48 = vsub.f32 0.0, %v3090_v44  ;;  %3879 = vlog2.f32 %v3043_v45  ;;  %v3008_v9 = vmul.f32 %v3860_v51, %v2907_v43 }
 0x3bd   : > { %v3864_v7 = vpop.eup %3863  ;;  %v3133_v41 = vsub.f32 0.0, %v3088_v62  ;;  %v3046_v4 = vadd.f32 1e-08, %v3010_v26  ;;  %v2913_v14 = vpop.xlane.xlu0 %2912 }
 0x3be   : > { %v3866_v19 = vpop.eup %3865  ;;  %3167 = vst.msk [vmem:[%s4020_s17 + $0x98] sm:$0xff] %vm3147_vm13, %v3134_v48  ;;  %v3094_v58 = vmul.f32 0.6931472, %v3864_v7  ;;  %v3045_v27 = vadd.f32 1e-08, %v3008_v9  ;;  %v2916_v56 = vpop.xlane.xlu1 %2915  ;;  %3208 = vst.msk [vmem:[%s4025_s26 + $0xe0] sm:$0xff] %vm3147_vm13, %v2913_v14 }
 0x3bf   : > { %v3868_v54 = vpop.eup %3867  ;;  %3166 = vst.msk [vmem:[%s4020_s17 + $0x90] sm:$0xff] %vm3147_vm13, %v3133_v41  ;;  %v3092_v17 = vmul.f32 0.6931472, %v3866_v19  ;;  %3881 = vlog2.f32 %v3046_v4  ;;  %v3014_v53 = vmul.f32 %v3862_v1, %v2916_v56  ;;  %3209 = vst.msk [vmem:[%s4025_s26 + $0xe8] sm:$0xff] %vm3147_vm13, %v2916_v56 }
 0x3c0   : > { %v3870_v3 = vpop.eup %3869  ;;  %v3136_v33 = vsub.f32 0.0, %v3094_v58  ;;  %3883 = vlog2.f32 %v3045_v27  ;;  %v3012_v8 = vmul.f32 %v3868_v54, %v2913_v14 }
 0x3c1   : > { %v3872_v50 = vpop.eup %3871  ;;  %v3135_v38 = vsub.f32 0.0, %v3092_v17  ;;  %v3048_v23 = vadd.f32 1e-08, %v3014_v53  ;;  %v2919_v18 = vpop.xlane.xlu0 %2918 }
 0x3c2   : > { %v3874_v61 = vpop.eup %3873  ;;  %3169 = vst.msk [vmem:[%s4020_s17 + $0xa8] sm:$0xff] %vm3147_vm13, %v3136_v33  ;;  %v3098_v47 = vmul.f32 0.6931472, %v3872_v50  ;;  %v3047_v30 = vadd.f32 1e-08, %v3012_v8  ;;  %v2922_v34 = vpop.xlane.xlu1 %2921  ;;  %3210 = vst.msk [vmem:[%s4025_s26 + $0xf0] sm:$0xff] %vm3147_vm13, %v2919_v18 }
 0x3c3   : > { %v3876_v55 = vpop.eup %3875  ;;  %3168 = vst.msk [vmem:[%s4020_s17 + $0xa0] sm:$0xff] %vm3147_vm13, %v3135_v38  ;;  %v3096_v59 = vmul.f32 0.6931472, %v3874_v61  ;;  %3885 = vlog2.f32 %v3048_v23  ;;  %v3018_v11 = vmul.f32 %v3870_v3, %v2922_v34  ;;  %3211 = vst.msk [vmem:[%s4025_s26 + $0xf8] sm:$0xff] %vm3147_vm13, %v2922_v34 }
 0x3c4   : > { %v3138_v46 = vsub.f32 0.0, %v3098_v47  ;;  %3887 = vlog2.f32 %v3047_v30  ;;  %v3016_v2 = vmul.f32 %v3876_v55, %v2919_v18 }
 0x3c5   : > { %v3878_v22 = vpop.eup %3877  ;;  %v3137_v49 = vsub.f32 0.0, %v3096_v59  ;;  %v3050_v42 = vadd.f32 1e-08, %v3018_v11 }
 0x3c6   : > { %v3880_v25 = vpop.eup %3879  ;;  %3171 = vst.msk [vmem:[%s4020_s17 + $0xb8] sm:$0xff] %vm3147_vm13, %v3138_v46  ;;  %v3102_v31 = vmul.f32 0.6931472, %v3878_v22  ;;  %v3049_v16 = vadd.f32 1e-08, %v3016_v2 }
 0x3c7   : > { %3170 = vst.msk [vmem:[%s4020_s17 + $0xb0] sm:$0xff] %vm3147_vm13, %v3137_v49  ;;  %v3100_v40 = vmul.f32 0.6931472, %v3880_v25  ;;  %3889 = vlog2.f32 %v3050_v42 }
 0x3c8   : > { %v3140_v20 = vsub.f32 0.0, %v3102_v31  ;;  %3891 = vlog2.f32 %v3049_v16 }
 0x3c9   : > { %v3882_v12 = vpop.eup %3881  ;;  %v3139_v60 = vsub.f32 0.0, %v3100_v40 }
 0x3ca   : > { %v3884_v35 = vpop.eup %3883  ;;  %3173 = vst.msk [vmem:[%s4020_s17 + $0xc8] sm:$0xff] %vm3147_vm13, %v3140_v20  ;;  %v3106_v52 = vmul.f32 0.6931472, %v3882_v12 }
 0x3cb   : > { %3172 = vst.msk [vmem:[%s4020_s17 + $0xc0] sm:$0xff] %vm3147_vm13, %v3139_v60  ;;  %v3104_v39 = vmul.f32 0.6931472, %v3884_v35 }
 0x3cc   : > { %v3142_v63 = vsub.f32 0.0, %v3106_v52 }
 0x3cd   : > { %v3886_v37 = vpop.eup %3885  ;;  %v3141_v36 = vsub.f32 0.0, %v3104_v39 }
 0x3ce   : > { %v3888_v15 = vpop.eup %3887  ;;  %3175 = vst.msk [vmem:[%s4020_s17 + $0xd8] sm:$0xff] %vm3147_vm13, %v3142_v63  ;;  %v3110_v29 = vmul.f32 0.6931472, %v3886_v37 }
 0x3cf   : > { %3174 = vst.msk [vmem:[%s4020_s17 + $0xd0] sm:$0xff] %vm3147_vm13, %v3141_v36  ;;  %v3108_v5 = vmul.f32 0.6931472, %v3888_v15 }
 0x3d0   : > { %v3144_v10 = vsub.f32 0.0, %v3110_v29 }
 0x3d1   : > { %v3890_v0 = vpop.eup %3889  ;;  %v3143_v57 = vsub.f32 0.0, %v3108_v5 }
 0x3d2   : > { %v3892_v13 = vpop.eup %3891  ;;  %3177 = vst.msk [vmem:[%s4020_s17 + $0xe8] sm:$0xff] %vm3147_vm13, %v3144_v10  ;;  %v3114_v32 = vmul.f32 0.6931472, %v3890_v0 }
 0x3d3   : > { %3176 = vst.msk [vmem:[%s4020_s17 + $0xe0] sm:$0xff] %vm3147_vm13, %v3143_v57  ;;  %v3112_v28 = vmul.f32 0.6931472, %v3892_v13 }
 0x3d4   : > { %v3146_v21 = vsub.f32 0.0, %v3114_v32 }
 0x3d5   : > { %v3145_v6 = vsub.f32 0.0, %v3112_v28 }
 0x3d6   : > { %3179 = vst.msk [vmem:[%s4020_s17 + $0xf8] sm:$0xff] %vm3147_vm13, %v3146_v21 }
 0x3d7   : > { %3178 = vst.msk [vmem:[%s4020_s17 + $0xf0] sm:$0xff] %vm3147_vm13, %v3145_v6 }
 0x3d8 PF: > { %s16_s22 = sadd.s32 1, %s3931_s22   ;;  %s6924_s18 = smov %s3923_s20 }
 0x3d9   : > { %p13_p2 = scmp.ge.s32.totalorder %s16_s22, 6   ;;  %s6925_s19 = smov %s3927_s21 }
 0x3da   : > { %s6926_s20 = smov %s6929_s23  ;;  %s6927_s21 = smov %s6933_s24 }
 0x3db   :  { %15 = sbr.rel (!%p13_p2) target bundleno = 3 (0x3), region = 103 }

</bundles_post_ra>
